<compile_context>
chip_gen: v7x
topology: tpu7x:2x2x1
jax: 0.10.0
libtpu: 0.0.40
codegen_flags: <defaults>
</compile_context>

<pallas_src>
import numpy as np

import jax
import jax.numpy as jnp
from jax.experimental import pallas as pl
from jax.experimental.pallas import tpu as pltpu


def _round_up(x, m):
    return (x + m - 1) // m * m


def mlp_kernel(u_ref, w1_ref, b1_ref, w2_ref, b2_ref, o_ref):
    # u_ref:  (tb, p)   raw activations (any float dtype; cast in-kernel)
    # w1_ref: (p, Mp)   W1^T (compute dtype)     b1_ref: (1, Mp) f32
    # w2_ref: (Mp, Pp)  W2^T (compute dtype)     b2_ref: (1, Pp) f32
    # o_ref:  (tb, Pp)  output (out dtype)
    u = u_ref[...].astype(w1_ref.dtype)                     # VPU cast, no wrapper pass
    h = jnp.dot(u, w1_ref[...], preferred_element_type=jnp.float32)
    h = jnp.maximum(h + b1_ref[...], 0.0)                   # bias + ReLU on f32 acc
    o = jnp.dot(h.astype(w2_ref.dtype), w2_ref[...],
                preferred_element_type=jnp.float32) + b2_ref[...]
    o_ref[...] = o.astype(o_ref.dtype)


def prepare_params(w1, b1, w2, b2, *, use_bf16=True):
    """One-time parameter prep (transpose + zero-pad + cast). nn.Linear layout:
    w1: (M, p), b1: (M,), w2: (p, M), b2: (p,). Zero padding is exact for
    Linear -> ReLU -> Linear."""
    M, p = w1.shape
    Mp = _round_up(M, 128)
    Pp = _round_up(p, 128)
    cdt = jnp.bfloat16 if use_bf16 else jnp.float32
    w1t = jnp.zeros((p, Mp), cdt).at[:, :M].set(w1.T.astype(cdt))
    w2t = jnp.zeros((Mp, Pp), cdt).at[:M, :p].set(w2.T.astype(cdt))
    b1r = jnp.zeros((1, Mp), jnp.float32).at[:, :M].set(b1.astype(jnp.float32))
    b2r = jnp.zeros((1, Pp), jnp.float32).at[:, :p].set(b2.astype(jnp.float32))
    return {"w1t": w1t, "b1": b1r, "w2t": w2t, "b2": b2r, "p": p, "M": M}


def _batch_tile_cap():
    # v5e/v6e: single TensorCore -> amortize ~0.35us/step grid overhead with
    # one big tile. v7x: 2 TCs/chip -> keep >=2 grid steps so "parallel" can
    # shard the batch axis across cores.
    try:
        kind = jax.devices()[0].device_kind.lower()
    except Exception:
        kind = ""
    if "v7" in kind or "7x" in kind:
        return 128
    return 256


def _pick_tb(B, cap):
    if B <= 16:
        return B                        # single block equal to the full batch dim
    tb = min(cap, (B // 16) * 16)       # multiple of 16 (bf16 sublane packing)
    return max(tb, 16)


def nonlinear_net(params, u, *, tb=None, out_dtype=None):
    """Apply the prepared NonlinearNet params to u: (B, p) -> (B, p)."""
    B, p = u.shape
    assert p == params["p"], "feature dim mismatch"
    w1t, b1, w2t, b2 = params["w1t"], params["b1"], params["w2t"], params["b2"]
    Mp, Pp = w2t.shape
    if out_dtype is None:
        out_dtype = u.dtype
    if tb is None:
        tb = _pick_tb(B, _batch_tile_cap())
    grid = (pl.cdiv(B, tb),)            # ragged last tile is masked by Pallas

    cost = pl.CostEstimate(
        flops=4 * B * p * params["M"],                       # 2 real matmuls
        transcendentals=0,
        bytes_accessed=(B * p * u.dtype.itemsize
                        + (w1t.size + w2t.size) * w1t.dtype.itemsize
                        + (b1.size + b2.size) * 4
                        + B * Pp * np.dtype(out_dtype).itemsize))

    out = pl.pallas_call(
        mlp_kernel,
        out_shape=jax.ShapeDtypeStruct((B, Pp), out_dtype),
        grid_spec=pltpu.PrefetchScalarGridSpec(
            num_scalar_prefetch=0,
            grid=grid,
            in_specs=[
                pl.BlockSpec((tb, p), lambda i: (i, 0)),       # u batch tile
                pl.BlockSpec(w1t.shape, lambda i: (0, 0)),     # W1^T (resident)
                pl.BlockSpec(b1.shape, lambda i: (0, 0)),      # b1
                pl.BlockSpec(w2t.shape, lambda i: (0, 0)),     # W2^T (resident)
                pl.BlockSpec(b2.shape, lambda i: (0, 0)),      # b2
            ],
            out_specs=pl.BlockSpec((tb, Pp), lambda i: (i, 0)),
        ),
        compiler_params=pltpu.CompilerParams(
            dimension_semantics=("parallel",)),
        cost_estimate=cost,
    )(u, w1t, b1, w2t, b2)

    return out[:, :p]                   # drop zero feature padding (Pp -> p)


if __name__ == "__main__":
    # Shapes from the module: p=64 features, hidden M=1000, batch=256.
    B, p, M = 256, 64, 1000

    key = jax.random.PRNGKey(0)
    ku, k1, k2, k3, k4 = jax.random.split(key, 5)

    u = jax.random.normal(ku, (B, p), dtype=jnp.float32)
    # PyTorch nn.Linear convention: weight (out_features, in_features).
    w1 = jax.random.normal(k1, (M, p), dtype=jnp.float32) * 0.05
    b1 = jax.random.normal(k2, (M,), dtype=jnp.float32) * 0.05
    w2 = jax.random.normal(k3, (p, M), dtype=jnp.float32) * 0.05
    b2 = jax.random.normal(k4, (p,), dtype=jnp.float32) * 0.05

    ref = jnp.maximum(u @ w1.T + b1, 0.0) @ w2.T + b2

    # f32 compute path: exact-precision check (bf16 is the production path,
    # especially on v5e where the MXU has no native f32 mode).
    pf32 = prepare_params(w1, b1, w2, b2, use_bf16=False)
    out_f32 = nonlinear_net(pf32, u)
    jax.block_until_ready(out_f32)
    assert out_f32.shape == (B, p)
    assert jnp.allclose(out_f32, ref, atol=1e-4, rtol=1e-4)

    # Ragged batch (B not a multiple of the tile): Pallas masks the partial tile.
    out_rag = nonlinear_net(pf32, u[:100])
    jax.block_until_ready(out_rag)
    assert out_rag.shape == (100, p)
    assert jnp.allclose(out_rag, ref[:100], atol=1e-4, rtol=1e-4)

    # bf16 compute path (default): bf16 operands, f32 MXU accumulation.
    pbf16 = prepare_params(w1, b1, w2, b2, use_bf16=True)
    out_bf16 = nonlinear_net(pbf16, u)
    jax.block_until_ready(out_bf16)
    assert out_bf16.shape == (B, p)
    assert jnp.allclose(out_bf16, ref, atol=3e-2, rtol=3e-2)

    # bf16 output writeback (halves vst bytes); only the final store is cast.
    out_bf16o = nonlinear_net(pbf16, u, out_dtype=jnp.bfloat16)
    jax.block_until_ready(out_bf16o)
    assert out_bf16o.dtype == jnp.bfloat16
    assert jnp.allclose(out_bf16o.astype(jnp.float32), ref, atol=5e-2, rtol=5e-2)

    print("KERNEL_OK")
</pallas_src>

<mosaic_0001>
module attributes {stable_mosaic.version = 11 : i64} {
  func.func @mlp_kernel(%arg0: i32, %arg1: memref<256x64xf32, #tpu.memory_space<vmem>>, %arg2: memref<64x1024xf32, #tpu.memory_space<vmem>>, %arg3: memref<1x1024xf32, #tpu.memory_space<vmem>>, %arg4: memref<1024x128xf32, #tpu.memory_space<vmem>>, %arg5: memref<1x128xf32, #tpu.memory_space<vmem>>, %arg6: memref<256x128xf32, #tpu.memory_space<vmem>>) attributes {dimension_semantics = [#tpu.dimension_semantics<parallel>], iteration_bounds = array<i64: 1>, scalar_prefetch = 0 : i64, scratch_operands = 0 : i64, tpu.core_type = #tpu.core_type<tc>, window_params = [{transform_indices = @transform_0, window_bounds = array<i64: 256, 64>}, {pipeline_mode = #tpu.pipeline_mode<synchronous>, transform_indices = @transform_1, window_bounds = array<i64: 64, 1024>}, {pipeline_mode = #tpu.pipeline_mode<synchronous>, transform_indices = @transform_2, window_bounds = array<i64: 1, 1024>}, {pipeline_mode = #tpu.pipeline_mode<synchronous>, transform_indices = @transform_3, window_bounds = array<i64: 1024, 128>}, {pipeline_mode = #tpu.pipeline_mode<synchronous>, transform_indices = @transform_4, window_bounds = array<i64: 1, 128>}, {transform_indices = @transform_5, window_bounds = array<i64: 256, 128>}]} {
    %c0 = arith.constant 0 : index
    %c0_0 = arith.constant 0 : index
    %0 = vector.load %arg1[%c0, %c0_0] : memref<256x64xf32, #tpu.memory_space<vmem>>, vector<256x64xf32>
    %c0_1 = arith.constant 0 : index
    %c0_2 = arith.constant 0 : index
    %1 = vector.load %arg2[%c0_1, %c0_2] : memref<64x1024xf32, #tpu.memory_space<vmem>>, vector<64x1024xf32>
    %cst = arith.constant dense<0.000000e+00> : vector<256x1024xf32>
    %2 = tpu.matmul %0, %1, %cst {dimension_numbers = #tpu.dot_dimension_numbers<[1], [0], [0], [1], [0, 0, 1, 1], [], []>} : vector<256x64xf32>, vector<64x1024xf32>, vector<256x1024xf32> -> vector<256x1024xf32>
    %c0_3 = arith.constant 0 : index
    %c0_4 = arith.constant 0 : index
    %3 = vector.load %arg3[%c0_3, %c0_4] : memref<1x1024xf32, #tpu.memory_space<vmem>>, vector<1x1024xf32>
    %4 = vector.broadcast %3 : vector<1x1024xf32> to vector<256x1024xf32>
    %5 = arith.addf %2, %4 : vector<256x1024xf32>
    %cst_5 = arith.constant 0.000000e+00 : f32
    %6 = vector.broadcast %cst_5 : f32 to vector<256x1024xf32>
    %7 = arith.maximumf %5, %6 : vector<256x1024xf32>
    %c0_6 = arith.constant 0 : index
    %c0_7 = arith.constant 0 : index
    %8 = vector.load %arg4[%c0_6, %c0_7] : memref<1024x128xf32, #tpu.memory_space<vmem>>, vector<1024x128xf32>
    %cst_8 = arith.constant dense<0.000000e+00> : vector<256x128xf32>
    %9 = tpu.matmul %7, %8, %cst_8 {dimension_numbers = #tpu.dot_dimension_numbers<[1], [0], [0], [1], [0, 0, 1, 1], [], []>} : vector<256x1024xf32>, vector<1024x128xf32>, vector<256x128xf32> -> vector<256x128xf32>
    %c0_9 = arith.constant 0 : index
    %c0_10 = arith.constant 0 : index
    %10 = vector.load %arg5[%c0_9, %c0_10] : memref<1x128xf32, #tpu.memory_space<vmem>>, vector<1x128xf32>
    %11 = vector.broadcast %10 : vector<1x128xf32> to vector<256x128xf32>
    %12 = arith.addf %9, %11 : vector<256x128xf32>
    %c0_11 = arith.constant 0 : index
    %c0_12 = arith.constant 0 : index
    %13 = vector.load %arg6[%c0_11, %c0_12] : memref<256x128xf32, #tpu.memory_space<vmem>>, vector<256x128xf32>
    tpu.vector_store %arg6[%c0_11, %c0_12], %12 {strides = array<i32>} : memref<256x128xf32, #tpu.memory_space<vmem>>, vector<256x128xf32>,
    return
  }
  func.func @transform_0(%arg0: i32) -> (i32, i32) {
    %c0_i32 = arith.constant 0 : i32
    %c0_i32_0 = arith.constant 0 : i32
    return %arg0, %c0_i32 : i32, i32
  }
  func.func @transform_1(%arg0: i32) -> (i32, i32) {
    %c0_i32 = arith.constant 0 : i32
    %c0_i32_0 = arith.constant 0 : i32
    %c0_i32_1 = arith.constant 0 : i32
    return %c0_i32, %c0_i32_0 : i32, i32
  }
  func.func @transform_2(%arg0: i32) -> (i32, i32) {
    %c0_i32 = arith.constant 0 : i32
    %c0_i32_0 = arith.constant 0 : i32
    %c0_i32_1 = arith.constant 0 : i32
    return %c0_i32, %c0_i32_0 : i32, i32
  }
  func.func @transform_3(%arg0: i32) -> (i32, i32) {
    %c0_i32 = arith.constant 0 : i32
    %c0_i32_0 = arith.constant 0 : i32
    %c0_i32_1 = arith.constant 0 : i32
    return %c0_i32, %c0_i32_0 : i32, i32
  }
  func.func @transform_4(%arg0: i32) -> (i32, i32) {
    %c0_i32 = arith.constant 0 : i32
    %c0_i32_0 = arith.constant 0 : i32
    %c0_i32_1 = arith.constant 0 : i32
    return %c0_i32, %c0_i32_0 : i32, i32
  }
  func.func @transform_5(%arg0: i32) -> (i32, i32) {
    %c0_i32 = arith.constant 0 : i32
    %c0_i32_0 = arith.constant 0 : i32
    return %arg0, %c0_i32 : i32, i32
  }
}

</mosaic_0001>

<bundles_post_ra>
// kernel: tpu_custom_call.1
= control target key start
LH: loop header
LB: loop body
LE: loop exit
PB: predicated region body
PF: predicated region fallthrough
CT: control target
= control target key end

     0   :  { %10 = vsyncpa [#allocation3], 0  ;;  %s5037_s0 = inlined_call_operand.vmem [shape: f32[256,64], index: 0, kind: input, shape index: {}]   ;;  %s5038_s1 = inlined_call_operand.hbm [shape: f32[64,1024], index: 1, kind: input, shape index: {}]   ;;  %s5039_s2 = inlined_call_operand.vmem [shape: f32[1,1024], index: 2, kind: input, shape index: {}]   ;;  %s5040_s3 = inlined_call_operand.hbm [shape: f32[1024,128], index: 3, kind: input, shape index: {}]   ;;  %s5041_s4 = inlined_call_operand.vmem [shape: f32[1,128], index: 4, kind: input, shape index: {}]   ;;  %s5042_s5 = inlined_call_operand.hbm [shape: f32[256,128], index: 5, kind: output, shape index: {}]  }
   0x1   :  { %11 = vsyncpa [#allocation6], 0 }
   0x2   :  { %12 = vsyncpa [#allocation4], 0  ;;  %s3321_s18 = smov [#allocation2]   ;;  %s3249_s22 = scalar_lea.hbm %s5038_s1, 8192 }
   0x3   :  { %s20_s19 = sshll.u32 %s3321_s18, 4  ;;  %p3250_p0 = scmp.ne.s32.totalorder %s5038_s1, %s3249_s22  ;;  %s21_s19 = int_to_ptr.vmem [resolvable:$true] %s20_s19 }
   0x4   :  { %p3253_p1 = scmp.lt.u32.totalorder %s3249_s22, %s5038_s1 }
   0x6   :  { %p3255_p2 = pnand %p3253_p1, %p3250_p0 }
   0x8   :  { %3258 = shalt.err (!%p3255_p2)
}
   0x9   :  { %s3259_s27 = scalar_lea.vmem %s21_s19, 8192  ;;  %p3264_p4 = scmp.lt.s32.totalorder %s21_s19, %s21_s19 }
   0xa   :  { %p3260_p3 = scmp.ne.s32.totalorder %s21_s19, %s3259_s27  ;;  %p3265_p5 = scmp.lt.s32.totalorder %s3259_s27, %s3259_s27 }
   0xc   :  { %p3266_p6 = por %p3265_p5, %p3264_p4 }
   0xe   :  { %p3267_p7 = pnand %p3266_p6, %p3260_p3 }
  0x10   :  { %3270 = shalt.err (!%p3267_p7)
}
  0x11   :  { %s3322_s28 = smov 1024   ;;  %s3323_s29 = smov 64  }
  0x12   :  { %26 = dma.hbm_to_vmem [thread:$0]  %s5038_s1, 8192, %s21_s19, [#allocation3], %s3322_s28, %s3322_s28, %s3323_s29  }
  0x13   :  { %s3324_s7 = smov [#allocation5]   ;;  %s3271_s11 = scalar_lea.hbm %s5040_s3, 16384 }
  0x14   :  { %s34_s8 = sshll.u32 %s3324_s7, 4  ;;  %p3272_p8 = scmp.ne.s32.totalorder %s5040_s3, %s3271_s11  ;;  %s35_s8 = int_to_ptr.vmem [resolvable:$true] %s34_s8 }
  0x15   :  { %p3275_p9 = scmp.lt.u32.totalorder %s3271_s11, %s5040_s3 }
  0x17   :  { %p3277_p10 = pnand %p3275_p9, %p3272_p8 }
  0x19   :  { %3280 = shalt.err (!%p3277_p10)
}
  0x1a   :  { %s3281_s16 = scalar_lea.vmem %s35_s8, 16384  ;;  %p3286_p12 = scmp.lt.s32.totalorder %s35_s8, %s35_s8 }
  0x1b   :  { %p3282_p11 = scmp.ne.s32.totalorder %s35_s8, %s3281_s16  ;;  %p3287_p13 = scmp.lt.s32.totalorder %s3281_s16, %s3281_s16 }
  0x1d   :  { %p3288_p0 = por %p3287_p13, %p3286_p12 }
  0x1f   :  { %p3289_p1 = pnand %p3288_p0, %p3282_p11 }
  0x21   :  { %3292 = shalt.err (!%p3289_p1)
}
  0x22   :  { %s3325_s1 = smov 128   ;;  %s3326_s17 = smov 8  }
  0x23   :  { %40 = dma.hbm_to_vmem [thread:$0]  %s5040_s3, 16384, %s35_s8, [#allocation6], %s3325_s1, %s3325_s1, %s3326_s17  }
  0x24   :  { %3315 = dma.done.wait [#allocation3], 8192  }
  0x25   :  { %3316 = vsyncadd [#allocation3], 4294959104 }
  0x26   :  { %3317 = dma.done.wait [#allocation6], 16384  }
  0x27   :  { %3318 = vsyncadd [#allocation6], 4294950912  ;;  %v5045_v0 = vmov 0.0   ;;  %v82_v1 = vld [vmem:[#allocation2 + $0x8] sm:$0xff]  ;;  %v81_v3 = vld [vmem:[#allocation2] sm:$0xff]  ;;  %vm187_vm0 = vcmask 523264  }
  0x28   :  { %348 = vmatprep.mubr.f32.mxu1 %v5045_v0  ;;  %862 = vmatprep.mubr.f32.mxu0 %v5045_v0  ;;  %v90_v2 = vld [vmem:[#allocation2 + $0x48] sm:$0xff]  ;;  %v89_v5 = vld [vmem:[#allocation2 + $0x40] sm:$0xff]  ;;  %v84_v24 = vld [vmem:[#allocation2 + $0x18] sm:$0xff] }
  0x29   :  { %v2782_v4 = vpack.c.bf16 %v90_v2, %v82_v1  ;;  %v98_v6 = vld [vmem:[#allocation2 + $0x88] sm:$0xff]  ;;  %v2784_v8 = vpack.c.bf16 %v89_v5, %v81_v3  ;;  %v97_v10 = vld [vmem:[#allocation2 + $0x80] sm:$0xff]  ;;  %v92_v25 = vld [vmem:[#allocation2 + $0x58] sm:$0xff] }
  0x2a   :  { %v106_v7 = vld [vmem:[#allocation2 + $0xc8] sm:$0xff]  ;;  %v105_v11 = vld [vmem:[#allocation2 + $0xc0] sm:$0xff]  ;;  %v2798_v27 = vpack.c.bf16 %v92_v25, %v84_v24  ;;  %v83_v28 = vld [vmem:[#allocation2 + $0x10] sm:$0xff] }
  0x2b   :  { %v2786_v9 = vpack.c.bf16 %v106_v7, %v98_v6  ;;  %v114_v12 = vld [vmem:[#allocation2 + $0x108] sm:$0xff]  ;;  %2783 = vmatprep.subr.bf16.mxu1 %v2782_v4  ;;  %v2788_v14 = vpack.c.bf16 %v105_v11, %v97_v10  ;;  %v113_v16 = vld [vmem:[#allocation2 + $0x100] sm:$0xff]  ;;  %v91_v29 = vld [vmem:[#allocation2 + $0x50] sm:$0xff] }
  0x2c   :  { %v122_v13 = vld [vmem:[#allocation2 + $0x148] sm:$0xff]  ;;  %2785 = vmatpush1.bf16.msra.mxu1 %v2784_v8  ;;  %v121_v17 = vld [vmem:[#allocation2 + $0x140] sm:$0xff]  ;;  %v100_v30 = vld [vmem:[#allocation2 + $0x98] sm:$0xff]  ;;  %v2800_v33 = vpack.c.bf16 %v91_v29, %v83_v28 }
  0x2d   :  { %2787 = vmatprep.subr.bf16.mxu1 %v2786_v9  ;;  %v2790_v15 = vpack.c.bf16 %v122_v13, %v114_v12  ;;  %v130_v18 = vld [vmem:[#allocation2 + $0x188] sm:$0xff]  ;;  %v2792_v20 = vpack.c.bf16 %v121_v17, %v113_v16  ;;  %v129_v22 = vld [vmem:[#allocation2 + $0x180] sm:$0xff]  ;;  %v108_v31 = vld [vmem:[#allocation2 + $0xd8] sm:$0xff] }
  0x2e   :  { %v138_v19 = vld [vmem:[#allocation2 + $0x1c8] sm:$0xff]  ;;  %v137_v23 = vld [vmem:[#allocation2 + $0x1c0] sm:$0xff]  ;;  %v2802_v34 = vpack.c.bf16 %v108_v31, %v100_v30  ;;  %v99_v35 = vld [vmem:[#allocation2 + $0x90] sm:$0xff] }
  0x2f   :  { %v2794_v21 = vpack.c.bf16 %v138_v19, %v130_v18  ;;  %v2796_v26 = vpack.c.bf16 %v137_v23, %v129_v22  ;;  %v3392_v32 = vld [vmem:[%s5037_s0] sm:$0xff]  ;;  %v107_v36 = vld [vmem:[#allocation2 + $0xd0] sm:$0xff]  ;;  %v116_v37 = vld [vmem:[#allocation2 + $0x118] sm:$0xff] }
  0x30   :  { %2789 = vmatpush1.bf16.msra.mxu1 %v2788_v14  ;;  %v124_v38 = vld [vmem:[#allocation2 + $0x158] sm:$0xff]  ;;  %v3400_v39 = vld [vmem:[%s5037_s0 + $0x8] sm:$0xff]  ;;  %v2804_v40 = vpack.c.bf16 %v107_v36, %v99_v35  ;;  %v115_v42 = vld [vmem:[#allocation2 + $0x110] sm:$0xff]  ;;  %v5043_v35 = vmov 0.0|0.0  }
  0x31   :  { %2791 = vmatprep.subr.bf16.mxu1 %v2790_v15  ;;  %v2806_v41 = vpack.c.bf16 %v124_v38, %v116_v37  ;;  %v123_v43 = vld [vmem:[#allocation2 + $0x150] sm:$0xff]  ;;  %v132_v44 = vld [vmem:[#allocation2 + $0x198] sm:$0xff]  ;;  %v3424_v53 = vld [vmem:[%s5037_s0 + $0x20] sm:$0xff] }
  0x32   :  { %v140_v45 = vld [vmem:[#allocation2 + $0x1d8] sm:$0xff]  ;;  %v3408_v46 = vld [vmem:[%s5037_s0 + $0x10] sm:$0xff]  ;;  %v2808_v47 = vpack.c.bf16 %v123_v43, %v115_v42  ;;  %v3432_v54 = vld [vmem:[%s5037_s0 + $0x28] sm:$0xff] }
  0x33   :  { %v2810_v48 = vpack.c.bf16 %v140_v45, %v132_v44  ;;  %v131_v49 = vld [vmem:[#allocation2 + $0x190] sm:$0xff]  ;;  %v3416_v51 = vld [vmem:[%s5037_s0 + $0x18] sm:$0xff]  ;;  %v3456_v57 = vld [vmem:[%s5037_s0 + $0x40] sm:$0xff] }
  0x34   :  { %2793 = vmatpush1.bf16.msra.mxu1 %v2792_v20  ;;  %v139_v50 = vld [vmem:[#allocation2 + $0x1d0] sm:$0xff]  ;;  %v3448_v56 = vld [vmem:[%s5037_s0 + $0x38] sm:$0xff]  ;;  %v3464_v58 = vld [vmem:[%s5037_s0 + $0x48] sm:$0xff] }
  0x35   :  { %2795 = vmatprep.subr.bf16.mxu1 %v2794_v21  ;;  %v2812_v52 = vpack.c.bf16 %v139_v50, %v131_v49  ;;  %v3440_v55 = vld [vmem:[%s5037_s0 + $0x30] sm:$0xff]  ;;  %v3480_v60 = vld [vmem:[%s5037_s0 + $0x58] sm:$0xff]  ;;  %v3488_v61 = vld [vmem:[%s5037_s0 + $0x60] sm:$0xff] }
  0x36   :  { %v3472_v59 = vld [vmem:[%s5037_s0 + $0x50] sm:$0xff]  ;;  %v3496_v62 = vld [vmem:[%s5037_s0 + $0x68] sm:$0xff]  ;;  %v3512_v1 = vld [vmem:[%s5037_s0 + $0x78] sm:$0xff] }
  0x37   :  { %v3504_v63 = vld [vmem:[%s5037_s0 + $0x70] sm:$0xff]  ;;  %v3520_v2 = vld [vmem:[%s5037_s0 + $0x80] sm:$0xff]  ;;  %v3528_v3 = vld [vmem:[%s5037_s0 + $0x88] sm:$0xff] }
  0x38   :  { %2797 = vmatpush1.bf16.msra.mxu1 %v2796_v26  ;;  %v3536_v4 = vld [vmem:[%s5037_s0 + $0x90] sm:$0xff]  ;;  %v86_v5 = vld [vmem:[#allocation2 + $0x28] sm:$0xff]  ;;  %v85_v8 = vld [vmem:[#allocation2 + $0x20] sm:$0xff] }
  0x39   :  { %2799 = vmatprep.subr.bf16.mxu1 %v2798_v27  ;;  %v94_v6 = vld [vmem:[#allocation2 + $0x68] sm:$0xff]  ;;  %v93_v9 = vld [vmem:[#allocation2 + $0x60] sm:$0xff]  ;;  %v3544_v11 = vld [vmem:[%s5037_s0 + $0x98] sm:$0xff] }
  0x3a   :  { %v2814_v7 = vpack.c.bf16 %v94_v6, %v86_v5  ;;  %v2816_v10 = vpack.c.bf16 %v93_v9, %v85_v8  ;;  %v102_v12 = vld [vmem:[#allocation2 + $0xa8] sm:$0xff]  ;;  %v101_v15 = vld [vmem:[#allocation2 + $0xa0] sm:$0xff]  ;;  %v3611_v42 = vld [vmem:[%s5037_s0 + $0xd0] sm:$0xff] }
  0x3b   :  { %2653 = vmatmul.mubr.msk.f32.vlgmr.msra.gmra.mrb[0].mxu1 %vm187_vm0, %v3392_v32  ;;  %v110_v13 = vld [vmem:[#allocation2 + $0xe8] sm:$0xff]  ;;  %v109_v16 = vld [vmem:[#allocation2 + $0xe0] sm:$0xff]  ;;  %v1602_v43 = vld [vmem:[#allocation5 + $0x110] sm:$0xff] }
  0x3c   :  { %2801 = vmatpush1.bf16.msra.mxu1 %v2800_v33  ;;  %354 = vmatprep.mubr.f32.mxu1 %v5045_v0  ;;  %v2818_v14 = vpack.c.bf16 %v110_v13, %v102_v12  ;;  %v2820_v17 = vpack.c.bf16 %v109_v16, %v101_v15  ;;  %v3552_v18 = vld [vmem:[%s5037_s0 + $0xa0] sm:$0xff]  ;;  %v118_v19 = vld [vmem:[#allocation2 + $0x128] sm:$0xff]  ;;  %v3568_v33 = vld [vmem:[%s5037_s0 + $0xb0] sm:$0xff] }
  0x3d   :  { %2803 = vmatprep.subr.bf16.mxu1 %v2802_v34  ;;  %2815 = vmatprep.subr.bf16.mxu0 %v2814_v7  ;;  %v126_v20 = vld [vmem:[#allocation2 + $0x168] sm:$0xff]  ;;  %v117_v22 = vld [vmem:[#allocation2 + $0x120] sm:$0xff]  ;;  %v3576_v34 = vld [vmem:[%s5037_s0 + $0xb8] sm:$0xff] }
  0x3e   :  { %2817 = vmatpush1.bf16.msra.mxu0 %v2816_v10  ;;  %v2822_v21 = vpack.c.bf16 %v126_v20, %v118_v19  ;;  %v125_v23 = vld [vmem:[#allocation2 + $0x160] sm:$0xff]  ;;  %v3560_v25 = vld [vmem:[%s5037_s0 + $0xa8] sm:$0xff]  ;;  %v1603_v44 = vld [vmem:[#allocation5 + $0x118] sm:$0xff] }
  0x3f   :  { %2654 = vmatmul.mubr.msk.f32.gmra.mrb[2].mxu1 %vm187_vm0, %v3400_v39  ;;  %2819 = vmatprep.subr.bf16.mxu0 %v2818_v14  ;;  %v2824_v24 = vpack.c.bf16 %v125_v23, %v117_v22  ;;  %v134_v26 = vld [vmem:[#allocation2 + $0x1a8] sm:$0xff]  ;;  %v133_v29 = vld [vmem:[#allocation2 + $0x1a0] sm:$0xff]  ;;  %v2898_v45 = vpack.c.bf16 %v1603_v44, %v1602_v43  ;;  %v88_v49 = vld [vmem:[#allocation2 + $0x38] sm:$0xff] }
  0x40   :  { %360 = vmatprep.mubr.f32.mxu1 %v5045_v0  ;;  %2805 = vmatpush1.bf16.msra.mxu1 %v2804_v40  ;;  %v142_v27 = vld [vmem:[#allocation2 + $0x1e8] sm:$0xff]  ;;  %v141_v30 = vld [vmem:[#allocation2 + $0x1e0] sm:$0xff]  ;;  %v96_v50 = vld [vmem:[#allocation2 + $0x78] sm:$0xff] }
  0x41   :  { %2807 = vmatprep.subr.bf16.mxu1 %v2806_v41  ;;  %v2826_v28 = vpack.c.bf16 %v142_v27, %v134_v26  ;;  %v2828_v31 = vpack.c.bf16 %v141_v30, %v133_v29  ;;  %v3588_v36 = vld [vmem:[%s5037_s0 + $0xc0] sm:$0xff]  ;;  %v1601_v38 = vld [vmem:[#allocation5 + $0x108] sm:$0xff]  ;;  %v2830_v6 = vpack.c.bf16 %v96_v50, %v88_v49  ;;  %v3657_v9 = vld [vmem:[%s5037_s0 + $0xf0] sm:$0xff] }
  0x42   :  { %2821 = vmatpush1.bf16.msra.mxu0 %v2820_v17  ;;  %v1600_v37 = vld [vmem:[#allocation5 + $0x100] sm:$0xff]  ;;  %v3599_v41 = vld [vmem:[%s5037_s0 + $0xc8] sm:$0xff]  ;;  %v1606_v10 = vld [vmem:[#allocation5 + $0x130] sm:$0xff] }
  0x43   :  { %2655 = vmatmul.mubr.msk.f32.gmra.mrb[4].mxu1 %vm187_vm0, %v3408_v46  ;;  %2823 = vmatprep.subr.bf16.mxu0 %v2822_v21  ;;  %v2895_v40 = vpack.c.bf16 %v1601_v38, %v1600_v37  ;;  %v1605_v5 = vld [vmem:[#allocation5 + $0x128] sm:$0xff]  ;;  %v1607_v12 = vld [vmem:[#allocation5 + $0x138] sm:$0xff]  ;;  %v87_v15 = vld [vmem:[#allocation2 + $0x30] sm:$0xff] }
  0x44   :  { %366 = vmatprep.mubr.f32.mxu1 %v5045_v0  ;;  %2809 = vmatpush1.bf16.msra.mxu1 %v2808_v47  ;;  %v3622_v47 = vld [vmem:[%s5037_s0 + $0xd8] sm:$0xff]  ;;  %v3645_v8 = vld [vmem:[%s5037_s0 + $0xe8] sm:$0xff]  ;;  %v2904_v13 = vpack.c.bf16 %v1607_v12, %v1606_v10  ;;  %v95_v16 = vld [vmem:[#allocation2 + $0x70] sm:$0xff] }
  0x45   :  { %2811 = vmatprep.subr.bf16.mxu1 %v2810_v48  ;;  %v3634_v48 = vld [vmem:[%s5037_s0 + $0xe0] sm:$0xff]  ;;  %v3668_v14 = vld [vmem:[%s5037_s0 + $0xf8] sm:$0xff]  ;;  %v2832_v20 = vpack.c.bf16 %v95_v16, %v87_v15  ;;  %v103_v21 = vld [vmem:[#allocation2 + $0xb0] sm:$0xff] }
  0x46   :  { %2825 = vmatpush1.bf16.msra.mxu0 %v2824_v24  ;;  %v104_v17 = vld [vmem:[#allocation2 + $0xb8] sm:$0xff]  ;;  %v111_v23 = vld [vmem:[#allocation2 + $0xf0] sm:$0xff]  ;;  %v1608_v24 = vld [vmem:[#allocation5 + $0x140] sm:$0xff] }
  0x47   :  { %2656 = vmatmul.mubr.msk.f32.gmra.mrb[6].mxu1 %vm187_vm0, %v3416_v51  ;;  %2827 = vmatprep.subr.bf16.mxu0 %v2826_v28  ;;  %v112_v19 = vld [vmem:[#allocation2 + $0xf8] sm:$0xff]  ;;  %v1609_v26 = vld [vmem:[#allocation5 + $0x148] sm:$0xff]  ;;  %v2836_v30 = vpack.c.bf16 %v111_v23, %v103_v21  ;;  %v119_v37 = vld [vmem:[#allocation2 + $0x130] sm:$0xff] }
  0x48   :  { %372 = vmatprep.mubr.f32.mxu1 %v5045_v0  ;;  %2813 = vmatpush1.bf16.msra.mxu1 %v2812_v52  ;;  %v1604_v52 = vld [vmem:[#allocation5 + $0x120] sm:$0xff]  ;;  %v2834_v22 = vpack.c.bf16 %v112_v19, %v104_v17  ;;  %v120_v27 = vld [vmem:[#allocation2 + $0x138] sm:$0xff]  ;;  %v2907_v29 = vpack.c.bf16 %v1609_v26, %v1608_v24  ;;  %v127_v38 = vld [vmem:[#allocation2 + $0x170] sm:$0xff] }
  0x49   :  { %v2901_v7 = vpack.c.bf16 %v1605_v5, %v1604_v52  ;;  %2831 = vmatprep.subr.bf16.mxu1 %v2830_v6  ;;  %v128_v28 = vld [vmem:[#allocation2 + $0x178] sm:$0xff]  ;;  %v2840_v44 = vpack.c.bf16 %v127_v38, %v119_v37  ;;  %v143_v50 = vld [vmem:[#allocation2 + $0x1f0] sm:$0xff]  ;;  %v1612_v10 = vld [vmem:[#allocation5 + $0x160] sm:$0xff] }
  0x4a   :  { %2829 = vmatpush1.bf16.msra.mxu0 %v2828_v31  ;;  %v2838_v31 = vpack.c.bf16 %v128_v28, %v120_v27  ;;  %v144_v43 = vld [vmem:[#allocation2 + $0x1f8] sm:$0xff]  ;;  %v1610_v52 = vld [vmem:[#allocation5 + $0x150] sm:$0xff]  ;;  %v1613_v12 = vld [vmem:[#allocation5 + $0x168] sm:$0xff] }
  0x4b   :  { %2657 = vmatmul.mubr.msk.f32.gmra.mrb[8].mxu1 %vm187_vm0, %v3424_v53  ;;  %2894 = vmatprep.subr.bf16.mxu0 %v5043_v35  ;;  %v1611_v5 = vld [vmem:[#allocation5 + $0x158] sm:$0xff]  ;;  %v1614_v15 = vld [vmem:[#allocation5 + $0x170] sm:$0xff]  ;;  %v1616_v19 = vld [vmem:[#allocation5 + $0x180] sm:$0xff] }
  0x4c   :  { %378 = vmatprep.mubr.f32.mxu1 %v5045_v0  ;;  %v2910_v6 = vpack.c.bf16 %v1611_v5, %v1610_v52  ;;  %v1615_v16 = vld [vmem:[#allocation5 + $0x178] sm:$0xff]  ;;  %v1620_v26 = vld [vmem:[#allocation5 + $0x1a0] sm:$0xff]  ;;  %v1621_v27 = vld [vmem:[#allocation5 + $0x1a8] sm:$0xff] }
  0x4d   :  { %2717 = vmatmul.mubr.msk.f32.vlgmr.msra.gmra.mrb[0].mxu0 %vm187_vm0, %v3392_v32  ;;  %v2916_v17 = vpack.c.bf16 %v1615_v16, %v1614_v15  ;;  %v1619_v23 = vld [vmem:[#allocation5 + $0x198] sm:$0xff]  ;;  %v2925_v28 = vpack.c.bf16 %v1621_v27, %v1620_v26  ;;  %v1624_v37 = vld [vmem:[#allocation5 + $0x1c0] sm:$0xff]  ;;  %v1625_v38 = vld [vmem:[#allocation5 + $0x1c8] sm:$0xff] }
  0x4e   :  { %868 = vmatprep.mubr.f32.mxu0 %v5045_v0  ;;  %2896 = vmatpush1.bf16.msra.mxu0 %v2895_v40  ;;  %v136_v40 = vld [vmem:[#allocation2 + $0x1b8] sm:$0xff] }
  0x4f   :  { %2658 = vmatmul.mubr.msk.f32.gmra.mrb[10].mxu1 %vm187_vm0, %v3432_v54  ;;  %2897 = vmatprep.subr.bf16.mxu0 %v5043_v35  ;;  %v2842_v49 = vpack.c.bf16 %v144_v43, %v136_v40  ;;  %v2931_v40 = vpack.c.bf16 %v1625_v38, %v1624_v37  ;;  %v1626_v43 = vld [vmem:[#allocation5 + $0x1d0] sm:$0xff]  ;;  %v1571_v38 = vld [vmem:[#allocation5 + $0x18] sm:$0xff] }
  0x50   :  { %384 = vmatprep.mubr.f32.mxu1 %v5045_v0  ;;  %v1570_v37 = vld [vmem:[#allocation5 + $0x10] sm:$0xff] }
  0x51   :  { %2718 = vmatmul.mubr.msk.f32.gmra.mrb[2].mxu0 %vm187_vm0, %v3400_v39 }
  0x52   :  { %874 = vmatprep.mubr.f32.mxu0 %v5045_v0  ;;  %2899 = vmatpush1.bf16.msra.mxu0 %v2898_v45  ;;  %v135_v45 = vld [vmem:[#allocation2 + $0x1b0] sm:$0xff] }
  0x53   :  { %2659 = vmatmul.mubr.msk.f32.gmra.mrb[12].mxu1 %vm187_vm0, %v3440_v55  ;;  %2900 = vmatprep.subr.bf16.mxu0 %v5043_v35 }
  0x54   :  { %390 = vmatprep.mubr.f32.mxu1 %v5045_v0 }
  0x55   :  { %2719 = vmatmul.mubr.msk.f32.gmra.mrb[4].mxu0 %vm187_vm0, %v3408_v46 }
  0x56   :  { %880 = vmatprep.mubr.f32.mxu0 %v5045_v0  ;;  %2902 = vmatpush1.bf16.msra.mxu0 %v2901_v7  ;;  %v2844_v7 = vpack.c.bf16 %v143_v50, %v135_v45  ;;  %v1629_v50 = vld [vmem:[#allocation5 + $0x1e8] sm:$0xff] }
  0x57   :  { %2660 = vmatmul.mubr.msk.f32.gmra.mrb[14].mxu1 %vm187_vm0, %v3448_v56  ;;  %2903 = vmatprep.subr.bf16.mxu0 %v5043_v35 }
  0x58   :  { %396 = vmatprep.mubr.f32.mxu1 %v5045_v0 }
  0x59   :  { %2720 = vmatmul.mubr.msk.f32.gmra.mrb[6].mxu0 %vm187_vm0, %v3416_v51 }
  0x5a   :  { %886 = vmatprep.mubr.f32.mxu0 %v5045_v0  ;;  %2905 = vmatpush1.bf16.msra.mxu0 %v2904_v13  ;;  %v2913_v13 = vpack.c.bf16 %v1613_v12, %v1612_v10  ;;  %v1631_v10 = vld [vmem:[#allocation5 + $0x1f8] sm:$0xff] }
  0x5b   :  { %2661 = vmatmul.mubr.msk.f32.gmra.mrb[16].mxu1 %vm187_vm0, %v3456_v57  ;;  %2906 = vmatprep.subr.bf16.mxu0 %v5043_v35 }
  0x5c   :  { %402 = vmatprep.mubr.f32.mxu1 %v5045_v0 }
  0x5d   :  { %2721 = vmatmul.mubr.msk.f32.gmra.mrb[8].mxu0 %vm187_vm0, %v3424_v53 }
  0x5e   :  { %892 = vmatprep.mubr.f32.mxu0 %v5045_v0  ;;  %2908 = vmatpush1.bf16.msra.mxu0 %v2907_v29  ;;  %v1622_v29 = vld [vmem:[#allocation5 + $0x1b0] sm:$0xff] }
  0x5f   :  { %2662 = vmatmul.mubr.msk.f32.gmra.mrb[18].mxu1 %vm187_vm0, %v3464_v58  ;;  %2909 = vmatprep.subr.bf16.mxu0 %v5043_v35 }
  0x60   :  { %408 = vmatprep.mubr.f32.mxu1 %v5045_v0 }
  0x61   :  { %2722 = vmatmul.mubr.msk.f32.gmra.mrb[10].mxu0 %vm187_vm0, %v3432_v54 }
  0x62   :  { %898 = vmatprep.mubr.f32.mxu0 %v5045_v0  ;;  %2911 = vmatpush1.bf16.msra.mxu0 %v2910_v6 }
  0x63   :  { %2663 = vmatmul.mubr.msk.f32.gmra.mrb[20].mxu1 %vm187_vm0, %v3472_v59  ;;  %2912 = vmatprep.subr.bf16.mxu0 %v5043_v35 }
  0x64   :  { %414 = vmatprep.mubr.f32.mxu1 %v5045_v0 }
  0x65   :  { %2723 = vmatmul.mubr.msk.f32.gmra.mrb[12].mxu0 %vm187_vm0, %v3440_v55 }
  0x66   :  { %904 = vmatprep.mubr.f32.mxu0 %v5045_v0  ;;  %2914 = vmatpush1.bf16.msra.mxu0 %v2913_v13 }
  0x67   :  { %2664 = vmatmul.mubr.msk.f32.gmra.mrb[22].mxu1 %vm187_vm0, %v3480_v60  ;;  %2915 = vmatprep.subr.bf16.mxu0 %v5043_v35 }
  0x68   :  { %420 = vmatprep.mubr.f32.mxu1 %v5045_v0 }
  0x69   :  { %2724 = vmatmul.mubr.msk.f32.gmra.mrb[14].mxu0 %vm187_vm0, %v3448_v56 }
  0x6a   :  { %910 = vmatprep.mubr.f32.mxu0 %v5045_v0  ;;  %2917 = vmatpush1.bf16.msra.mxu0 %v2916_v17 }
  0x6b   :  { %2665 = vmatmul.mubr.msk.f32.gmra.mrb[24].mxu1 %vm187_vm0, %v3488_v61  ;;  %2918 = vmatprep.subr.bf16.mxu0 %v5043_v35 }
  0x6c   :  { %426 = vmatprep.mubr.f32.mxu1 %v5045_v0 }
  0x6d   :  { %2725 = vmatmul.mubr.msk.f32.gmra.mrb[16].mxu0 %vm187_vm0, %v3456_v57 }
  0x6e   :  { %916 = vmatprep.mubr.f32.mxu0 %v5045_v0 }
  0x6f   :  { %2666 = vmatmul.mubr.msk.f32.gmra.mrb[26].mxu1 %vm187_vm0, %v3496_v62 }
  0x70   :  { %432 = vmatprep.mubr.f32.mxu1 %v5045_v0 }
  0x71   :  { %2726 = vmatmul.mubr.msk.f32.gmra.mrb[18].mxu0 %vm187_vm0, %v3464_v58 }
  0x72   :  { %922 = vmatprep.mubr.f32.mxu0 %v5045_v0 }
  0x73   :  { %2667 = vmatmul.mubr.msk.f32.gmra.mrb[28].mxu1 %vm187_vm0, %v3504_v63 }
  0x74   :  { %438 = vmatprep.mubr.f32.mxu1 %v5045_v0 }
  0x75   :  { %2727 = vmatmul.mubr.msk.f32.gmra.mrb[20].mxu0 %vm187_vm0, %v3472_v59 }
  0x76   :  { %928 = vmatprep.mubr.f32.mxu0 %v5045_v0 }
  0x77   :  { %2668 = vmatmul.mubr.msk.f32.gmra.mrb[30].mxu1 %vm187_vm0, %v3512_v1 }
  0x78   :  { %444 = vmatprep.mubr.f32.mxu1 %v5045_v0 }
  0x79   :  { %2728 = vmatmul.mubr.msk.f32.gmra.mrb[22].mxu0 %vm187_vm0, %v3480_v60 }
  0x7a   :  { %934 = vmatprep.mubr.f32.mxu0 %v5045_v0 }
  0x7b   :  { %2669 = vmatmul.mubr.msk.f32.gmra.mrb[32].mxu1 %vm187_vm0, %v3520_v2 }
  0x7c   :  { %450 = vmatprep.mubr.f32.mxu1 %v5045_v0 }
  0x7d   :  { %2729 = vmatmul.mubr.msk.f32.gmra.mrb[24].mxu0 %vm187_vm0, %v3488_v61 }
  0x7e   :  { %940 = vmatprep.mubr.f32.mxu0 %v5045_v0 }
  0x7f   :  { %2670 = vmatmul.mubr.msk.f32.gmra.mrb[34].mxu1 %vm187_vm0, %v3528_v3 }
  0x80   :  { %456 = vmatprep.mubr.f32.mxu1 %v5045_v0 }
  0x81   :  { %2730 = vmatmul.mubr.msk.f32.gmra.mrb[26].mxu0 %vm187_vm0, %v3496_v62 }
  0x82   :  { %946 = vmatprep.mubr.f32.mxu0 %v5045_v0 }
  0x83   :  { %2671 = vmatmul.mubr.msk.f32.gmra.mrb[36].mxu1 %vm187_vm0, %v3536_v4 }
  0x84   :  { %462 = vmatprep.mubr.f32.mxu1 %v5045_v0 }
  0x85   :  { %2731 = vmatmul.mubr.msk.f32.gmra.mrb[28].mxu0 %vm187_vm0, %v3504_v63 }
  0x86   :  { %952 = vmatprep.mubr.f32.mxu0 %v5045_v0 }
  0x87   :  { %2672 = vmatmul.mubr.msk.f32.gmra.mrb[38].mxu1 %vm187_vm0, %v3544_v11 }
  0x88   :  { %468 = vmatprep.mubr.f32.mxu1 %v5045_v0 }
  0x89   :  { %2732 = vmatmul.mubr.msk.f32.gmra.mrb[30].mxu0 %vm187_vm0, %v3512_v1 }
  0x8a   :  { %958 = vmatprep.mubr.f32.mxu0 %v5045_v0 }
  0x8b   :  { %2673 = vmatmul.mubr.msk.f32.gmra.mrb[40].mxu1 %vm187_vm0, %v3552_v18 }
  0x8c   :  { %474 = vmatprep.mubr.f32.mxu1 %v5045_v0 }
  0x8d   :  { %2733 = vmatmul.mubr.msk.f32.gmra.mrb[32].mxu0 %vm187_vm0, %v3520_v2 }
  0x8e   :  { %964 = vmatprep.mubr.f32.mxu0 %v5045_v0 }
  0x8f   :  { %2674 = vmatmul.mubr.msk.f32.gmra.mrb[42].mxu1 %vm187_vm0, %v3560_v25 }
  0x90   :  { %480 = vmatprep.mubr.f32.mxu1 %v5045_v0 }
  0x91   :  { %2734 = vmatmul.mubr.msk.f32.gmra.mrb[34].mxu0 %vm187_vm0, %v3528_v3 }
  0x92   :  { %970 = vmatprep.mubr.f32.mxu0 %v5045_v0 }
  0x93   :  { %2675 = vmatmul.mubr.msk.f32.gmra.mrb[44].mxu1 %vm187_vm0, %v3568_v33 }
  0x94   :  { %486 = vmatprep.mubr.f32.mxu1 %v5045_v0 }
  0x95   :  { %2735 = vmatmul.mubr.msk.f32.gmra.mrb[36].mxu0 %vm187_vm0, %v3536_v4 }
  0x96   :  { %976 = vmatprep.mubr.f32.mxu0 %v5045_v0 }
  0x97   :  { %2676 = vmatmul.mubr.msk.f32.gmra.mrb[46].mxu1 %vm187_vm0, %v3576_v34 }
  0x98   :  { %492 = vmatprep.mubr.f32.mxu1 %v5045_v0 }
  0x99   :  { %2736 = vmatmul.mubr.msk.f32.gmra.mrb[38].mxu0 %vm187_vm0, %v3544_v11 }
  0x9a   :  { %982 = vmatprep.mubr.f32.mxu0 %v5045_v0 }
  0x9b   :  { %2677 = vmatmul.mubr.msk.f32.gmra.mrb[48].mxu1 %vm187_vm0, %v3588_v36 }
  0x9c   :  { %498 = vmatprep.mubr.f32.mxu1 %v5045_v0 }
  0x9d   :  { %2737 = vmatmul.mubr.msk.f32.gmra.mrb[40].mxu0 %vm187_vm0, %v3552_v18 }
  0x9e   :  { %988 = vmatprep.mubr.f32.mxu0 %v5045_v0 }
  0x9f   :  { %2678 = vmatmul.mubr.msk.f32.gmra.mrb[50].mxu1 %vm187_vm0, %v3599_v41 }
  0xa0   :  { %504 = vmatprep.mubr.f32.mxu1 %v5045_v0 }
  0xa1   :  { %2738 = vmatmul.mubr.msk.f32.gmra.mrb[42].mxu0 %vm187_vm0, %v3560_v25 }
  0xa2   :  { %994 = vmatprep.mubr.f32.mxu0 %v5045_v0 }
  0xa3   :  { %2679 = vmatmul.mubr.msk.f32.gmra.mrb[52].mxu1 %vm187_vm0, %v3611_v42 }
  0xa4   :  { %510 = vmatprep.mubr.f32.mxu1 %v5045_v0 }
  0xa5   :  { %2739 = vmatmul.mubr.msk.f32.gmra.mrb[44].mxu0 %vm187_vm0, %v3568_v33 }
  0xa6   :  { %1000 = vmatprep.mubr.f32.mxu0 %v5045_v0 }
  0xa7   :  { %2680 = vmatmul.mubr.msk.f32.gmra.mrb[54].mxu1 %vm187_vm0, %v3622_v47 }
  0xa8   :  { %516 = vmatprep.mubr.f32.mxu1 %v5045_v0 }
  0xa9   :  { %2740 = vmatmul.mubr.msk.f32.gmra.mrb[46].mxu0 %vm187_vm0, %v3576_v34 }
  0xaa   :  { %1006 = vmatprep.mubr.f32.mxu0 %v5045_v0 }
  0xab   :  { %2681 = vmatmul.mubr.msk.f32.gmra.mrb[56].mxu1 %vm187_vm0, %v3634_v48 }
  0xac   :  { %522 = vmatprep.mubr.f32.mxu1 %v5045_v0 }
  0xad   :  { %2741 = vmatmul.mubr.msk.f32.gmra.mrb[48].mxu0 %vm187_vm0, %v3588_v36 }
  0xae   :  { %1012 = vmatprep.mubr.f32.mxu0 %v5045_v0 }
  0xaf   :  { %2682 = vmatmul.mubr.msk.f32.gmra.mrb[58].mxu1 %vm187_vm0, %v3645_v8 }
  0xb0   :  { %528 = vmatprep.mubr.f32.mxu1 %v5045_v0 }
  0xb1   :  { %2742 = vmatmul.mubr.msk.f32.gmra.mrb[50].mxu0 %vm187_vm0, %v3599_v41 }
  0xb2   :  { %1018 = vmatprep.mubr.f32.mxu0 %v5045_v0 }
  0xb3   :  { %2683 = vmatmul.mubr.msk.f32.gmra.mrb[60].mxu1 %vm187_vm0, %v3657_v9 }
  0xb4   :  { %534 = vmatprep.mubr.f32.mxu1 %v5045_v0 }
  0xb5   :  { %2743 = vmatmul.mubr.msk.f32.gmra.mrb[52].mxu0 %vm187_vm0, %v3611_v42 }
  0xb6   :  { %1024 = vmatprep.mubr.f32.mxu0 %v5045_v0 }
  0xb7   :  { %2684 = vmatmul.mubr.msk.f32.gmra.mrb[62].mxu1 %vm187_vm0, %v3668_v14 }
  0xb8   :  { %605 = vmatprep.mubr.f32.mxu1 %v5045_v0 }
  0xb9   :  { %2744 = vmatmul.mubr.msk.f32.gmra.mrb[54].mxu0 %vm187_vm0, %v3622_v47 }
  0xba   :  { %1030 = vmatprep.mubr.f32.mxu0 %v5045_v0 }
  0xbb   :  { %2685 = vmatmul.mubr.msk.f32.vlgmr.msra.gmra.mrb[64].mxu1 %vm187_vm0, %v3392_v32 }
  0xbc   :  { %611 = vmatprep.mubr.f32.mxu1 %v5045_v0  ;;  %2833 = vmatpush1.bf16.msra.mxu1 %v2832_v20  ;;  %v1617_v20 = vld [vmem:[#allocation5 + $0x188] sm:$0xff] }
  0xbd   :  { %2835 = vmatprep.subr.bf16.mxu1 %v2834_v22  ;;  %v2919_v21 = vpack.c.bf16 %v1617_v20, %v1616_v19  ;;  %v1618_v22 = vld [vmem:[#allocation5 + $0x190] sm:$0xff]  ;;  %2745 = vmatmul.mubr.msk.f32.gmra.mrb[56].mxu0 %vm187_vm0, %v3634_v48 }
  0xbe   :  { %v2922_v24 = vpack.c.bf16 %v1619_v23, %v1618_v22  ;;  %1036 = vmatprep.mubr.f32.mxu0 %v5045_v0 }
  0xbf   :  { %2686 = vmatmul.mubr.msk.f32.gmra.mrb[66].mxu1 %vm187_vm0, %v3400_v39  ;;  %2920 = vmatpush1.bf16.msra.mxu0 %v2919_v21 }
  0xc0   :  { %617 = vmatprep.mubr.f32.mxu1 %v5045_v0  ;;  %2837 = vmatpush1.bf16.msra.mxu1 %v2836_v30  ;;  %v1623_v30 = vld [vmem:[#allocation5 + $0x1b8] sm:$0xff] }
  0xc1   :  { %2839 = vmatprep.subr.bf16.mxu1 %v2838_v31  ;;  %2921 = vmatprep.subr.bf16.mxu0 %v5043_v35  ;;  %v2928_v31 = vpack.c.bf16 %v1623_v30, %v1622_v29  ;;  %v1569_v29 = vld [vmem:[#allocation5 + $0x8] sm:$0xff] }
  0xc2   :  { %2746 = vmatmul.mubr.msk.f32.gmra.mrb[58].mxu0 %vm187_vm0, %v3645_v8 }
  0xc3   :  { %2687 = vmatmul.mubr.msk.f32.gmra.mrb[68].mxu1 %vm187_vm0, %v3408_v46  ;;  %2923 = vmatpush1.bf16.msra.mxu0 %v2922_v24 }
  0xc4   :  { %623 = vmatprep.mubr.f32.mxu1 %v5045_v0  ;;  %2841 = vmatpush1.bf16.msra.mxu1 %v2840_v44  ;;  %v1627_v44 = vld [vmem:[#allocation5 + $0x1d8] sm:$0xff] }
  0xc5   :  { %2843 = vmatprep.subr.bf16.mxu1 %v2842_v49  ;;  %2924 = vmatprep.subr.bf16.mxu0 %v5043_v35  ;;  %v2934_v45 = vpack.c.bf16 %v1627_v44, %v1626_v43  ;;  %v1628_v49 = vld [vmem:[#allocation5 + $0x1e0] sm:$0xff] }
  0xc6   :  { %v2937_v52 = vpack.c.bf16 %v1629_v50, %v1628_v49  ;;  %1042 = vmatprep.mubr.f32.mxu0 %v5045_v0  ;;  %v1572_v44 = vld [vmem:[#allocation5 + $0x20] sm:$0xff] }
  0xc7   :  { %2688 = vmatmul.mubr.msk.f32.gmra.mrb[70].mxu1 %vm187_vm0, %v3416_v51  ;;  %2926 = vmatpush1.bf16.msra.mxu0 %v2925_v28 }
  0xc8   :  { %629 = vmatprep.mubr.f32.mxu1 %v5045_v0  ;;  %2845 = vmatpush1.bf16.msra.mxu1 %v2844_v7  ;;  %v1630_v7 = vld [vmem:[#allocation5 + $0x1f0] sm:$0xff] }
  0xc9   :  { %2846 = vmatprep.subr.bf16.mxu1 %v5043_v35  ;;  %2927 = vmatprep.subr.bf16.mxu0 %v5043_v35  ;;  %v2940_v12 = vpack.c.bf16 %v1631_v10, %v1630_v7 }
  0xca   :  { %2747 = vmatmul.mubr.msk.f32.gmra.mrb[60].mxu0 %vm187_vm0, %v3657_v9 }
  0xcb   :  { %2689 = vmatmul.mubr.msk.f32.gmra.mrb[72].mxu1 %vm187_vm0, %v3424_v53  ;;  %2929 = vmatpush1.bf16.msra.mxu0 %v2928_v31 }
  0xcc   :  { %635 = vmatprep.mubr.f32.mxu1 %v5045_v0  ;;  %2930 = vmatprep.subr.bf16.mxu0 %v5043_v35 }
  0xcd   :  { %1048 = vmatprep.mubr.f32.mxu0 %v5045_v0 }
  0xce   :  { %2748 = vmatmul.mubr.msk.f32.gmra.mrb[62].mxu0 %vm187_vm0, %v3668_v14 }
  0xcf   :  { %2690 = vmatmul.mubr.msk.f32.gmra.mrb[74].mxu1 %vm187_vm0, %v3432_v54  ;;  %2932 = vmatpush1.bf16.msra.mxu0 %v2931_v40 }
  0xd0   :  { %641 = vmatprep.mubr.f32.mxu1 %v5045_v0  ;;  %2933 = vmatprep.subr.bf16.mxu0 %v5043_v35 }
  0xd3   :  { %2691 = vmatmul.mubr.msk.f32.gmra.mrb[76].mxu1 %vm187_vm0, %v3440_v55  ;;  %2935 = vmatpush1.bf16.msra.mxu0 %v2934_v45 }
  0xd4   :  { %647 = vmatprep.mubr.f32.mxu1 %v5045_v0  ;;  %2936 = vmatprep.subr.bf16.mxu0 %v5043_v35 }
  0xd7   :  { %2692 = vmatmul.mubr.msk.f32.gmra.mrb[78].mxu1 %vm187_vm0, %v3448_v56  ;;  %2938 = vmatpush1.bf16.msra.mxu0 %v2937_v52  ;;  %v1575_v52 = vld [vmem:[#allocation5 + $0x38] sm:$0xff] }
  0xd8   :  { %653 = vmatprep.mubr.f32.mxu1 %v5045_v0  ;;  %2939 = vmatprep.subr.bf16.mxu0 %v5043_v35 }
  0xdb   :  { %2693 = vmatmul.mubr.msk.f32.gmra.mrb[80].mxu1 %vm187_vm0, %v3456_v57  ;;  %2941 = vmatpush1.bf16.msra.mxu0 %v2940_v12 }
  0xdc   :  { %659 = vmatprep.mubr.f32.mxu1 %v5045_v0  ;;  %2942 = vmatprep.subr.bf16.mxu0 %v5043_v35 }
  0xdf   :  { %2694 = vmatmul.mubr.msk.f32.gmra.mrb[82].mxu1 %vm187_vm0, %v3464_v58 }
  0xe0   :  { %665 = vmatprep.mubr.f32.mxu1 %v5045_v0 }
  0xe3   :  { %2695 = vmatmul.mubr.msk.f32.gmra.mrb[84].mxu1 %vm187_vm0, %v3472_v59 }
  0xe4   :  { %671 = vmatprep.mubr.f32.mxu1 %v5045_v0 }
  0xe7   :  { %2696 = vmatmul.mubr.msk.f32.gmra.mrb[86].mxu1 %vm187_vm0, %v3480_v60 }
  0xe8   :  { %677 = vmatprep.mubr.f32.mxu1 %v5045_v0 }
  0xeb   :  { %2697 = vmatmul.mubr.msk.f32.gmra.mrb[88].mxu1 %vm187_vm0, %v3488_v61 }
  0xec   :  { %683 = vmatprep.mubr.f32.mxu1 %v5045_v0 }
  0xef   :  { %2698 = vmatmul.mubr.msk.f32.gmra.mrb[90].mxu1 %vm187_vm0, %v3496_v62 }
  0xf0   :  { %689 = vmatprep.mubr.f32.mxu1 %v5045_v0 }
  0xf3   :  { %2699 = vmatmul.mubr.msk.f32.gmra.mrb[92].mxu1 %vm187_vm0, %v3504_v63 }
  0xf4   :  { %695 = vmatprep.mubr.f32.mxu1 %v5045_v0 }
  0xf7   :  { %2700 = vmatmul.mubr.msk.f32.gmra.mrb[94].mxu1 %vm187_vm0, %v3512_v1 }
  0xf8   :  { %701 = vmatprep.mubr.f32.mxu1 %v5045_v0 }
  0xfb   :  { %2701 = vmatmul.mubr.msk.f32.gmra.mrb[96].mxu1 %vm187_vm0, %v3520_v2 }
  0xfc   :  { %707 = vmatprep.mubr.f32.mxu1 %v5045_v0 }
  0xff   :  { %2702 = vmatmul.mubr.msk.f32.gmra.mrb[98].mxu1 %vm187_vm0, %v3528_v3 }
 0x100   :  { %713 = vmatprep.mubr.f32.mxu1 %v5045_v0 }
 0x103   :  { %2703 = vmatmul.mubr.msk.f32.gmra.mrb[100].mxu1 %vm187_vm0, %v3536_v4 }
 0x104   :  { %719 = vmatprep.mubr.f32.mxu1 %v5045_v0 }
 0x107   :  { %2704 = vmatmul.mubr.msk.f32.gmra.mrb[102].mxu1 %vm187_vm0, %v3544_v11 }
 0x108   :  { %725 = vmatprep.mubr.f32.mxu1 %v5045_v0 }
 0x10b   :  { %2705 = vmatmul.mubr.msk.f32.gmra.mrb[104].mxu1 %vm187_vm0, %v3552_v18 }
 0x10c   :  { %731 = vmatprep.mubr.f32.mxu1 %v5045_v0 }
 0x10e   :  { %v3815_v5 = vpop.f32.mrb[0].mxu1 }
 0x10f   :  { %v3819_v6 = vpop.f32.mrb[1].mxu1  ;;  %2706 = vmatmul.mubr.msk.f32.gmra.mrb[106].mxu1 %vm187_vm0, %v3560_v25 }
 0x110   :  { %737 = vmatprep.mubr.f32.mxu1 %v5045_v0 }
 0x112   :  { %v3825_v13 = vpop.f32.mrb[2].mxu1 }
 0x113   :  { %v3827_v15 = vpop.f32.mrb[3].mxu1  ;;  %2707 = vmatmul.mubr.msk.f32.gmra.mrb[108].mxu1 %vm187_vm0, %v3568_v33 }
 0x114   :  { %743 = vmatprep.mubr.f32.mxu1 %v5045_v0 }
 0x116   :  { %v3835_v16 = vpop.f32.mrb[4].mxu1 }
 0x117   :  { %v3837_v17 = vpop.f32.mrb[5].mxu1  ;;  %2708 = vmatmul.mubr.msk.f32.gmra.mrb[110].mxu1 %vm187_vm0, %v3576_v34 }
 0x118   :  { %749 = vmatprep.mubr.f32.mxu1 %v5045_v0 }
 0x11a   :  { %v3842_v19 = vpop.f32.mrb[6].mxu1 }
 0x11b   :  { %v3844_v20 = vpop.f32.mrb[7].mxu1  ;;  %2709 = vmatmul.mubr.msk.f32.gmra.mrb[112].mxu1 %vm187_vm0, %v3588_v36 }
 0x11c   :  { %755 = vmatprep.mubr.f32.mxu1 %v5045_v0 }
 0x11e   :  { %v3849_v21 = vpop.f32.mrb[8].mxu1 }
 0x11f   :  { %v3851_v22 = vpop.f32.mrb[9].mxu1  ;;  %2710 = vmatmul.mubr.msk.f32.gmra.mrb[114].mxu1 %vm187_vm0, %v3599_v41 }
 0x120   :  { %761 = vmatprep.mubr.f32.mxu1 %v5045_v0 }
 0x122   :  { %v3856_v34 = vpop.f32.mrb[10].mxu1 }
 0x123   :  { %v3858_v23 = vpop.f32.mrb[11].mxu1  ;;  %2711 = vmatmul.mubr.msk.f32.gmra.mrb[116].mxu1 %vm187_vm0, %v3611_v42 }
 0x124   :  { %767 = vmatprep.mubr.f32.mxu1 %v5045_v0 }
 0x126   :  { %v3863_v36 = vpop.f32.mrb[12].mxu1 }
 0x127   :  { %v3865_v24 = vpop.f32.mrb[13].mxu1  ;;  %2712 = vmatmul.mubr.msk.f32.gmra.mrb[118].mxu1 %vm187_vm0, %v3622_v47 }
 0x128   :  { %773 = vmatprep.mubr.f32.mxu1 %v5045_v0 }
 0x12a   :  { %v3870_v41 = vpop.f32.mrb[14].mxu1 }
 0x12b   :  { %v3872_v26 = vpop.f32.mrb[15].mxu1  ;;  %2713 = vmatmul.mubr.msk.f32.gmra.mrb[120].mxu1 %vm187_vm0, %v3634_v48  ;;  %v1568_v48 = vld [vmem:[#allocation5] sm:$0xff] }
 0x12c   :  { %779 = vmatprep.mubr.f32.mxu1 %v5045_v0 }
 0x12e   :  { %v3877_v42 = vpop.f32.mrb[16].mxu1 }
 0x12f   :  { %v3879_v27 = vpop.f32.mrb[17].mxu1  ;;  %2714 = vmatmul.mubr.msk.f32.gmra.mrb[122].mxu1 %vm187_vm0, %v3645_v8  ;;  %v2847_v8 = vpack.c.bf16 %v1569_v29, %v1568_v48  ;;  %v1577_v48 = vld [vmem:[#allocation5 + $0x48] sm:$0xff] }
 0x130   :  { %785 = vmatprep.mubr.f32.mxu1 %v5045_v0 }
 0x132   :  { %v3884_v47 = vpop.f32.mrb[18].mxu1 }
 0x133   :  { %v3886_v28 = vpop.f32.mrb[19].mxu1  ;;  %2715 = vmatmul.mubr.msk.f32.gmra.mrb[124].mxu1 %vm187_vm0, %v3657_v9  ;;  %v2850_v9 = vpack.c.bf16 %v1571_v38, %v1570_v37  ;;  %v1579_v38 = vld [vmem:[#allocation5 + $0x58] sm:$0xff] }
 0x134   :  { %791 = vmatprep.mubr.f32.mxu1 %v5045_v0 }
 0x136   :  { %v3891_v30 = vpop.f32.mrb[20].mxu1 }
 0x137   :  { %v3893_v31 = vpop.f32.mrb[21].mxu1  ;;  %2716 = vmatmul.mubr.msk.f32.gmra.mrb[126].mxu1 %vm187_vm0, %v3668_v14  ;;  %v1573_v14 = vld [vmem:[#allocation5 + $0x28] sm:$0xff] }
 0x138   :  { %1119 = vmatprep.mubr.f32.mxu1 %v5045_v0  ;;  %v2853_v50 = vpack.c.bf16 %v1573_v14, %v1572_v44 }
 0x13a   :  { %v3898_v40 = vpop.f32.mrb[22].mxu1 }
 0x13b   :  { %v3900_v43 = vpop.f32.mrb[23].mxu1  ;;  %2749 = vmatmul.mubr.msk.f32.vlgmr.msra.gmra.mrb[128].mxu1 %vm187_vm0, %v3392_v32  ;;  %v1574_v32 = vld [vmem:[#allocation5 + $0x30] sm:$0xff] }
 0x13c   :  { %1125 = vmatprep.mubr.f32.mxu1 %v5045_v0  ;;  %2848 = vmatpush1.bf16.msra.mxu1 %v2847_v8  ;;  %v2856_v12 = vpack.c.bf16 %v1575_v52, %v1574_v32 }
 0x13d   :  { %2849 = vmatprep.subr.bf16.mxu1 %v5043_v35 }
 0x13e   :  { %v3906_v45 = vpop.f32.mrb[24].mxu1 }
 0x13f   :  { %v3908_v49 = vpop.f32.mrb[25].mxu1  ;;  %2750 = vmatmul.mubr.msk.f32.gmra.mrb[130].mxu1 %vm187_vm0, %v3400_v39  ;;  %v1576_v39 = vld [vmem:[#allocation5 + $0x40] sm:$0xff] }
 0x140   :  { %1131 = vmatprep.mubr.f32.mxu1 %v5045_v0  ;;  %2851 = vmatpush1.bf16.msra.mxu1 %v2850_v9  ;;  %v2859_v37 = vpack.c.bf16 %v1577_v48, %v1576_v39  ;;  %v1583_v39 = vld [vmem:[#allocation5 + $0x78] sm:$0xff] }
 0x141   :  { %2852 = vmatprep.subr.bf16.mxu1 %v5043_v35 }
 0x142   :  { %v3914_v7 = vpop.f32.mrb[26].mxu1 }
 0x143   :  { %v3916_v10 = vpop.f32.mrb[27].mxu1  ;;  %2751 = vmatmul.mubr.msk.f32.gmra.mrb[132].mxu1 %vm187_vm0, %v3408_v46  ;;  %v1578_v46 = vld [vmem:[#allocation5 + $0x50] sm:$0xff] }
 0x144   :  { %1137 = vmatprep.mubr.f32.mxu1 %v5045_v0  ;;  %2854 = vmatpush1.bf16.msra.mxu1 %v2853_v50  ;;  %v2862_v14 = vpack.c.bf16 %v1579_v38, %v1578_v46  ;;  %v1581_v50 = vld [vmem:[#allocation5 + $0x68] sm:$0xff] }
 0x145   :  { %2855 = vmatprep.subr.bf16.mxu1 %v5043_v35  ;;  %v1585_v38 = vld [vmem:[#allocation5 + $0x88] sm:$0xff] }
 0x146   :  { %v3922_v29 = vpop.f32.mrb[28].mxu1 }
 0x147   :  { %v3924_v8 = vpop.f32.mrb[29].mxu1  ;;  %2752 = vmatmul.mubr.msk.f32.gmra.mrb[134].mxu1 %vm187_vm0, %v3416_v51  ;;  %v1580_v51 = vld [vmem:[#allocation5 + $0x60] sm:$0xff] }
 0x148   :  { %1143 = vmatprep.mubr.f32.mxu1 %v5045_v0  ;;  %2857 = vmatpush1.bf16.msra.mxu1 %v2856_v12  ;;  %v2865_v12 = vpack.c.bf16 %v1581_v50, %v1580_v51 }
 0x149   :  { %2858 = vmatprep.subr.bf16.mxu1 %v5043_v35 }
 0x14a   :  { %v3930_v9 = vpop.f32.mrb[30].mxu1 }
 0x14b   :  { %v3932_v44 = vpop.f32.mrb[31].mxu1  ;;  %2753 = vmatmul.mubr.msk.f32.gmra.mrb[136].mxu1 %vm187_vm0, %v3424_v53  ;;  %v1582_v53 = vld [vmem:[#allocation5 + $0x70] sm:$0xff] }
 0x14c   :  { %1149 = vmatprep.mubr.f32.mxu1 %v5045_v0  ;;  %2860 = vmatpush1.bf16.msra.mxu1 %v2859_v37  ;;  %v2868_v46 = vpack.c.bf16 %v1583_v39, %v1582_v53 }
 0x14d   :  { %2861 = vmatprep.subr.bf16.mxu1 %v5043_v35 }
 0x14e   :  { %v3938_v32 = vpop.f32.mrb[32].mxu1 }
 0x14f   :  { %v3940_v52 = vpop.f32.mrb[33].mxu1  ;;  %2754 = vmatmul.mubr.msk.f32.gmra.mrb[138].mxu1 %vm187_vm0, %v3432_v54  ;;  %v1584_v54 = vld [vmem:[#allocation5 + $0x80] sm:$0xff] }
 0x150   :  { %1155 = vmatprep.mubr.f32.mxu1 %v5045_v0  ;;  %2863 = vmatpush1.bf16.msra.mxu1 %v2862_v14  ;;  %v2871_v50 = vpack.c.bf16 %v1585_v38, %v1584_v54 }
 0x151   :  { %2864 = vmatprep.subr.bf16.mxu1 %v5043_v35 }
 0x152   :  { %v3946_v48 = vpop.f32.mrb[34].mxu1 }
 0x153   :  { %v3948_v37 = vpop.f32.mrb[35].mxu1  ;;  %2755 = vmatmul.mubr.msk.f32.gmra.mrb[140].mxu1 %vm187_vm0, %v3440_v55  ;;  %v1586_v55 = vld [vmem:[#allocation5 + $0x90] sm:$0xff] }
 0x154   :  { %1161 = vmatprep.mubr.f32.mxu1 %v5045_v0  ;;  %2866 = vmatpush1.bf16.msra.mxu1 %v2865_v12  ;;  %v1587_v12 = vld [vmem:[#allocation5 + $0x98] sm:$0xff] }
 0x155   :  { %2867 = vmatprep.subr.bf16.mxu1 %v5043_v35 }
 0x156   :  { %v3954_v14 = vpop.f32.mrb[36].mxu1 }
 0x157   :  { %5047 = vst [vmem:[#allocation11_spill] sm:$0xff] %v3954_v14  ;;  %v3956_v51 = vpop.f32.mrb[37].mxu1  ;;  %2756 = vmatmul.mubr.msk.f32.gmra.mrb[142].mxu1 %vm187_vm0, %v3448_v56  ;;  %v2874_v14 = vpack.c.bf16 %v1587_v12, %v1586_v55  ;;  %v1588_v56 = vld [vmem:[#allocation5 + $0xa0] sm:$0xff] }
 0x158   :  { %1167 = vmatprep.mubr.f32.mxu1 %v5045_v0  ;;  %2869 = vmatpush1.bf16.msra.mxu1 %v2868_v46  ;;  %v1589_v46 = vld [vmem:[#allocation5 + $0xa8] sm:$0xff] }
 0x159   :  { %2870 = vmatprep.subr.bf16.mxu1 %v5043_v35 }
 0x15a   :  { %v3962_v53 = vpop.f32.mrb[38].mxu1 }
 0x15b   :  { %5048 = vst [vmem:[#allocation12_spill] sm:$0xff] %v3962_v53  ;;  %v3964_v39 = vpop.f32.mrb[39].mxu1  ;;  %2757 = vmatmul.mubr.msk.f32.gmra.mrb[144].mxu1 %vm187_vm0, %v3456_v57  ;;  %v2877_v53 = vpack.c.bf16 %v1589_v46, %v1588_v56  ;;  %v1590_v57 = vld [vmem:[#allocation5 + $0xb0] sm:$0xff] }
 0x15c   :  { %1173 = vmatprep.mubr.f32.mxu1 %v5045_v0  ;;  %2872 = vmatpush1.bf16.msra.mxu1 %v2871_v50  ;;  %v1591_v50 = vld [vmem:[#allocation5 + $0xb8] sm:$0xff] }
 0x15d   :  { %2873 = vmatprep.subr.bf16.mxu1 %v5043_v35 }
 0x15e   :  { %v3970_v54 = vpop.f32.mrb[40].mxu1 }
 0x15f   :  { %5049 = vst [vmem:[#allocation13_spill] sm:$0xff] %v3970_v54  ;;  %v3972_v38 = vpop.f32.mrb[41].mxu1  ;;  %2758 = vmatmul.mubr.msk.f32.gmra.mrb[146].mxu1 %vm187_vm0, %v3464_v58  ;;  %v2880_v54 = vpack.c.bf16 %v1591_v50, %v1590_v57  ;;  %v1592_v58 = vld [vmem:[#allocation5 + $0xc0] sm:$0xff]  ;;  %v1595_v57 = vld [vmem:[#allocation5 + $0xd8] sm:$0xff] }
 0x160   :  { %1179 = vmatprep.mubr.f32.mxu1 %v5045_v0  ;;  %2875 = vmatpush1.bf16.msra.mxu1 %v2874_v14  ;;  %v1593_v14 = vld [vmem:[#allocation5 + $0xc8] sm:$0xff] }
 0x161   :  { %2876 = vmatprep.subr.bf16.mxu1 %v5043_v35 }
 0x162   :  { %v3978_v55 = vpop.f32.mrb[42].mxu1 }
 0x163   :  { %5050 = vst [vmem:[#allocation14_spill] sm:$0xff] %v3978_v55  ;;  %v3980_v12 = vpop.f32.mrb[43].mxu1  ;;  %2759 = vmatmul.mubr.msk.f32.gmra.mrb[148].mxu1 %vm187_vm0, %v3472_v59  ;;  %v3992_v55 = vpop.f32.mrb[0].mxu0  ;;  %v2883_v59 = vpack.c.bf16 %v1593_v14, %v1592_v58  ;;  %v1596_v14 = vld [vmem:[#allocation5 + $0xe0] sm:$0xff] }
 0x164   :  { %5051 = vst [vmem:[#allocation15_spill] sm:$0xff] %v3980_v12  ;;  %1185 = vmatprep.mubr.f32.mxu1 %v5045_v0  ;;  %2878 = vmatpush1.bf16.msra.mxu1 %v2877_v53  ;;  %5053 = vst [vmem:[#allocation17_spill] sm:$0xff] %v3992_v55  ;;  %v3995_v12 = vpop.f32.mrb[1].mxu0  ;;  %v1594_v53 = vld [vmem:[#allocation5 + $0xd0] sm:$0xff]  ;;  %v1597_v55 = vld [vmem:[#allocation5 + $0xe8] sm:$0xff] }
 0x165   :  { %2879 = vmatprep.subr.bf16.mxu1 %v5043_v35  ;;  %5054 = vst [vmem:[#allocation18_spill] sm:$0xff] %v3995_v12 }
 0x166   :  { %v3986_v56 = vpop.f32.mrb[44].mxu1 }
 0x167   :  { %5052 = vst [vmem:[#allocation16_spill] sm:$0xff] %v3986_v56  ;;  %v3988_v46 = vpop.f32.mrb[45].mxu1  ;;  %2760 = vmatmul.mubr.msk.f32.gmra.mrb[150].mxu1 %vm187_vm0, %v3480_v60  ;;  %v4004_v60 = vpop.f32.mrb[2].mxu0 }
 0x168   :  { %1191 = vmatprep.mubr.f32.mxu1 %v5045_v0  ;;  %2881 = vmatpush1.bf16.msra.mxu1 %v2880_v54  ;;  %5057 = vst [vmem:[#allocation21_spill] sm:$0xff] %v4004_v60  ;;  %v2886_v54 = vpack.c.bf16 %v1595_v57, %v1594_v53  ;;  %v4007_v58 = vpop.f32.mrb[3].mxu0  ;;  %v1599_v53 = vld [vmem:[#allocation5 + $0xf8] sm:$0xff] }
 0x169   :  { %2882 = vmatprep.subr.bf16.mxu1 %v5043_v35  ;;  %5058 = vst [vmem:[#allocation22_spill] sm:$0xff] %v4007_v58  ;;  %v4017_v60 = vpop.f32.mrb[4].mxu0 }
 0x16a   :  { %v3998_v50 = vpop.f32.mrb[46].mxu1  ;;  %5061 = vst [vmem:[#allocation25_spill] sm:$0xff] %v4017_v60  ;;  %v4020_v57 = vpop.f32.mrb[5].mxu0 }
 0x16b   :  { %5055 = vst [vmem:[#allocation19_spill] sm:$0xff] %v3998_v50  ;;  %v4000_v56 = vpop.f32.mrb[47].mxu1  ;;  %2761 = vmatmul.mubr.msk.f32.gmra.mrb[152].mxu1 %vm187_vm0, %v3488_v61  ;;  %v2889_v61 = vpack.c.bf16 %v1597_v55, %v1596_v14  ;;  %5062 = vst [vmem:[#allocation26_spill] sm:$0xff] %v4020_v57  ;;  %v4029_v55 = vpop.f32.mrb[6].mxu0 }
 0x16c   :  { %5056 = vst [vmem:[#allocation20_spill] sm:$0xff] %v4000_v56  ;;  %1197 = vmatprep.mubr.f32.mxu1 %v5045_v0  ;;  %2884 = vmatpush1.bf16.msra.mxu1 %v2883_v59  ;;  %v1598_v59 = vld [vmem:[#allocation5 + $0xf0] sm:$0xff]  ;;  %5065 = vst [vmem:[#allocation29_spill] sm:$0xff] %v4029_v55  ;;  %v3245_v56 = vld [vmem:[%s5037_s0 + $0xe8] sm:$0xff] }
 0x16d   :  { %2885 = vmatprep.subr.bf16.mxu1 %v5043_v35 }
 0x16e   :  { %v4010_v12 = vpop.f32.mrb[48].mxu1 }
 0x16f   :  { %5059 = vst [vmem:[#allocation23_spill] sm:$0xff] %v4010_v12  ;;  %v4012_v50 = vpop.f32.mrb[49].mxu1  ;;  %2762 = vmatmul.mubr.msk.f32.gmra.mrb[154].mxu1 %vm187_vm0, %v3496_v62  ;;  %v2892_v62 = vpack.c.bf16 %v1599_v53, %v1598_v59 }
 0x170   :  { %5060 = vst [vmem:[#allocation24_spill] sm:$0xff] %v4012_v50  ;;  %1203 = vmatprep.mubr.f32.mxu1 %v5045_v0  ;;  %2887 = vmatpush1.bf16.msra.mxu1 %v2886_v54  ;;  %v4032_v54 = vpop.f32.mrb[7].mxu0 }
 0x171   :  { %2888 = vmatprep.subr.bf16.mxu1 %v5043_v35  ;;  %5066 = vst [vmem:[#allocation30_spill] sm:$0xff] %v4032_v54 }
 0x172   :  { %v4022_v58 = vpop.f32.mrb[50].mxu1 }
 0x173   :  { %5063 = vst [vmem:[#allocation27_spill] sm:$0xff] %v4022_v58  ;;  %v4024_v12 = vpop.f32.mrb[51].mxu1  ;;  %2763 = vmatmul.mubr.msk.f32.gmra.mrb[156].mxu1 %vm187_vm0, %v3504_v63  ;;  %v4041_v63 = vpop.f32.mrb[8].mxu0 }
 0x174   :  { %5064 = vst [vmem:[#allocation28_spill] sm:$0xff] %v4024_v12  ;;  %1209 = vmatprep.mubr.f32.mxu1 %v5045_v0  ;;  %2890 = vmatpush1.bf16.msra.mxu1 %v2889_v61  ;;  %5069 = vst [vmem:[#allocation33_spill] sm:$0xff] %v4041_v63  ;;  %v4043_v61 = vpop.f32.mrb[9].mxu0  ;;  %v147_v63 = vlaneseq  ;;  %v1635_v12 = vld [vmem:[#allocation5 + $0x218] sm:$0xff] }
 0x175   :  { %2891 = vmatprep.subr.bf16.mxu1 %v5043_v35  ;;  %5070 = vst [vmem:[#allocation34_spill] sm:$0xff] %v4043_v61  ;;  %v4052_v35 = vpop.f32.mrb[10].mxu0 }
 0x176   :  { %v4034_v14 = vpop.f32.mrb[52].mxu1  ;;  %5073 = vst [vmem:[#allocation37_spill] sm:$0xff] %v4052_v35  ;;  %v4076_v35 = vshrl.u32 %v147_v63, 7  ;;  %v4096_v63 = vld [vmem:[%s5039_s2] sm:$0xff] }
 0x177   :  { %5067 = vst [vmem:[#allocation31_spill] sm:$0xff] %v4034_v14  ;;  %v4036_v60 = vpop.f32.mrb[53].mxu1  ;;  %2764 = vmatmul.mubr.msk.f32.gmra.mrb[158].mxu1 %vm187_vm0, %v3512_v1  ;;  %v4054_v14 = vpop.f32.mrb[11].mxu0 }
 0x178   :  { %5068 = vst [vmem:[#allocation32_spill] sm:$0xff] %v4036_v60  ;;  %1215 = vmatprep.mubr.f32.mxu1 %v5045_v0  ;;  %2893 = vmatpush1.bf16.msra.mxu1 %v2892_v62  ;;  %5074 = vst [vmem:[#allocation38_spill] sm:$0xff] %v4054_v14 }
 0x17a   :  { %v4045_v59 = vpop.f32.mrb[54].mxu1 }
 0x17b   :  { %5071 = vst [vmem:[#allocation35_spill] sm:$0xff] %v4045_v59  ;;  %v4047_v53 = vpop.f32.mrb[55].mxu1  ;;  %2765 = vmatmul.mubr.msk.f32.gmra.mrb[160].mxu1 %vm187_vm0, %v3520_v2  ;;  %v4063_v59 = vpop.f32.mrb[12].mxu0 }
 0x17c   :  { %5072 = vst [vmem:[#allocation36_spill] sm:$0xff] %v4047_v53  ;;  %1221 = vmatprep.mubr.f32.mxu1 %v5045_v0  ;;  %5077 = vst [vmem:[#allocation41_spill] sm:$0xff] %v4063_v59  ;;  %v4065_v53 = vpop.f32.mrb[13].mxu0 }
 0x17d   :  { %5078 = vst [vmem:[#allocation42_spill] sm:$0xff] %v4065_v53 }
 0x17e   :  { %v4056_v1 = vpop.f32.mrb[56].mxu1 }
 0x17f   :  { %5075 = vst [vmem:[#allocation39_spill] sm:$0xff] %v4056_v1  ;;  %v4058_v62 = vpop.f32.mrb[57].mxu1  ;;  %2766 = vmatmul.mubr.msk.f32.gmra.mrb[162].mxu1 %vm187_vm0, %v3528_v3  ;;  %v4074_v1 = vpop.f32.mrb[14].mxu0 }
 0x180   :  { %5076 = vst [vmem:[#allocation40_spill] sm:$0xff] %v4058_v62  ;;  %1227 = vmatprep.mubr.f32.mxu1 %v5045_v0  ;;  %5081 = vst [vmem:[#allocation45_spill] sm:$0xff] %v4074_v1  ;;  %v4078_v3 = vpop.f32.mrb[15].mxu0 }
 0x181   :  { %5082 = vst [vmem:[#allocation46_spill] sm:$0xff] %v4078_v3 }
 0x182   :  { %v4067_v2 = vpop.f32.mrb[58].mxu1 }
 0x183   :  { %5079 = vst [vmem:[#allocation43_spill] sm:$0xff] %v4067_v2  ;;  %v4069_v61 = vpop.f32.mrb[59].mxu1  ;;  %2767 = vmatmul.mubr.msk.f32.gmra.mrb[164].mxu1 %vm187_vm0, %v3536_v4  ;;  %v157_v2 = vsub.s32 2, %v4076_v35  ;;  %v161_v4 = vsub.s32 3, %v4076_v35 }
 0x184   :  { %5080 = vst [vmem:[#allocation44_spill] sm:$0xff] %v4069_v61  ;;  %1233 = vmatprep.mubr.f32.mxu1 %v5045_v0  ;;  %v4089_v61 = vpop.f32.mrb[16].mxu0 }
 0x185   :  { %5085 = vst [vmem:[#allocation49_spill] sm:$0xff] %v4089_v61  ;;  %v4091_v1 = vpop.f32.mrb[17].mxu0  ;;  %v4109_v61 = vrot.slane %v4096_v63, %v161_v4 }
 0x186   :  { %v4080_v62 = vpop.f32.mrb[60].mxu1  ;;  %5086 = vst [vmem:[#allocation50_spill] sm:$0xff] %v4091_v1  ;;  %v4111_v1 = vpop.f32.mrb[18].mxu0 }
 0x187   :  { %5083 = vst [vmem:[#allocation47_spill] sm:$0xff] %v4080_v62  ;;  %v4082_v59 = vpop.f32.mrb[61].mxu1  ;;  %2768 = vmatmul.mubr.msk.f32.gmra.mrb[166].mxu1 %vm187_vm0, %v3544_v11  ;;  %v4105_v11 = vrot.slane %v4096_v63, %v157_v2  ;;  %5089 = vst [vmem:[#allocation53_spill] sm:$0xff] %v4111_v1  ;;  %v4113_v3 = vpop.f32.mrb[19].mxu0 }
 0x188   :  { %5084 = vst [vmem:[#allocation48_spill] sm:$0xff] %v4082_v59  ;;  %1239 = vmatprep.mubr.f32.mxu1 %v5045_v0  ;;  %5090 = vst [vmem:[#allocation54_spill] sm:$0xff] %v4113_v3  ;;  %v4120_v55 = vpop.f32.mrb[20].mxu0 }
 0x189   :  { %5091 = vst [vmem:[#allocation55_spill] sm:$0xff] %v4120_v55  ;;  %v4122_v58 = vpop.f32.mrb[21].mxu0 }
 0x18a   :  { %v4098_v62 = vpop.f32.mrb[62].mxu1  ;;  %5092 = vst [vmem:[#allocation56_spill] sm:$0xff] %v4122_v58 }
 0x18b   :  { %5087 = vst [vmem:[#allocation51_spill] sm:$0xff] %v4098_v62  ;;  %v4100_v59 = vpop.f32.mrb[63].mxu1  ;;  %2769 = vmatmul.mubr.msk.f32.gmra.mrb[168].mxu1 %vm187_vm0, %v3552_v18  ;;  %v1632_v18 = vld [vmem:[#allocation5 + $0x200] sm:$0xff] }
 0x18c   :  { %5088 = vst [vmem:[#allocation52_spill] sm:$0xff] %v4100_v59  ;;  %1245 = vmatprep.mubr.f32.mxu1 %v5045_v0  ;;  %v1633_v59 = vld [vmem:[#allocation5 + $0x208] sm:$0xff] }
 0x18d   :  { %v2943_v1 = vpack.c.bf16 %v1633_v59, %v1632_v18 }
 0x18e   :  { %v607_v53 = vpop.f32.mrb[64].mxu1 }
 0x18f   :  { %v608_v62 = vadd.f32 %v607_v53, %v4105_v11  ;;  %v609_v14 = vpop.f32.mrb[65].mxu1  ;;  %2770 = vmatmul.mubr.msk.f32.gmra.mrb[170].mxu1 %vm187_vm0, %v3560_v25  ;;  %v1634_v25 = vld [vmem:[#allocation5 + $0x210] sm:$0xff] }
 0x190   :  { %v610_v2 = vadd.f32 %v609_v14, %v4109_v61  ;;  %1251 = vmatprep.mubr.f32.mxu1 %v5045_v0 }
 0x191   :  { %v1314_v3 = vmax.f32 %v608_v62, 0.0  ;;  %v2946_v62 = vpack.c.bf16 %v1635_v12, %v1634_v25  ;;  %v5096_v12 = vmov 0.0  }
 0x192   :  { %v1315_v4 = vmax.f32 %v610_v2, 0.0  ;;  %v613_v60 = vpop.f32.mrb[66].mxu1  ;;  %v4129_v2 = vpop.f32.mrb[22].mxu0 }
 0x193   :  { %v614_v53 = vadd.f32 %v613_v60, %v4105_v11  ;;  %v615_v54 = vpop.f32.mrb[67].mxu1  ;;  %2771 = vmatmul.mubr.msk.f32.gmra.mrb[172].mxu1 %vm187_vm0, %v3568_v33  ;;  %5093 = vst [vmem:[#allocation57_spill] sm:$0xff] %v4129_v2  ;;  %v4131_v55 = vpop.f32.mrb[23].mxu0 }
 0x194   :  { %v616_v14 = vadd.f32 %v615_v54, %v4109_v61  ;;  %1992 = vmatprep.mubr.f32.mxu0 %v1315_v4  ;;  %1257 = vmatprep.mubr.f32.mxu1 %v5045_v0  ;;  %5094 = vst [vmem:[#allocation58_spill] sm:$0xff] %v4131_v55  ;;  %v3239_v54 = vld [vmem:[%s5037_s0 + $0xb8] sm:$0xff]  ;;  %v5095_v4 = vmov 0.0|0.0   ;;  %v1637_v0 = vld [vmem:[#allocation5 + $0x228] sm:$0xff] }
 0x195   :  { %1993 = vmatmul.mubr.f32.vlgmr.msra.gmra.mrb[64].mxu0 %v1314_v3  ;;  %v1322_v60 = vmax.f32 %v614_v53, 0.0  ;;  %v1636_v3 = vld [vmem:[#allocation5 + $0x220] sm:$0xff] }
 0x196   :  { %v1323_v59 = vmax.f32 %v616_v14, 0.0  ;;  %v619_v18 = vpop.f32.mrb[68].mxu1  ;;  %2944 = vmatpush1.bf16.msra.mxu0 %v2943_v1  ;;  %v4141_v1 = vpop.f32.mrb[24].mxu0 }
 0x197   :  { %v620_v58 = vadd.f32 %v619_v18, %v4105_v11  ;;  %v621_v33 = vpop.f32.mrb[69].mxu1  ;;  %2772 = vmatmul.mubr.msk.f32.gmra.mrb[174].mxu1 %vm187_vm0, %v3239_v54  ;;  %2945 = vmatprep.subr.bf16.mxu0 %v5095_v4  ;;  %5097 = vst [vmem:[#allocation59_spill] sm:$0xff] %v4141_v1  ;;  %v2949_v18 = vpack.c.bf16 %v1637_v0, %v1636_v3  ;;  %v4143_v2 = vpop.f32.mrb[25].mxu0 }
 0x198   :  { %v622_v14 = vadd.f32 %v621_v33, %v4109_v61  ;;  %1997 = vmatprep.mubr.f32.mxu0 %v1323_v59  ;;  %1263 = vmatprep.mubr.f32.mxu1 %v5096_v12  ;;  %5098 = vst [vmem:[#allocation60_spill] sm:$0xff] %v4143_v2  ;;  %v3240_v33 = vld [vmem:[%s5037_s0 + $0xc0] sm:$0xff]  ;;  %v1638_v59 = vld [vmem:[#allocation5 + $0x230] sm:$0xff]  ;;  %v4153_v0 = vpop.f32.mrb[26].mxu0 }
 0x199   :  { %1998 = vmatmul.mubr.f32.gmra.mrb[66].mxu0 %v1322_v60  ;;  %v1330_v55 = vmax.f32 %v620_v58, 0.0  ;;  %v1639_v60 = vld [vmem:[#allocation5 + $0x238] sm:$0xff]  ;;  %5099 = vst [vmem:[#allocation61_spill] sm:$0xff] %v4153_v0 }
 0x19a   :  { %v1331_v53 = vmax.f32 %v622_v14, 0.0  ;;  %v625_v25 = vpop.f32.mrb[70].mxu1  ;;  %2947 = vmatpush1.bf16.msra.mxu0 %v2946_v62  ;;  %v2952_v3 = vpack.c.bf16 %v1639_v60, %v1638_v59 }
 0x19b   :  { %v626_v54 = vadd.f32 %v625_v25, %v4105_v11  ;;  %v627_v57 = vpop.f32.mrb[71].mxu1  ;;  %2773 = vmatmul.mubr.msk.f32.gmra.mrb[176].mxu1 %vm187_vm0, %v3240_v33  ;;  %2948 = vmatprep.subr.bf16.mxu0 %v5095_v4  ;;  %v4155_v25 = vpop.f32.mrb[27].mxu0 }
 0x19c   :  { %v628_v14 = vadd.f32 %v627_v57, %v4109_v61  ;;  %2002 = vmatprep.mubr.f32.mxu0 %v1331_v53  ;;  %1269 = vmatprep.mubr.f32.mxu1 %v5096_v12  ;;  %5100 = vst [vmem:[#allocation62_spill] sm:$0xff] %v4155_v25  ;;  %v3241_v57 = vld [vmem:[%s5037_s0 + $0xc8] sm:$0xff] }
 0x19d   :  { %2003 = vmatmul.mubr.f32.gmra.mrb[68].mxu0 %v1330_v55  ;;  %v1338_v1 = vmax.f32 %v626_v54, 0.0  ;;  %v1640_v55 = vld [vmem:[#allocation5 + $0x240] sm:$0xff]  ;;  %v1641_v53 = vld [vmem:[#allocation5 + $0x248] sm:$0xff] }
 0x19e   :  { %v1339_v58 = vmax.f32 %v628_v14, 0.0  ;;  %v631_v62 = vpop.f32.mrb[72].mxu1  ;;  %2950 = vmatpush1.bf16.msra.mxu0 %v2949_v18  ;;  %v4165_v18 = vpop.f32.mrb[28].mxu0  ;;  %v2955_v60 = vpack.c.bf16 %v1641_v53, %v1640_v55 }
 0x19f   :  { %v632_v33 = vadd.f32 %v631_v62, %v4105_v11  ;;  %v633_v2 = vpop.f32.mrb[73].mxu1  ;;  %2774 = vmatmul.mubr.msk.f32.gmra.mrb[178].mxu1 %vm187_vm0, %v3241_v57  ;;  %2951 = vmatprep.subr.bf16.mxu0 %v5095_v4  ;;  %5101 = vst [vmem:[#allocation63_spill] sm:$0xff] %v4165_v18  ;;  %v4167_v62 = vpop.f32.mrb[29].mxu0 }
 0x1a0   :  { %v634_v14 = vadd.f32 %v633_v2, %v4109_v61  ;;  %2007 = vmatprep.mubr.f32.mxu0 %v1339_v58  ;;  %1275 = vmatprep.mubr.f32.mxu1 %v5096_v12  ;;  %5102 = vst [vmem:[#allocation64_spill] sm:$0xff] %v4167_v62  ;;  %v3242_v2 = vld [vmem:[%s5037_s0 + $0xd0] sm:$0xff]  ;;  %v1643_v58 = vld [vmem:[#allocation5 + $0x258] sm:$0xff] }
 0x1a1   :  { %2008 = vmatmul.mubr.f32.gmra.mrb[70].mxu0 %v1338_v1  ;;  %v1346_v0 = vmax.f32 %v632_v33, 0.0  ;;  %v1642_v1 = vld [vmem:[#allocation5 + $0x250] sm:$0xff] }
 0x1a2   :  { %v1347_v54 = vmax.f32 %v634_v14, 0.0  ;;  %v637_v59 = vpop.f32.mrb[74].mxu1  ;;  %2953 = vmatpush1.bf16.msra.mxu0 %v2952_v3  ;;  %v4177_v3 = vpop.f32.mrb[30].mxu0  ;;  %v2958_v53 = vpack.c.bf16 %v1643_v58, %v1642_v1 }
 0x1a3   :  { %v638_v57 = vadd.f32 %v637_v59, %v4105_v11  ;;  %v639_v25 = vpop.f32.mrb[75].mxu1  ;;  %2775 = vmatmul.mubr.msk.f32.gmra.mrb[180].mxu1 %vm187_vm0, %v3242_v2  ;;  %2954 = vmatprep.subr.bf16.mxu0 %v5095_v4  ;;  %5103 = vst [vmem:[#allocation65_spill] sm:$0xff] %v4177_v3  ;;  %v4179_v59 = vpop.f32.mrb[31].mxu0 }
 0x1a4   :  { %v640_v14 = vadd.f32 %v639_v25, %v4109_v61  ;;  %2012 = vmatprep.mubr.f32.mxu0 %v1347_v54  ;;  %1281 = vmatprep.mubr.f32.mxu1 %v5096_v12  ;;  %5104 = vst [vmem:[#allocation66_spill] sm:$0xff] %v4179_v59  ;;  %v3243_v25 = vld [vmem:[%s5037_s0 + $0xd8] sm:$0xff]  ;;  %v1645_v54 = vld [vmem:[#allocation5 + $0x268] sm:$0xff] }
 0x1a5   :  { %2013 = vmatmul.mubr.f32.gmra.mrb[72].mxu0 %v1346_v0  ;;  %v1354_v18 = vmax.f32 %v638_v57, 0.0  ;;  %v1644_v0 = vld [vmem:[#allocation5 + $0x260] sm:$0xff]  ;;  %v153_v57 = vsub.s32 1, %v4076_v35 }
 0x1a6   :  { %v1355_v33 = vmax.f32 %v640_v14, 0.0  ;;  %v643_v55 = vpop.f32.mrb[76].mxu1  ;;  %2956 = vmatpush1.bf16.msra.mxu0 %v2955_v60  ;;  %v4189_v60 = vpop.f32.mrb[32].mxu0 }
 0x1a7   :  { %v644_v2 = vadd.f32 %v643_v55, %v4105_v11  ;;  %v645_v62 = vpop.f32.mrb[77].mxu1  ;;  %2776 = vmatmul.mubr.msk.f32.gmra.mrb[182].mxu1 %vm187_vm0, %v3243_v25  ;;  %2957 = vmatprep.subr.bf16.mxu0 %v5095_v4  ;;  %5105 = vst [vmem:[#allocation67_spill] sm:$0xff] %v4189_v60  ;;  %v2961_v55 = vpack.c.bf16 %v1645_v54, %v1644_v0  ;;  %v4192_v3 = vpop.f32.mrb[33].mxu0 }
 0x1a8   :  { %v646_v14 = vadd.f32 %v645_v62, %v4109_v61  ;;  %2017 = vmatprep.mubr.f32.mxu0 %v1355_v33  ;;  %1287 = vmatprep.mubr.f32.mxu1 %v5096_v12  ;;  %5106 = vst [vmem:[#allocation68_spill] sm:$0xff] %v4192_v3  ;;  %v3244_v62 = vld [vmem:[%s5037_s0 + $0xe0] sm:$0xff]  ;;  %v1647_v33 = vld [vmem:[#allocation5 + $0x278] sm:$0xff]  ;;  %v4206_v0 = vrot.slane %v4096_v63, %v153_v57 }
 0x1a9   :  { %2018 = vmatmul.mubr.f32.gmra.mrb[74].mxu0 %v1354_v18  ;;  %v1362_v25 = vmax.f32 %v644_v2, 0.0  ;;  %v1646_v18 = vld [vmem:[#allocation5 + $0x270] sm:$0xff]  ;;  %v4203_v2 = vpop.f32.mrb[34].mxu0  ;;  %v1648_v57 = vld [vmem:[#allocation5 + $0x280] sm:$0xff] }
 0x1aa   :  { %v1363_v1 = vmax.f32 %v646_v14, 0.0  ;;  %v649_v58 = vpop.f32.mrb[78].mxu1  ;;  %2959 = vmatpush1.bf16.msra.mxu0 %v2958_v53  ;;  %v149_v53 = vsub.s32 0, %v4076_v35  ;;  %5107 = vst [vmem:[#allocation69_spill] sm:$0xff] %v4203_v2  ;;  %v4208_v60 = vpop.f32.mrb[35].mxu0 }
 0x1ab   :  { %v650_v59 = vadd.f32 %v649_v58, %v4105_v11  ;;  %v651_v50 = vpop.f32.mrb[79].mxu1  ;;  %2777 = vmatmul.mubr.msk.f32.gmra.mrb[184].mxu1 %vm187_vm0, %v3244_v62  ;;  %2960 = vmatprep.subr.bf16.mxu0 %v5095_v4  ;;  %v2964_v62 = vpack.c.bf16 %v1647_v33, %v1646_v18  ;;  %5108 = vst [vmem:[#allocation70_spill] sm:$0xff] %v4208_v60 }
 0x1ac   :  { %v652_v14 = vadd.f32 %v651_v50, %v4109_v61  ;;  %2022 = vmatprep.mubr.f32.mxu0 %v1363_v1  ;;  %1293 = vmatprep.mubr.f32.mxu1 %v5096_v12  ;;  %v353_v18 = vadd.f32 %v3819_v6, %v4206_v0  ;;  %v1651_v6 = vld [vmem:[#allocation5 + $0x298] sm:$0xff] }
 0x1ad   :  { %2023 = vmatmul.mubr.f32.gmra.mrb[76].mxu0 %v1362_v25  ;;  %v1370_v3 = vmax.f32 %v650_v59, 0.0  ;;  %v1649_v25 = vld [vmem:[#allocation5 + $0x288] sm:$0xff]  ;;  %v4219_v59 = vrot.slane %v4096_v63, %v149_v53  ;;  %v3246_v63 = vld [vmem:[%s5037_s0 + $0xf0] sm:$0xff] }
 0x1ae   :  { %v1371_v54 = vmax.f32 %v652_v14, 0.0  ;;  %v655_v58 = vpop.f32.mrb[80].mxu1  ;;  %2962 = vmatpush1.bf16.msra.mxu0 %v2961_v55  ;;  %v4221_v55 = vpop.f32.mrb[36].mxu0 }
 0x1af   :  { %v656_v50 = vadd.f32 %v655_v58, %v4105_v11  ;;  %v657_v1 = vpop.f32.mrb[81].mxu1  ;;  %2778 = vmatmul.mubr.msk.f32.gmra.mrb[186].mxu1 %vm187_vm0, %v3245_v56  ;;  %2963 = vmatprep.subr.bf16.mxu0 %v5095_v4  ;;  %5109 = vst [vmem:[#allocation71_spill] sm:$0xff] %v4221_v55  ;;  %v2967_v58 = vpack.c.bf16 %v1649_v25, %v1648_v57  ;;  %v4225_v2 = vpop.f32.mrb[37].mxu0  ;;  %v1313_v57 = vmax.f32 %v353_v18, 0.0 }
 0x1b0   :  { %v658_v14 = vadd.f32 %v657_v1, %v4109_v61  ;;  %2027 = vmatprep.mubr.f32.mxu0 %v1371_v54  ;;  %1299 = vmatprep.mubr.f32.mxu1 %v5096_v12  ;;  %v359_v25 = vadd.f32 %v3827_v15, %v4206_v0  ;;  %v1653_v15 = vld [vmem:[#allocation5 + $0x2a8] sm:$0xff] }
 0x1b1   :  { %2028 = vmatmul.mubr.f32.gmra.mrb[78].mxu0 %v1370_v3  ;;  %v1378_v60 = vmax.f32 %v656_v50, 0.0  ;;  %v1650_v3 = vld [vmem:[#allocation5 + $0x290] sm:$0xff]  ;;  %v4237_v50 = vpop.f32.mrb[38].mxu0 }
 0x1b2   :  { %v1379_v33 = vmax.f32 %v658_v14, 0.0  ;;  %v661_v56 = vpop.f32.mrb[82].mxu1  ;;  %2965 = vmatpush1.bf16.msra.mxu0 %v2964_v62  ;;  %v351_v62 = vadd.f32 %v3815_v5, %v4219_v59  ;;  %5110 = vst [vmem:[#allocation72_spill] sm:$0xff] %v4237_v50  ;;  %v4241_v55 = vpop.f32.mrb[39].mxu0  ;;  %v3247_v5 = vld [vmem:[%s5037_s0 + $0xf8] sm:$0xff] }
 0x1b3   :  { %v662_v54 = vadd.f32 %v661_v56, %v4105_v11  ;;  %v663_v1 = vpop.f32.mrb[83].mxu1  ;;  %2779 = vmatmul.mubr.msk.f32.gmra.mrb[188].mxu1 %vm187_vm0, %v3246_v63  ;;  %2966 = vmatprep.subr.bf16.mxu0 %v5095_v4  ;;  %v2970_v63 = vpack.c.bf16 %v1651_v6, %v1650_v3  ;;  %5111 = vst [vmem:[#allocation73_spill] sm:$0xff] %v4241_v55  ;;  %v4252_v3 = vpop.f32.mrb[40].mxu0  ;;  %v1321_v6 = vmax.f32 %v359_v25, 0.0 }
 0x1b4   :  { %v664_v53 = vadd.f32 %v663_v1, %v4109_v61  ;;  %2032 = vmatprep.mubr.f32.mxu0 %v1379_v33  ;;  %1305 = vmatprep.mubr.f32.mxu1 %v5096_v12  ;;  %v4256_v55 = vpop.f32.mrb[41].mxu0 }
 0x1b5   :  { %2033 = vmatmul.mubr.f32.gmra.mrb[80].mxu0 %v1378_v60  ;;  %v1386_v1 = vmax.f32 %v662_v54, 0.0  ;;  %v1652_v60 = vld [vmem:[#allocation5 + $0x2a0] sm:$0xff]  ;;  %v357_v54 = vadd.f32 %v3825_v13, %v4219_v59  ;;  %v1654_v13 = vld [vmem:[#allocation5 + $0x2b0] sm:$0xff] }
 0x1b6   :  { %v1387_v14 = vmax.f32 %v664_v53, 0.0  ;;  %v667_v56 = vpop.f32.mrb[84].mxu1  ;;  %2968 = vmatpush1.bf16.msra.mxu0 %v2967_v58  ;;  %v1312_v58 = vmax.f32 %v351_v62, 0.0  ;;  %v365_v53 = vadd.f32 %v3837_v17, %v4206_v0  ;;  %v2973_v50 = vpack.c.bf16 %v1653_v15, %v1652_v60 }
 0x1b7   :  { %v668_v33 = vadd.f32 %v667_v56, %v4105_v11  ;;  %v669_v12 = vpop.f32.mrb[85].mxu1  ;;  %2780 = vmatmul.mubr.msk.f32.gmra.mrb[190].mxu1 %vm187_vm0, %v3247_v5  ;;  %2969 = vmatprep.subr.bf16.mxu0 %v5095_v4  ;;  %v1320_v17 = vmax.f32 %v357_v54, 0.0  ;;  %v371_v60 = vadd.f32 %v3844_v20, %v4206_v0 }
 0x1b8   :  { %v670_v18 = vadd.f32 %v669_v12, %v4109_v61  ;;  %1767 = vmatprep.mubr.f32.mxu1 %v1313_v57  ;;  %2037 = vmatprep.mubr.f32.mxu0 %v1387_v14  ;;  %v1655_v14 = vld [vmem:[#allocation5 + $0x2b8] sm:$0xff] }
 0x1b9   :  { %2038 = vmatmul.mubr.f32.gmra.mrb[82].mxu0 %v1386_v1  ;;  %v1394_v12 = vmax.f32 %v668_v33, 0.0  ;;  %v4263_v1 = vpop.f32.mrb[42].mxu0  ;;  %v1329_v33 = vmax.f32 %v365_v53, 0.0 }
 0x1ba   :  { %v1395_v56 = vmax.f32 %v670_v18, 0.0  ;;  %v673_v5 = vpop.f32.mrb[86].mxu1  ;;  %2971 = vmatpush1.bf16.msra.mxu0 %v2970_v63  ;;  %v363_v63 = vadd.f32 %v3835_v16, %v4219_v59  ;;  %v1656_v16 = vld [vmem:[#allocation5 + $0x2c0] sm:$0xff] }
 0x1bb   :  { %v674_v57 = vadd.f32 %v673_v5, %v4105_v11  ;;  %v675_v62 = vpop.f32.mrb[87].mxu1  ;;  %1768 = vmatmul.mubr.f32.vlgmr.msra.gmra.mrb[192].mxu1 %v1312_v58  ;;  %2972 = vmatprep.subr.bf16.mxu0 %v5095_v4  ;;  %v2976_v58 = vpack.c.bf16 %v1655_v14, %v1654_v13  ;;  %v4267_v5 = vpop.f32.mrb[43].mxu0  ;;  %v377_v13 = vadd.f32 %v3851_v22, %v4206_v0 }
 0x1bc   :  { %v676_v25 = vadd.f32 %v675_v62, %v4109_v61  ;;  %1772 = vmatprep.mubr.f32.mxu1 %v1321_v6  ;;  %2042 = vmatprep.mubr.f32.mxu0 %v1395_v56  ;;  %v1657_v56 = vld [vmem:[#allocation5 + $0x2c8] sm:$0xff]  ;;  %v1328_v20 = vmax.f32 %v363_v63, 0.0 }
 0x1bd   :  { %2043 = vmatmul.mubr.f32.gmra.mrb[84].mxu0 %v1394_v12  ;;  %v1402_v62 = vmax.f32 %v674_v57, 0.0  ;;  %v4274_v12 = vpop.f32.mrb[44].mxu0  ;;  %v1337_v57 = vmax.f32 %v371_v60, 0.0 }
 0x1be   :  { %v1403_v15 = vmax.f32 %v676_v25, 0.0  ;;  %v679_v18 = vpop.f32.mrb[88].mxu1  ;;  %2974 = vmatpush1.bf16.msra.mxu0 %v2973_v50  ;;  %v369_v50 = vadd.f32 %v3842_v19, %v4219_v59  ;;  %v1658_v19 = vld [vmem:[#allocation5 + $0x2d0] sm:$0xff] }
 0x1bf   :  { %v680_v6 = vadd.f32 %v679_v18, %v4105_v11  ;;  %v681_v54 = vpop.f32.mrb[89].mxu1  ;;  %1773 = vmatmul.mubr.f32.gmra.mrb[194].mxu1 %v1320_v17  ;;  %2975 = vmatprep.subr.bf16.mxu0 %v5095_v4  ;;  %v2979_v17 = vpack.c.bf16 %v1657_v56, %v1656_v16  ;;  %v4278_v18 = vpop.f32.mrb[45].mxu0  ;;  %v383_v16 = vadd.f32 %v3858_v23, %v4206_v0 }
 0x1c0   :  { %v682_v53 = vadd.f32 %v681_v54, %v4109_v61  ;;  %1777 = vmatprep.mubr.f32.mxu1 %v1329_v33  ;;  %2047 = vmatprep.mubr.f32.mxu0 %v1403_v15  ;;  %v1659_v15 = vld [vmem:[#allocation5 + $0x2d8] sm:$0xff]  ;;  %v1336_v22 = vmax.f32 %v369_v50, 0.0 }
 0x1c1   :  { %2048 = vmatmul.mubr.f32.gmra.mrb[86].mxu0 %v1402_v62  ;;  %v1410_v54 = vmax.f32 %v680_v6, 0.0  ;;  %v4285_v62 = vpop.f32.mrb[46].mxu0  ;;  %v1345_v6 = vmax.f32 %v377_v13, 0.0 }
 0x1c2   :  { %v1411_v14 = vmax.f32 %v682_v53, 0.0  ;;  %v685_v25 = vpop.f32.mrb[90].mxu1  ;;  %2977 = vmatpush1.bf16.msra.mxu0 %v2976_v58  ;;  %v375_v58 = vadd.f32 %v3849_v21, %v4219_v59  ;;  %v1660_v21 = vld [vmem:[#allocation5 + $0x2e0] sm:$0xff] }
 0x1c3   :  { %v686_v33 = vadd.f32 %v685_v25, %v4105_v11  ;;  %v687_v63 = vpop.f32.mrb[91].mxu1  ;;  %1778 = vmatmul.mubr.f32.gmra.mrb[196].mxu1 %v1328_v20  ;;  %2978 = vmatprep.subr.bf16.mxu0 %v5095_v4  ;;  %v2982_v20 = vpack.c.bf16 %v1659_v15, %v1658_v19  ;;  %v4289_v25 = vpop.f32.mrb[47].mxu0  ;;  %v389_v19 = vadd.f32 %v3865_v24, %v4206_v0 }
 0x1c4   :  { %v688_v60 = vadd.f32 %v687_v63, %v4109_v61  ;;  %1782 = vmatprep.mubr.f32.mxu1 %v1337_v57  ;;  %2052 = vmatprep.mubr.f32.mxu0 %v1411_v14  ;;  %v1661_v14 = vld [vmem:[#allocation5 + $0x2e8] sm:$0xff]  ;;  %v1344_v23 = vmax.f32 %v375_v58, 0.0 }
 0x1c5   :  { %2053 = vmatmul.mubr.f32.gmra.mrb[88].mxu0 %v1410_v54  ;;  %v1418_v63 = vmax.f32 %v686_v33, 0.0  ;;  %v4296_v54 = vpop.f32.mrb[48].mxu0  ;;  %v1353_v33 = vmax.f32 %v383_v16, 0.0 }
 0x1c6   :  { %v1419_v56 = vmax.f32 %v688_v60, 0.0  ;;  %v691_v53 = vpop.f32.mrb[92].mxu1  ;;  %2980 = vmatpush1.bf16.msra.mxu0 %v2979_v17  ;;  %v381_v17 = vadd.f32 %v3856_v34, %v4219_v59  ;;  %v1662_v34 = vld [vmem:[#allocation5 + $0x2f0] sm:$0xff] }
 0x1c7   :  { %v692_v57 = vadd.f32 %v691_v53, %v4105_v11  ;;  %v693_v50 = vpop.f32.mrb[93].mxu1  ;;  %1783 = vmatmul.mubr.f32.gmra.mrb[198].mxu1 %v1336_v22  ;;  %2981 = vmatprep.subr.bf16.mxu0 %v5095_v4  ;;  %v2985_v22 = vpack.c.bf16 %v1661_v14, %v1660_v21  ;;  %v4300_v53 = vpop.f32.mrb[49].mxu0  ;;  %v395_v21 = vadd.f32 %v3872_v26, %v4206_v0 }
 0x1c8   :  { %v694_v13 = vadd.f32 %v693_v50, %v4109_v61  ;;  %1787 = vmatprep.mubr.f32.mxu1 %v1345_v6  ;;  %2057 = vmatprep.mubr.f32.mxu0 %v1419_v56  ;;  %v1663_v56 = vld [vmem:[#allocation5 + $0x2f8] sm:$0xff]  ;;  %v1352_v24 = vmax.f32 %v381_v17, 0.0  ;;  %v393_v26 = vadd.f32 %v3870_v41, %v4219_v59 }
 0x1c9   :  { %2058 = vmatmul.mubr.f32.gmra.mrb[90].mxu0 %v1418_v63  ;;  %v1426_v50 = vmax.f32 %v692_v57, 0.0  ;;  %v4307_v63 = vpop.f32.mrb[50].mxu0  ;;  %v1361_v57 = vmax.f32 %v389_v19, 0.0 }
 0x1ca   :  { %v1427_v15 = vmax.f32 %v694_v13, 0.0  ;;  %v697_v60 = vpop.f32.mrb[94].mxu1  ;;  %2983 = vmatpush1.bf16.msra.mxu0 %v2982_v20  ;;  %v387_v20 = vadd.f32 %v3863_v36, %v4219_v59 }
 0x1cb   :  { %v698_v6 = vadd.f32 %v697_v60, %v4105_v11  ;;  %v699_v58 = vpop.f32.mrb[95].mxu1  ;;  %1788 = vmatmul.mubr.f32.gmra.mrb[200].mxu1 %v1344_v23  ;;  %2984 = vmatprep.subr.bf16.mxu0 %v5095_v4  ;;  %v2988_v23 = vpack.c.bf16 %v1663_v56, %v1662_v34  ;;  %v4311_v60 = vpop.f32.mrb[51].mxu0 }
 0x1cc   :  { %v700_v16 = vadd.f32 %v699_v58, %v4109_v61  ;;  %1792 = vmatprep.mubr.f32.mxu1 %v1353_v33  ;;  %2062 = vmatprep.mubr.f32.mxu0 %v1427_v15  ;;  %v1360_v19 = vmax.f32 %v387_v20, 0.0  ;;  %v4318_v15 = vpop.f32.mrb[52].mxu0  ;;  %v1368_v20 = vmax.f32 %v393_v26, 0.0 }
 0x1cd   :  { %2063 = vmatmul.mubr.f32.gmra.mrb[92].mxu0 %v1426_v50  ;;  %v1434_v58 = vmax.f32 %v698_v6, 0.0  ;;  %v401_v50 = vadd.f32 %v3879_v27, %v4206_v0  ;;  %v4322_v56 = vpop.f32.mrb[53].mxu0  ;;  %v399_v27 = vadd.f32 %v3877_v42, %v4219_v59 }
 0x1ce   :  { %v1435_v14 = vmax.f32 %v700_v16, 0.0  ;;  %v703_v13 = vpop.f32.mrb[96].mxu1  ;;  %2986 = vmatpush1.bf16.msra.mxu0 %v2985_v22  ;;  %v1369_v22 = vmax.f32 %v395_v21, 0.0  ;;  %v4329_v21 = vpop.f32.mrb[54].mxu0 }
 0x1cf   :  { %v704_v33 = vadd.f32 %v703_v13, %v4105_v11  ;;  %v705_v17 = vpop.f32.mrb[97].mxu1  ;;  %1793 = vmatmul.mubr.f32.gmra.mrb[202].mxu1 %v1352_v24  ;;  %2987 = vmatprep.subr.bf16.mxu0 %v5095_v4  ;;  %v407_v13 = vadd.f32 %v3886_v28, %v4206_v0  ;;  %v1376_v42 = vmax.f32 %v399_v27, 0.0 }
 0x1d0   :  { %v706_v36 = vadd.f32 %v705_v17, %v4109_v61  ;;  %1797 = vmatprep.mubr.f32.mxu1 %v1361_v57  ;;  %2067 = vmatprep.mubr.f32.mxu0 %v1435_v14  ;;  %v1377_v14 = vmax.f32 %v401_v50, 0.0 }
 0x1d1   :  { %2068 = vmatmul.mubr.f32.gmra.mrb[94].mxu0 %v1434_v58  ;;  %v1442_v16 = vmax.f32 %v704_v33, 0.0  ;;  %v4333_v33 = vpop.f32.mrb[55].mxu0  ;;  %v1385_v28 = vmax.f32 %v407_v13, 0.0 }
 0x1d2   :  { %v1443_v6 = vmax.f32 %v706_v36, 0.0  ;;  %v709_v34 = vpop.f32.mrb[98].mxu1  ;;  %2989 = vmatpush1.bf16.msra.mxu0 %v2988_v23  ;;  %v4339_v50 = vpop.f32.mrb[56].mxu0 }
 0x1d3   :  { %v710_v24 = vadd.f32 %v709_v34, %v4105_v11  ;;  %v711_v57 = vpop.f32.mrb[99].mxu1  ;;  %1798 = vmatmul.mubr.f32.gmra.mrb[204].mxu1 %v1360_v19  ;;  %2990 = vmatprep.subr.bf16.mxu0 %v5095_v4 }
 0x1d4   :  { %v712_v41 = vadd.f32 %v711_v57, %v4109_v61  ;;  %1802 = vmatprep.mubr.f32.mxu1 %v1369_v22  ;;  %2072 = vmatprep.mubr.f32.mxu0 %v1443_v6  ;;  %v405_v22 = vadd.f32 %v3884_v47, %v4219_v59  ;;  %v413_v6 = vadd.f32 %v3893_v31, %v4206_v0 }
 0x1d5   :  { %2073 = vmatmul.mubr.f32.gmra.mrb[96].mxu0 %v1442_v16  ;;  %v1450_v17 = vmax.f32 %v710_v24, 0.0  ;;  %v4343_v24 = vpop.f32.mrb[57].mxu0 }
 0x1d6   :  { %v1451_v23 = vmax.f32 %v712_v41, 0.0  ;;  %v715_v58 = vpop.f32.mrb[100].mxu1  ;;  %v1384_v47 = vmax.f32 %v405_v22, 0.0  ;;  %v4349_v13 = vpop.f32.mrb[58].mxu0  ;;  %v1393_v31 = vmax.f32 %v413_v6, 0.0 }
 0x1d7   :  { %v716_v36 = vadd.f32 %v715_v58, %v4105_v11  ;;  %v717_v19 = vpop.f32.mrb[101].mxu1  ;;  %1803 = vmatmul.mubr.f32.gmra.mrb[206].mxu1 %v1368_v20 }
 0x1d8   :  { %v718_v26 = vadd.f32 %v717_v19, %v4109_v61  ;;  %1807 = vmatprep.mubr.f32.mxu1 %v1377_v14  ;;  %2077 = vmatprep.mubr.f32.mxu0 %v1451_v23  ;;  %v411_v14 = vadd.f32 %v3891_v30, %v4219_v59  ;;  %v419_v23 = vadd.f32 %v3900_v43, %v4206_v0 }
 0x1d9   :  { %2078 = vmatmul.mubr.f32.gmra.mrb[98].mxu0 %v1450_v17  ;;  %v1458_v57 = vmax.f32 %v716_v36, 0.0  ;;  %v4353_v36 = vpop.f32.mrb[59].mxu0 }
 0x1da   :  { %v1459_v34 = vmax.f32 %v718_v26, 0.0  ;;  %v721_v16 = vpop.f32.mrb[102].mxu1  ;;  %v1392_v30 = vmax.f32 %v411_v14, 0.0  ;;  %v4359_v6 = vpop.f32.mrb[60].mxu0  ;;  %v1401_v43 = vmax.f32 %v419_v23, 0.0 }
 0x1db   :  { %v722_v41 = vadd.f32 %v721_v16, %v4105_v11  ;;  %v723_v20 = vpop.f32.mrb[103].mxu1  ;;  %1808 = vmatmul.mubr.f32.gmra.mrb[208].mxu1 %v1376_v42 }
 0x1dc   :  { %v724_v27 = vadd.f32 %v723_v20, %v4109_v61  ;;  %1812 = vmatprep.mubr.f32.mxu1 %v1385_v28  ;;  %2082 = vmatprep.mubr.f32.mxu0 %v1459_v34  ;;  %v417_v28 = vadd.f32 %v3898_v40, %v4219_v59  ;;  %v425_v34 = vadd.f32 %v3908_v49, %v4206_v0 }
 0x1dd   :  { %2083 = vmatmul.mubr.f32.gmra.mrb[100].mxu0 %v1458_v57  ;;  %v1466_v19 = vmax.f32 %v722_v41, 0.0  ;;  %v4363_v41 = vpop.f32.mrb[61].mxu0  ;;  %v431_v49 = vadd.f32 %v3916_v10, %v4206_v0 }
 0x1de   :  { %v1467_v58 = vmax.f32 %v724_v27, 0.0  ;;  %v727_v17 = vpop.f32.mrb[104].mxu1  ;;  %v1400_v40 = vmax.f32 %v417_v28, 0.0  ;;  %v1409_v23 = vmax.f32 %v425_v34, 0.0  ;;  %v437_v34 = vadd.f32 %v3924_v8, %v4206_v0 }
 0x1df   :  { %v728_v26 = vadd.f32 %v727_v17, %v4105_v11  ;;  %v729_v42 = vpop.f32.mrb[105].mxu1  ;;  %1813 = vmatmul.mubr.f32.gmra.mrb[210].mxu1 %v1384_v47  ;;  %v1417_v10 = vmax.f32 %v431_v49, 0.0  ;;  %v443_v8 = vadd.f32 %v3932_v44, %v4206_v0  ;;  %v449_v44 = vadd.f32 %v3940_v52, %v4206_v0 }
 0x1e0   :  { %v730_v22 = vadd.f32 %v729_v42, %v4109_v61  ;;  %1817 = vmatprep.mubr.f32.mxu1 %v1393_v31  ;;  %2087 = vmatprep.mubr.f32.mxu0 %v1467_v58  ;;  %v423_v31 = vadd.f32 %v3906_v45, %v4219_v59  ;;  %v455_v52 = vadd.f32 %v3948_v37, %v4206_v0 }
 0x1e1   :  { %2088 = vmatmul.mubr.f32.gmra.mrb[102].mxu0 %v1466_v19  ;;  %v1474_v20 = vmax.f32 %v728_v26, 0.0  ;;  %v4371_v19 = vpop.f32.mrb[62].mxu0  ;;  %v461_v37 = vadd.f32 %v3956_v51, %v4206_v0  ;;  %v467_v51 = vadd.f32 %v3964_v39, %v4206_v0  ;;  %v473_v39 = vadd.f32 %v3972_v38, %v4206_v0  ;;  %v5115_v38 = vld [vmem:[#allocation15_spill] sm:$0xff] }
 0x1e2   :  { %v1475_v16 = vmax.f32 %v730_v22, 0.0  ;;  %v733_v57 = vpop.f32.mrb[106].mxu1  ;;  %v1408_v45 = vmax.f32 %v423_v31, 0.0  ;;  %v1425_v31 = vmax.f32 %v437_v34, 0.0 }
 0x1e3   :  { %v734_v27 = vadd.f32 %v733_v57, %v4105_v11  ;;  %v735_v47 = vpop.f32.mrb[107].mxu1  ;;  %1818 = vmatmul.mubr.f32.gmra.mrb[212].mxu1 %v1392_v30  ;;  %v4374_v30 = vpop.f32.mrb[63].mxu0 }
 0x1e4   :  { %v736_v14 = vadd.f32 %v735_v47, %v4109_v61  ;;  %1822 = vmatprep.mubr.f32.mxu1 %v1401_v43  ;;  %2092 = vmatprep.mubr.f32.mxu0 %v1475_v16  ;;  %v429_v43 = vadd.f32 %v3914_v7, %v4219_v59  ;;  %v435_v7 = vadd.f32 %v3922_v29, %v4219_v59 }
 0x1e5   :  { %2093 = vmatmul.mubr.f32.gmra.mrb[104].mxu0 %v1474_v20  ;;  %v1482_v26 = vmax.f32 %v734_v27, 0.0  ;;  %v441_v29 = vadd.f32 %v3930_v9, %v4219_v59  ;;  %v447_v9 = vadd.f32 %v3938_v32, %v4219_v59  ;;  %v453_v32 = vadd.f32 %v3946_v48, %v4219_v59 }
 0x1e6   :  { %v1483_v58 = vmax.f32 %v736_v14, 0.0  ;;  %v739_v17 = vpop.f32.mrb[108].mxu1 }
 0x1e7   :  { %v740_v42 = vadd.f32 %v739_v17, %v4105_v11  ;;  %v741_v22 = vpop.f32.mrb[109].mxu1  ;;  %1823 = vmatmul.mubr.f32.gmra.mrb[214].mxu1 %v1400_v40  ;;  %v1416_v40 = vmax.f32 %v429_v43, 0.0 }
 0x1e8   :  { %v742_v28 = vadd.f32 %v741_v22, %v4109_v61  ;;  %1827 = vmatprep.mubr.f32.mxu1 %v1409_v23  ;;  %2097 = vmatprep.mubr.f32.mxu0 %v1483_v58  ;;  %v1424_v22 = vmax.f32 %v435_v7, 0.0 }
 0x1e9   :  { %2098 = vmatmul.mubr.f32.gmra.mrb[106].mxu0 %v1482_v26  ;;  %v1490_v20 = vmax.f32 %v740_v42, 0.0 }
 0x1ea   :  { %v1491_v16 = vmax.f32 %v742_v28, 0.0  ;;  %v745_v57 = vpop.f32.mrb[110].mxu1  ;;  %v1433_v28 = vmax.f32 %v443_v8, 0.0 }
 0x1eb   :  { %v746_v27 = vadd.f32 %v745_v57, %v4105_v11  ;;  %v747_v47 = vpop.f32.mrb[111].mxu1  ;;  %1828 = vmatmul.mubr.f32.gmra.mrb[216].mxu1 %v1408_v45 }
 0x1ec   :  { %v748_v14 = vadd.f32 %v747_v47, %v4109_v61  ;;  %1832 = vmatprep.mubr.f32.mxu1 %v1417_v10  ;;  %2102 = vmatprep.mubr.f32.mxu0 %v1491_v16 }
 0x1ed   :  { %2103 = vmatmul.mubr.f32.gmra.mrb[108].mxu0 %v1490_v20  ;;  %v1498_v58 = vmax.f32 %v746_v27, 0.0  ;;  %v1432_v20 = vmax.f32 %v441_v29, 0.0  ;;  %v1441_v27 = vmax.f32 %v449_v44, 0.0  ;;  %v5112_v44 = vld [vmem:[#allocation11_spill] sm:$0xff] }
 0x1ee   :  { %v1499_v23 = vmax.f32 %v748_v14, 0.0  ;;  %v751_v49 = vpop.f32.mrb[112].mxu1  ;;  %v459_v48 = vadd.f32 %v5112_v44, %v4219_v59 }
 0x1ef   :  { %v752_v17 = vadd.f32 %v751_v49, %v4105_v11  ;;  %v753_v26 = vpop.f32.mrb[113].mxu1  ;;  %1833 = vmatmul.mubr.f32.gmra.mrb[218].mxu1 %v1416_v40  ;;  %v1449_v49 = vmax.f32 %v455_v52, 0.0 }
 0x1f0   :  { %v754_v42 = vadd.f32 %v753_v26, %v4109_v61  ;;  %1837 = vmatprep.mubr.f32.mxu1 %v1425_v31  ;;  %2107 = vmatprep.mubr.f32.mxu0 %v1499_v23  ;;  %v1440_v23 = vmax.f32 %v447_v9, 0.0  ;;  %v1456_v9 = vmax.f32 %v459_v48, 0.0 }
 0x1f1   :  { %2108 = vmatmul.mubr.f32.gmra.mrb[110].mxu0 %v1498_v58  ;;  %v1506_v10 = vmax.f32 %v752_v17, 0.0 }
 0x1f2   :  { %v1507_v45 = vmax.f32 %v754_v42, 0.0  ;;  %v757_v43 = vpop.f32.mrb[114].mxu1 }
 0x1f3   :  { %v758_v34 = vadd.f32 %v757_v43, %v4105_v11  ;;  %v759_v16 = vpop.f32.mrb[115].mxu1  ;;  %1838 = vmatmul.mubr.f32.gmra.mrb[220].mxu1 %v1424_v22 }
 0x1f4   :  { %v760_v57 = vadd.f32 %v759_v16, %v4109_v61  ;;  %1842 = vmatprep.mubr.f32.mxu1 %v1433_v28  ;;  %2112 = vmatprep.mubr.f32.mxu0 %v1507_v45  ;;  %v1448_v28 = vmax.f32 %v453_v32, 0.0  ;;  %v1457_v45 = vmax.f32 %v461_v37, 0.0  ;;  %v5114_v37 = vld [vmem:[#allocation13_spill] sm:$0xff] }
 0x1f5   :  { %2113 = vmatmul.mubr.f32.gmra.mrb[112].mxu0 %v1506_v10  ;;  %v1514_v40 = vmax.f32 %v758_v34, 0.0 }
 0x1f6   :  { %v1515_v47 = vmax.f32 %v760_v57, 0.0  ;;  %v763_v14 = vpop.f32.mrb[116].mxu1 }
 0x1f7   :  { %v764_v7 = vadd.f32 %v763_v14, %v4105_v11  ;;  %v765_v31 = vpop.f32.mrb[117].mxu1  ;;  %1843 = vmatmul.mubr.f32.gmra.mrb[222].mxu1 %v1432_v20 }
 0x1f8   :  { %v766_v8 = vadd.f32 %v765_v31, %v4109_v61  ;;  %1847 = vmatprep.mubr.f32.mxu1 %v1441_v27  ;;  %2117 = vmatprep.mubr.f32.mxu0 %v1515_v47  ;;  %v5113_v27 = vld [vmem:[#allocation12_spill] sm:$0xff]  ;;  %v1465_v47 = vmax.f32 %v467_v51, 0.0 }
 0x1f9   :  { %2118 = vmatmul.mubr.f32.gmra.mrb[114].mxu0 %v1514_v40  ;;  %v1522_v26 = vmax.f32 %v764_v7, 0.0  ;;  %v465_v52 = vadd.f32 %v5113_v27, %v4219_v59 }
 0x1fa   :  { %v1523_v58 = vmax.f32 %v766_v8, 0.0  ;;  %v769_v17 = vpop.f32.mrb[118].mxu1 }
 0x1fb   :  { %v770_v42 = vadd.f32 %v769_v17, %v4105_v11  ;;  %v771_v22 = vpop.f32.mrb[119].mxu1  ;;  %1848 = vmatmul.mubr.f32.gmra.mrb[224].mxu1 %v1440_v23  ;;  %v169_v23 = vsub.s32 5, %v4076_v35  ;;  %v1473_v17 = vmax.f32 %v473_v39, 0.0 }
 0x1fc   :  { %v772_v29 = vadd.f32 %v771_v22, %v4109_v61  ;;  %1852 = vmatprep.mubr.f32.mxu1 %v1449_v49  ;;  %2122 = vmatprep.mubr.f32.mxu0 %v1523_v58  ;;  %v1464_v49 = vmax.f32 %v465_v52, 0.0  ;;  %v471_v58 = vadd.f32 %v5114_v37, %v4219_v59 }
 0x1fd   :  { %2123 = vmatmul.mubr.f32.gmra.mrb[116].mxu0 %v1522_v26  ;;  %v1530_v34 = vmax.f32 %v770_v42, 0.0  ;;  %v479_v26 = vadd.f32 %v5115_v38, %v4206_v0 }
 0x1fe   :  { %v1531_v43 = vmax.f32 %v772_v29, 0.0  ;;  %v775_v10 = vpop.f32.mrb[120].mxu1  ;;  %v165_v29 = vsub.s32 4, %v4076_v35 }
 0x1ff   :  { %v776_v16 = vadd.f32 %v775_v10, %v4105_v11  ;;  %v777_v57 = vpop.f32.mrb[121].mxu1  ;;  %1853 = vmatmul.mubr.f32.gmra.mrb[226].mxu1 %v1448_v28  ;;  %v1472_v10 = vmax.f32 %v471_v58, 0.0 }
 0x200   :  { %v778_v20 = vadd.f32 %v777_v57, %v4109_v61  ;;  %1857 = vmatprep.mubr.f32.mxu1 %v1457_v45  ;;  %2127 = vmatprep.mubr.f32.mxu0 %v1531_v43  ;;  %v4429_v45 = vld [vmem:[%s5039_s2] sm:$0xff]  ;;  %v1481_v57 = vmax.f32 %v479_v26, 0.0 }
 0x201   :  { %2128 = vmatmul.mubr.f32.gmra.mrb[118].mxu0 %v1530_v34  ;;  %v1538_v7 = vmax.f32 %v776_v16, 0.0  ;;  %v4432_v51 = vrot.slane %v4429_v45, %v169_v23  ;;  %v5116_v34 = vld [vmem:[#allocation14_spill] sm:$0xff]  ;;  %v4440_v52 = vrot.slane %v4429_v45, %v165_v29 }
 0x202   :  { %v1539_v14 = vmax.f32 %v778_v20, 0.0  ;;  %v781_v40 = vpop.f32.mrb[122].mxu1  ;;  %v477_v16 = vadd.f32 %v5116_v34, %v4219_v59  ;;  %v485_v20 = vadd.f32 %v3988_v46, %v4206_v0  ;;  %v5118_v46 = vld [vmem:[#allocation16_spill] sm:$0xff] }
 0x203   :  { %v782_v31 = vadd.f32 %v781_v40, %v4105_v11  ;;  %v783_v8 = vpop.f32.mrb[123].mxu1  ;;  %1858 = vmatmul.mubr.f32.gmra.mrb[228].mxu1 %v1456_v9  ;;  %v5117_v40 = vld [vmem:[#allocation18_spill] sm:$0xff]  ;;  %v483_v23 = vadd.f32 %v5118_v46, %v4219_v59 }
 0x204   :  { %v784_v32 = vadd.f32 %v783_v8, %v4109_v61  ;;  %1862 = vmatprep.mubr.f32.mxu1 %v1465_v47  ;;  %2132 = vmatprep.mubr.f32.mxu0 %v1539_v14  ;;  %v1480_v8 = vmax.f32 %v477_v16, 0.0  ;;  %v5123_v16 = vld [vmem:[#allocation24_spill] sm:$0xff] }
 0x205   :  { %2133 = vmatmul.mubr.f32.gmra.mrb[120].mxu0 %v1538_v7  ;;  %v1546_v28 = vmax.f32 %v782_v31, 0.0  ;;  %v867_v7 = vadd.f32 %v5117_v40, %v4432_v51  ;;  %v1667_v40 = vld [vmem:[#allocation5 + $0x318] sm:$0xff] }
 0x206   :  { %v1547_v42 = vmax.f32 %v784_v32, 0.0  ;;  %v787_v22 = vpop.f32.mrb[124].mxu1  ;;  %v1489_v32 = vmax.f32 %v485_v20, 0.0 }
 0x207   :  { %v788_v44 = vadd.f32 %v787_v22, %v4105_v11  ;;  %v789_v48 = vpop.f32.mrb[125].mxu1  ;;  %1863 = vmatmul.mubr.f32.gmra.mrb[230].mxu1 %v1464_v49  ;;  %v5119_v49 = vld [vmem:[#allocation20_spill] sm:$0xff]  ;;  %v1317_v29 = vmax.f32 %v867_v7, 0.0 }
 0x208   :  { %v790_v43 = vadd.f32 %v789_v48, %v4109_v61  ;;  %1867 = vmatprep.mubr.f32.mxu1 %v1473_v17  ;;  %2137 = vmatprep.mubr.f32.mxu0 %v1547_v42  ;;  %v491_v37 = vadd.f32 %v5119_v49, %v4206_v0  ;;  %v5120_v17 = vld [vmem:[#allocation17_spill] sm:$0xff]  ;;  %v1665_v42 = vld [vmem:[#allocation5 + $0x308] sm:$0xff]  ;;  %v1488_v48 = vmax.f32 %v483_v23, 0.0 }
 0x209   :  { %2138 = vmatmul.mubr.f32.gmra.mrb[122].mxu0 %v1546_v28  ;;  %v1554_v47 = vmax.f32 %v788_v44, 0.0  ;;  %v865_v38 = vadd.f32 %v5120_v17, %v4440_v52  ;;  %v5121_v28 = vld [vmem:[#allocation22_spill] sm:$0xff] }
 0x20a   :  { %v1555_v9 = vmax.f32 %v790_v43, 0.0  ;;  %v793_v27 = vpop.f32.mrb[126].mxu1  ;;  %v873_v44 = vadd.f32 %v5121_v28, %v4432_v51  ;;  %v5122_v43 = vld [vmem:[#allocation19_spill] sm:$0xff]  ;;  %v1497_v34 = vmax.f32 %v491_v37, 0.0 }
 0x20b   :  { %v794_v39 = vadd.f32 %v793_v27, %v4105_v11  ;;  %v795_v14 = vpop.f32.mrb[127].mxu1  ;;  %1868 = vmatmul.mubr.f32.gmra.mrb[232].mxu1 %v1472_v10  ;;  %v489_v10 = vadd.f32 %v5122_v43, %v4219_v59  ;;  %v1316_v27 = vmax.f32 %v865_v38, 0.0  ;;  %v1668_v28 = vld [vmem:[#allocation5 + $0x320] sm:$0xff] }
 0x20c   :  { %v796_v31 = vadd.f32 %v795_v14, %v4109_v61  ;;  %1872 = vmatprep.mubr.f32.mxu1 %v1481_v57  ;;  %2142 = vmatprep.mubr.f32.mxu0 %v1555_v9  ;;  %v1664_v61 = vld [vmem:[#allocation5 + $0x300] sm:$0xff]  ;;  %v497_v57 = vadd.f32 %v5123_v16, %v4206_v0  ;;  %v1666_v14 = vld [vmem:[#allocation5 + $0x310] sm:$0xff] }
 0x20d   :  { %2143 = vmatmul.mubr.f32.gmra.mrb[124].mxu0 %v1554_v47  ;;  %v1562_v26 = vmax.f32 %v794_v39, 0.0  ;;  %v2991_v20 = vpack.c.bf16 %v1665_v42, %v1664_v61  ;;  %v5124_v47 = vld [vmem:[#allocation21_spill] sm:$0xff]  ;;  %v1496_v23 = vmax.f32 %v489_v10, 0.0  ;;  %v2994_v38 = vpack.c.bf16 %v1667_v40, %v1666_v14  ;;  %v5129_v10 = vld [vmem:[#allocation30_spill] sm:$0xff] }
 0x20e   :  { %v1563_v58 = vmax.f32 %v796_v31, 0.0  ;;  %v4450_v11 = vpop.f32.mrb[128].mxu1  ;;  %v871_v39 = vadd.f32 %v5124_v47, %v4440_v52  ;;  %v1325_v31 = vmax.f32 %v873_v44, 0.0  ;;  %v1505_v37 = vmax.f32 %v497_v57, 0.0  ;;  %v5128_v42 = vld [vmem:[#allocation25_spill] sm:$0xff]  ;;  %v1669_v44 = vld [vmem:[#allocation5 + $0x328] sm:$0xff] }
 0x20f   :  { %1873 = vmatmul.mubr.f32.gmra.mrb[234].mxu1 %v1480_v8  ;;  %v4454_v22 = vpop.f32.mrb[129].mxu1  ;;  %v5125_v8 = vld [vmem:[#allocation26_spill] sm:$0xff]  ;;  %v5130_v57 = vld [vmem:[#allocation27_spill] sm:$0xff]  ;;  %v5131_v47 = vld [vmem:[#allocation32_spill] sm:$0xff]  ;;  %v2997_v14 = vpack.c.bf16 %v1669_v44, %v1668_v28 }
 0x210   :  { %1877 = vmatprep.mubr.f32.mxu1 %v1489_v32  ;;  %2147 = vmatprep.mubr.f32.mxu0 %v1563_v58  ;;  %v879_v46 = vadd.f32 %v5125_v8, %v4432_v51  ;;  %v5126_v32 = vld [vmem:[#allocation23_spill] sm:$0xff]  ;;  %v5127_v58 = vld [vmem:[#allocation28_spill] sm:$0xff]  ;;  %v1324_v61 = vmax.f32 %v871_v39, 0.0  ;;  %v509_v39 = vadd.f32 %v5131_v47, %v4206_v0  ;;  %v5132_v8 = vld [vmem:[#allocation29_spill] sm:$0xff] }
 0x211   :  { %2148 = vmatmul.mubr.f32.gmra.mrb[126].mxu0 %v1562_v26  ;;  %v495_v49 = vadd.f32 %v5126_v32, %v4219_v59  ;;  %v503_v17 = vadd.f32 %v5127_v58, %v4206_v0  ;;  %v1671_v32 = vld [vmem:[#allocation5 + $0x338] sm:$0xff]  ;;  %v5135_v28 = vld [vmem:[#allocation36_spill] sm:$0xff] }
 0x212   :  { %2217 = vmatprep.mubr.f32.mxu0 %v1317_v29  ;;  %v4462_v9 = vpop.f32.mrb[130].mxu1  ;;  %v877_v29 = vadd.f32 %v5128_v42, %v4440_v52  ;;  %v1333_v43 = vmax.f32 %v879_v46, 0.0  ;;  %v883_v46 = vadd.f32 %v5132_v8, %v4440_v52  ;;  %v5133_v58 = vld [vmem:[#allocation34_spill] sm:$0xff]  ;;  %v515_v44 = vadd.f32 %v5135_v28, %v4206_v0 }
 0x213   :  { %1878 = vmatmul.mubr.f32.gmra.mrb[236].mxu1 %v1488_v48  ;;  %v4466_v7 = vpop.f32.mrb[131].mxu1  ;;  %v1504_v16 = vmax.f32 %v495_v49, 0.0 }
 0x214   :  { %1882 = vmatprep.mubr.f32.mxu1 %v1497_v34  ;;  %v885_v34 = vadd.f32 %v5129_v10, %v4432_v51 }
 0x215   :  { %2218 = vmatmul.mubr.f32.vlgmr.msra.gmra.mrb[64].mxu0 %v1316_v27  ;;  %v1513_v27 = vmax.f32 %v503_v17, 0.0  ;;  %v891_v17 = vadd.f32 %v5133_v58, %v4432_v51 }
 0x216   :  { %2222 = vmatprep.mubr.f32.mxu0 %v1325_v31  ;;  %2992 = vmatpush1.bf16.msra.mxu0 %v2991_v20  ;;  %v4474_v26 = vpop.f32.mrb[132].mxu1  ;;  %v501_v20 = vadd.f32 %v5130_v57, %v4219_v59  ;;  %v1332_v31 = vmax.f32 %v877_v29, 0.0  ;;  %v1521_v29 = vmax.f32 %v509_v39, 0.0 }
 0x217   :  { %1883 = vmatmul.mubr.f32.gmra.mrb[238].mxu1 %v1496_v23  ;;  %2993 = vmatprep.subr.bf16.mxu0 %v5095_v4  ;;  %v4479_v48 = vpop.f32.mrb[133].mxu1  ;;  %v1670_v23 = vld [vmem:[#allocation5 + $0x330] sm:$0xff]  ;;  %v1349_v39 = vmax.f32 %v891_v17, 0.0 }
 0x218   :  { %1887 = vmatprep.mubr.f32.mxu1 %v1505_v37  ;;  %v1341_v37 = vmax.f32 %v885_v34, 0.0  ;;  %v5137_v34 = vld [vmem:[#allocation33_spill] sm:$0xff] }
 0x219   :  { %2223 = vmatmul.mubr.f32.gmra.mrb[66].mxu0 %v1324_v61  ;;  %v5134_v61 = vld [vmem:[#allocation31_spill] sm:$0xff]  ;;  %v889_v57 = vadd.f32 %v5137_v34, %v4440_v52  ;;  %v5142_v17 = vld [vmem:[#allocation37_spill] sm:$0xff] }
 0x21a   :  { %2227 = vmatprep.mubr.f32.mxu0 %v1333_v43  ;;  %2995 = vmatpush1.bf16.msra.mxu0 %v2994_v38  ;;  %v4487_v40 = vpop.f32.mrb[134].mxu1  ;;  %v1512_v38 = vmax.f32 %v501_v20, 0.0  ;;  %v507_v42 = vadd.f32 %v5134_v61, %v4219_v59  ;;  %v3000_v43 = vpack.c.bf16 %v1671_v32, %v1670_v23  ;;  %v1672_v20 = vld [vmem:[#allocation5 + $0x340] sm:$0xff]  ;;  %v895_v34 = vadd.f32 %v5142_v17, %v4440_v52 }
 0x21b   :  { %1888 = vmatmul.mubr.f32.gmra.mrb[240].mxu1 %v1504_v16  ;;  %2996 = vmatprep.subr.bf16.mxu0 %v5095_v4  ;;  %v4492_v49 = vpop.f32.mrb[135].mxu1  ;;  %v1340_v16 = vmax.f32 %v883_v46, 0.0  ;;  %v5139_v23 = vld [vmem:[#allocation35_spill] sm:$0xff]  ;;  %v1529_v46 = vmax.f32 %v515_v44, 0.0  ;;  %v1348_v28 = vmax.f32 %v889_v57, 0.0 }
 0x21c   :  { %1892 = vmatprep.mubr.f32.mxu1 %v1513_v27  ;;  %v1673_v27 = vld [vmem:[#allocation5 + $0x348] sm:$0xff]  ;;  %v513_v32 = vadd.f32 %v5139_v23, %v4219_v59 }
 0x21d   :  { %2228 = vmatmul.mubr.f32.gmra.mrb[68].mxu0 %v1332_v31  ;;  %v5138_v31 = vld [vmem:[#allocation38_spill] sm:$0xff] }
 0x21e   :  { %2232 = vmatprep.mubr.f32.mxu0 %v1341_v37  ;;  %2998 = vmatpush1.bf16.msra.mxu0 %v2997_v14  ;;  %v4500_v10 = vpop.f32.mrb[136].mxu1  ;;  %v897_v8 = vadd.f32 %v5138_v31, %v4432_v51  ;;  %v1520_v14 = vmax.f32 %v507_v42, 0.0  ;;  %v5140_v37 = vld [vmem:[#allocation40_spill] sm:$0xff]  ;;  %v1674_v42 = vld [vmem:[#allocation5 + $0x350] sm:$0xff] }
 0x21f   :  { %5136 = vst [vmem:[#allocation11_spill] sm:$0xff] %v4500_v10  ;;  %1893 = vmatmul.mubr.f32.gmra.mrb[242].mxu1 %v1512_v38  ;;  %2999 = vmatprep.subr.bf16.mxu0 %v5095_v4  ;;  %v4505_v47 = vpop.f32.mrb[137].mxu1  ;;  %v521_v58 = vadd.f32 %v5140_v37, %v4206_v0  ;;  %v3003_v38 = vpack.c.bf16 %v1673_v27, %v1672_v20  ;;  %v5144_v20 = vld [vmem:[#allocation39_spill] sm:$0xff] }
 0x220   :  { %1897 = vmatprep.mubr.f32.mxu1 %v1521_v29  ;;  %v1675_v29 = vld [vmem:[#allocation5 + $0x358] sm:$0xff]  ;;  %v1357_v44 = vmax.f32 %v897_v8, 0.0  ;;  %v519_v27 = vadd.f32 %v5144_v20, %v4219_v59  ;;  %v5147_v8 = vld [vmem:[#allocation41_spill] sm:$0xff] }
 0x221   :  { %2233 = vmatmul.mubr.f32.gmra.mrb[70].mxu0 %v1340_v16  ;;  %v5143_v16 = vld [vmem:[#allocation42_spill] sm:$0xff]  ;;  %v1537_v57 = vmax.f32 %v521_v58, 0.0  ;;  %v3006_v37 = vpack.c.bf16 %v1675_v29, %v1674_v42  ;;  %v901_v10 = vadd.f32 %v5147_v8, %v4440_v52  ;;  %v5150_v42 = vld [vmem:[#allocation43_spill] sm:$0xff] }
 0x222   :  { %2237 = vmatprep.mubr.f32.mxu0 %v1349_v39  ;;  %3001 = vmatpush1.bf16.msra.mxu0 %v3000_v43  ;;  %v4513_v61 = vpop.f32.mrb[138].mxu1  ;;  %v903_v23 = vadd.f32 %v5143_v16, %v4432_v51  ;;  %v1528_v43 = vmax.f32 %v513_v32, 0.0  ;;  %v5145_v39 = vld [vmem:[#allocation44_spill] sm:$0xff]  ;;  %v1676_v32 = vld [vmem:[#allocation5 + $0x360] sm:$0xff]  ;;  %v525_v29 = vadd.f32 %v5150_v42, %v4219_v59 }
 0x223   :  { %5141 = vst [vmem:[#allocation12_spill] sm:$0xff] %v4513_v61  ;;  %1898 = vmatmul.mubr.f32.gmra.mrb[244].mxu1 %v1520_v14  ;;  %3002 = vmatprep.subr.bf16.mxu0 %v5095_v4  ;;  %v4518_v31 = vpop.f32.mrb[139].mxu1  ;;  %v527_v14 = vadd.f32 %v5145_v39, %v4206_v0  ;;  %v1356_v61 = vmax.f32 %v895_v34, 0.0 }
 0x224   :  { %1902 = vmatprep.mubr.f32.mxu1 %v1529_v46  ;;  %v1677_v46 = vld [vmem:[#allocation5 + $0x368] sm:$0xff]  ;;  %v1365_v58 = vmax.f32 %v903_v23, 0.0  ;;  %v5153_v23 = vld [vmem:[#allocation45_spill] sm:$0xff] }
 0x225   :  { %2238 = vmatmul.mubr.f32.gmra.mrb[72].mxu0 %v1348_v28  ;;  %v5149_v28 = vld [vmem:[#allocation46_spill] sm:$0xff]  ;;  %v1545_v34 = vmax.f32 %v527_v14, 0.0  ;;  %v3009_v39 = vpack.c.bf16 %v1677_v46, %v1676_v32  ;;  %v5156_v32 = vld [vmem:[#allocation47_spill] sm:$0xff] }
 0x226   :  { %2242 = vmatprep.mubr.f32.mxu0 %v1357_v44  ;;  %3004 = vmatpush1.bf16.msra.mxu0 %v3003_v38  ;;  %v4526_v17 = vpop.f32.mrb[140].mxu1  ;;  %v909_v20 = vadd.f32 %v5149_v28, %v4432_v51  ;;  %v1536_v38 = vmax.f32 %v519_v27, 0.0  ;;  %v5151_v44 = vld [vmem:[#allocation48_spill] sm:$0xff]  ;;  %v1678_v27 = vld [vmem:[#allocation5 + $0x370] sm:$0xff]  ;;  %v5155_v14 = vld [vmem:[#allocation50_spill] sm:$0xff]  ;;  %v531_v46 = vadd.f32 %v5156_v32, %v4219_v59 }
 0x227   :  { %5146 = vst [vmem:[#allocation13_spill] sm:$0xff] %v4526_v17  ;;  %1903 = vmatmul.mubr.f32.gmra.mrb[246].mxu1 %v1528_v43  ;;  %3005 = vmatprep.subr.bf16.mxu0 %v5095_v4  ;;  %v4531_v16 = vpop.f32.mrb[141].mxu1  ;;  %v533_v43 = vadd.f32 %v5151_v44, %v4206_v0  ;;  %v1364_v17 = vmax.f32 %v901_v10, 0.0  ;;  %v915_v42 = vadd.f32 %v5155_v14, %v4432_v51 }
 0x228   :  { %5148 = vst [vmem:[#allocation15_spill] sm:$0xff] %v4531_v16  ;;  %1907 = vmatprep.mubr.f32.mxu1 %v1537_v57  ;;  %v907_v16 = vadd.f32 %v5153_v23, %v4440_v52  ;;  %v1679_v57 = vld [vmem:[#allocation5 + $0x378] sm:$0xff] }
 0x229   :  { %2243 = vmatmul.mubr.f32.gmra.mrb[74].mxu0 %v1356_v61  ;;  %v1373_v61 = vmax.f32 %v909_v20, 0.0  ;;  %v1553_v10 = vmax.f32 %v533_v43, 0.0  ;;  %v3012_v44 = vpack.c.bf16 %v1679_v57, %v1678_v27  ;;  %v5158_v20 = vld [vmem:[#allocation49_spill] sm:$0xff]  ;;  %v5159_v43 = vld [vmem:[#allocation54_spill] sm:$0xff]  ;;  %v5160_v27 = vld [vmem:[#allocation51_spill] sm:$0xff] }
 0x22a   :  { %2247 = vmatprep.mubr.f32.mxu0 %v1365_v58  ;;  %3007 = vmatpush1.bf16.msra.mxu0 %v3006_v37  ;;  %v4539_v8 = vpop.f32.mrb[142].mxu1  ;;  %v1544_v37 = vmax.f32 %v525_v29, 0.0  ;;  %v5157_v58 = vld [vmem:[#allocation52_spill] sm:$0xff]  ;;  %v1680_v29 = vld [vmem:[#allocation5 + $0x380] sm:$0xff]  ;;  %v537_v57 = vadd.f32 %v5160_v27, %v4219_v59 }
 0x22b   :  { %5152 = vst [vmem:[#allocation14_spill] sm:$0xff] %v4539_v8  ;;  %1908 = vmatmul.mubr.f32.gmra.mrb[248].mxu1 %v1536_v38  ;;  %3008 = vmatprep.subr.bf16.mxu0 %v5095_v4  ;;  %v4544_v28 = vpop.f32.mrb[143].mxu1  ;;  %v539_v38 = vadd.f32 %v5157_v58, %v4206_v0  ;;  %v1372_v8 = vmax.f32 %v907_v16, 0.0  ;;  %v921_v0 = vadd.f32 %v5159_v43, %v4432_v51  ;;  %v5161_v58 = vld [vmem:[#allocation53_spill] sm:$0xff]  ;;  %v5162_v59 = vld [vmem:[#allocation56_spill] sm:$0xff] }
 0x22c   :  { %5154 = vst [vmem:[#allocation18_spill] sm:$0xff] %v4544_v28  ;;  %1912 = vmatprep.mubr.f32.mxu1 %v1545_v34  ;;  %v913_v28 = vadd.f32 %v5158_v20, %v4440_v52  ;;  %v1681_v34 = vld [vmem:[#allocation5 + $0x388] sm:$0xff]  ;;  %v919_v20 = vadd.f32 %v5161_v58, %v4440_v52 }
 0x22d   :  { %2248 = vmatmul.mubr.f32.gmra.mrb[76].mxu0 %v1364_v17  ;;  %v1381_v17 = vmax.f32 %v915_v42, 0.0  ;;  %v1561_v16 = vmax.f32 %v539_v38, 0.0  ;;  %v1682_v42 = vld [vmem:[#allocation5 + $0x390] sm:$0xff]  ;;  %v1389_v43 = vmax.f32 %v921_v0, 0.0  ;;  %v1560_v38 = vmax.f32 %v537_v57, 0.0  ;;  %v1684_v0 = vld [vmem:[#allocation5 + $0x3a0] sm:$0xff] }
 0x22e   :  { %2252 = vmatprep.mubr.f32.mxu0 %v1373_v61  ;;  %3010 = vmatpush1.bf16.msra.mxu0 %v3009_v39  ;;  %v4552_v23 = vpop.f32.mrb[144].mxu1  ;;  %v1552_v39 = vmax.f32 %v531_v46, 0.0  ;;  %v3015_v61 = vpack.c.bf16 %v1681_v34, %v1680_v29  ;;  %v1380_v32 = vmax.f32 %v913_v28, 0.0  ;;  %v1388_v29 = vmax.f32 %v919_v20, 0.0  ;;  %v5164_v34 = vld [vmem:[#allocation55_spill] sm:$0xff]  ;;  %v1685_v27 = vld [vmem:[#allocation5 + $0x3a8] sm:$0xff] }
 0x22f   :  { %1913 = vmatmul.mubr.f32.gmra.mrb[250].mxu1 %v1544_v37  ;;  %3011 = vmatprep.subr.bf16.mxu0 %v5095_v4  ;;  %v4557_v14 = vpop.f32.mrb[145].mxu1  ;;  %v5165_v57 = vld [vmem:[#allocation58_spill] sm:$0xff] }
 0x230   :  { %1917 = vmatprep.mubr.f32.mxu1 %v1553_v10  ;;  %v1683_v10 = vld [vmem:[#allocation5 + $0x398] sm:$0xff] }
 0x231   :  { %2253 = vmatmul.mubr.f32.gmra.mrb[78].mxu0 %v1372_v8  ;;  %v927_v8 = vadd.f32 %v5162_v59, %v4432_v51  ;;  %v3018_v28 = vpack.c.bf16 %v1683_v10, %v1682_v42  ;;  %v5167_v42 = vld [vmem:[#allocation57_spill] sm:$0xff] }
 0x232   :  { %2257 = vmatprep.mubr.f32.mxu0 %v1381_v17  ;;  %3013 = vmatpush1.bf16.msra.mxu0 %v3012_v44  ;;  %v4563_v37 = vpop.f32.mrb[146].mxu1  ;;  %v925_v17 = vadd.f32 %v5164_v34, %v4440_v52  ;;  %v931_v10 = vadd.f32 %v5167_v42, %v4440_v52  ;;  %v1686_v59 = vld [vmem:[#allocation5 + $0x3b0] sm:$0xff]  ;;  %v5168_v34 = vld [vmem:[#allocation60_spill] sm:$0xff]  ;;  %v1688_v42 = vld [vmem:[#allocation5 + $0x3c0] sm:$0xff] }
 0x233   :  { %1918 = vmatmul.mubr.f32.gmra.mrb[252].mxu1 %v1552_v39  ;;  %3014 = vmatprep.subr.bf16.mxu0 %v5095_v4  ;;  %v4568_v46 = vpop.f32.mrb[147].mxu1  ;;  %v1397_v58 = vmax.f32 %v927_v8, 0.0 }
 0x234   :  { %1922 = vmatprep.mubr.f32.mxu1 %v1561_v16  ;;  %v933_v16 = vadd.f32 %v5165_v57, %v4432_v51  ;;  %v1396_v20 = vmax.f32 %v925_v17, 0.0  ;;  %v939_v57 = vadd.f32 %v5168_v34, %v4432_v51  ;;  %v1404_v17 = vmax.f32 %v931_v10, 0.0 }
 0x235   :  { %2258 = vmatmul.mubr.f32.gmra.mrb[80].mxu0 %v1380_v32  ;;  %v3021_v32 = vpack.c.bf16 %v1685_v27, %v1684_v0  ;;  %v5170_v0 = vld [vmem:[#allocation59_spill] sm:$0xff] }
 0x236   :  { %2262 = vmatprep.mubr.f32.mxu0 %v1389_v43  ;;  %3016 = vmatpush1.bf16.msra.mxu0 %v3015_v61  ;;  %v4572_v44 = vpop.f32.mrb[148].mxu1  ;;  %v1405_v8 = vmax.f32 %v933_v16, 0.0  ;;  %v937_v27 = vadd.f32 %v5170_v0, %v4440_v52  ;;  %v1413_v16 = vmax.f32 %v939_v57, 0.0  ;;  %v1690_v0 = vld [vmem:[#allocation5 + $0x3d0] sm:$0xff] }
 0x237   :  { %5163 = vst [vmem:[#allocation16_spill] sm:$0xff] %v4572_v44  ;;  %1923 = vmatmul.mubr.f32.gmra.mrb[254].mxu1 %v1560_v38  ;;  %3017 = vmatprep.subr.bf16.mxu0 %v5095_v4  ;;  %v4577_v39 = vpop.f32.mrb[149].mxu1  ;;  %v1687_v38 = vld [vmem:[#allocation5 + $0x3b8] sm:$0xff] }
 0x238   :  { %v5172_v44 = vld [vmem:[#allocation62_spill] sm:$0xff]  ;;  %v1412_v10 = vmax.f32 %v937_v27, 0.0  ;;  %v5178_v27 = vld [vmem:[#allocation63_spill] sm:$0xff] }
 0x239   :  { %2263 = vmatmul.mubr.f32.gmra.mrb[82].mxu0 %v1388_v29  ;;  %v3024_v29 = vpack.c.bf16 %v1687_v38, %v1686_v59  ;;  %v945_v34 = vadd.f32 %v5172_v44, %v4432_v51  ;;  %v5174_v59 = vld [vmem:[#allocation61_spill] sm:$0xff] }
 0x23a   :  { %2267 = vmatprep.mubr.f32.mxu0 %v1397_v58  ;;  %3019 = vmatpush1.bf16.msra.mxu0 %v3018_v28  ;;  %v4581_v61 = vpop.f32.mrb[150].mxu1  ;;  %v943_v38 = vadd.f32 %v5174_v59, %v4440_v52  ;;  %v1692_v59 = vld [vmem:[#allocation5 + $0x3e0] sm:$0xff] }
 0x23b   :  { %5166 = vst [vmem:[#allocation20_spill] sm:$0xff] %v4581_v61  ;;  %v4585_v43 = vpop.f32.mrb[151].mxu1  ;;  %3020 = vmatprep.subr.bf16.mxu0 %v5095_v4  ;;  %v1689_v61 = vld [vmem:[#allocation5 + $0x3c8] sm:$0xff]  ;;  %v1421_v57 = vmax.f32 %v945_v34, 0.0 }
 0x23d   :  { %2268 = vmatmul.mubr.f32.gmra.mrb[84].mxu0 %v1396_v20 }
 0x23e   :  { %2272 = vmatprep.mubr.f32.mxu0 %v1405_v8  ;;  %v4590_v28 = vpop.f32.mrb[152].mxu1  ;;  %3022 = vmatpush1.bf16.msra.mxu0 %v3021_v32  ;;  %v3027_v32 = vpack.c.bf16 %v1689_v61, %v1688_v42  ;;  %v949_v42 = vadd.f32 %v5178_v27, %v4440_v52  ;;  %v1694_v27 = vld [vmem:[#allocation5 + $0x3f0] sm:$0xff] }
 0x23f   :  { %5169 = vst [vmem:[#allocation17_spill] sm:$0xff] %v4590_v28  ;;  %v4594_v58 = vpop.f32.mrb[153].mxu1  ;;  %3023 = vmatprep.subr.bf16.mxu0 %v5095_v4  ;;  %v1691_v28 = vld [vmem:[#allocation5 + $0x3d8] sm:$0xff] }
 0x240   :  { %5171 = vst [vmem:[#allocation22_spill] sm:$0xff] %v4594_v58  ;;  %v5176_v58 = vld [vmem:[#allocation64_spill] sm:$0xff]  ;;  %v3030_v61 = vpack.c.bf16 %v1691_v28, %v1690_v0 }
 0x241   :  { %2273 = vmatmul.mubr.f32.gmra.mrb[86].mxu0 %v1404_v17  ;;  %v951_v44 = vadd.f32 %v5176_v58, %v4432_v51 }
 0x242   :  { %2277 = vmatprep.mubr.f32.mxu0 %v1413_v16  ;;  %v4599_v20 = vpop.f32.mrb[154].mxu1  ;;  %3025 = vmatpush1.bf16.msra.mxu0 %v3024_v29  ;;  %v1420_v29 = vmax.f32 %v943_v38, 0.0  ;;  %v5182_v38 = vld [vmem:[#allocation65_spill] sm:$0xff] }
 0x243   :  { %5173 = vst [vmem:[#allocation19_spill] sm:$0xff] %v4599_v20  ;;  %v4603_v8 = vpop.f32.mrb[155].mxu1  ;;  %3026 = vmatprep.subr.bf16.mxu0 %v5095_v4  ;;  %v1693_v20 = vld [vmem:[#allocation5 + $0x3e8] sm:$0xff]  ;;  %v1429_v34 = vmax.f32 %v951_v44, 0.0  ;;  %v955_v0 = vadd.f32 %v5182_v38, %v4440_v52 }
 0x244   :  { %5175 = vst [vmem:[#allocation24_spill] sm:$0xff] %v4603_v8  ;;  %v5180_v8 = vld [vmem:[#allocation66_spill] sm:$0xff]  ;;  %v3033_v28 = vpack.c.bf16 %v1693_v20, %v1692_v59 }
 0x245   :  { %2278 = vmatmul.mubr.f32.gmra.mrb[88].mxu0 %v1412_v10  ;;  %v957_v58 = vadd.f32 %v5180_v8, %v4432_v51 }
 0x246   :  { %2282 = vmatprep.mubr.f32.mxu0 %v1421_v57  ;;  %v4608_v17 = vpop.f32.mrb[156].mxu1  ;;  %3028 = vmatpush1.bf16.msra.mxu0 %v3027_v32  ;;  %v1428_v32 = vmax.f32 %v949_v42, 0.0  ;;  %v5184_v42 = vld [vmem:[#allocation67_spill] sm:$0xff] }
 0x247   :  { %5177 = vst [vmem:[#allocation21_spill] sm:$0xff] %v4608_v17  ;;  %v4612_v16 = vpop.f32.mrb[157].mxu1  ;;  %3029 = vmatprep.subr.bf16.mxu0 %v5095_v4  ;;  %v1695_v17 = vld [vmem:[#allocation5 + $0x3f8] sm:$0xff]  ;;  %v1437_v44 = vmax.f32 %v957_v58, 0.0  ;;  %v961_v59 = vadd.f32 %v5184_v42, %v4440_v52 }
 0x248   :  { %5179 = vst [vmem:[#allocation26_spill] sm:$0xff] %v4612_v16  ;;  %v5183_v16 = vld [vmem:[#allocation68_spill] sm:$0xff]  ;;  %v3036_v20 = vpack.c.bf16 %v1695_v17, %v1694_v27  ;;  %v5185_v58 = vld [vmem:[#allocation70_spill] sm:$0xff]  ;;  %v5186_v17 = vld [vmem:[#allocation69_spill] sm:$0xff] }
 0x249   :  { %2283 = vmatmul.mubr.f32.gmra.mrb[90].mxu0 %v1420_v29  ;;  %v963_v8 = vadd.f32 %v5183_v16, %v4432_v51 }
 0x24a   :  { %2287 = vmatprep.mubr.f32.mxu0 %v1429_v34  ;;  %v4617_v10 = vpop.f32.mrb[158].mxu1  ;;  %3031 = vmatpush1.bf16.msra.mxu0 %v3030_v61  ;;  %v1436_v61 = vmax.f32 %v955_v0, 0.0 }
 0x24b   :  { %5181 = vst [vmem:[#allocation23_spill] sm:$0xff] %v4617_v10  ;;  %v4621_v57 = vpop.f32.mrb[159].mxu1  ;;  %3032 = vmatprep.subr.bf16.mxu0 %v5095_v4  ;;  %v1445_v38 = vmax.f32 %v963_v8, 0.0  ;;  %v969_v10 = vadd.f32 %v5185_v58, %v4432_v51 }
 0x24d   :  { %2288 = vmatmul.mubr.f32.gmra.mrb[92].mxu0 %v1428_v32  ;;  %v1444_v32 = vmax.f32 %v961_v59, 0.0  ;;  %v1453_v27 = vmax.f32 %v969_v10, 0.0  ;;  %v5189_v59 = vld [vmem:[#allocation73_spill] sm:$0xff] }
 0x24e   :  { %2292 = vmatprep.mubr.f32.mxu0 %v1437_v44  ;;  %v4626_v29 = vpop.f32.mrb[160].mxu1  ;;  %3034 = vmatpush1.bf16.msra.mxu0 %v3033_v28  ;;  %v967_v28 = vadd.f32 %v5186_v17, %v4440_v52  ;;  %v975_v44 = vadd.f32 %v4225_v2, %v4432_v51  ;;  %v981_v58 = vadd.f32 %v5189_v59, %v4432_v51  ;;  %v5190_v2 = vld [vmem:[#allocation72_spill] sm:$0xff] }
 0x24f   :  { %v4630_v34 = vpop.f32.mrb[161].mxu1  ;;  %3035 = vmatprep.subr.bf16.mxu0 %v5095_v4  ;;  %v993_v59 = vadd.f32 %v4267_v5, %v4432_v51  ;;  %v997_v5 = vadd.f32 %v4274_v12, %v4440_v52  ;;  %v1011_v12 = vadd.f32 %v4300_v53, %v4432_v51  ;;  %v1015_v53 = vadd.f32 %v4307_v63, %v4440_v52 }
 0x250   :  { %v1452_v8 = vmax.f32 %v967_v28, 0.0  ;;  %v1469_v28 = vmax.f32 %v981_v58, 0.0  ;;  %v1029_v63 = vadd.f32 %v4333_v33, %v4432_v51  ;;  %v1033_v33 = vadd.f32 %v4339_v50, %v4440_v52 }
 0x251   :  { %2293 = vmatmul.mubr.f32.gmra.mrb[94].mxu0 %v1436_v61  ;;  %v5188_v61 = vld [vmem:[#allocation71_spill] sm:$0xff]  ;;  %v1047_v50 = vadd.f32 %v4363_v41, %v4432_v51 }
 0x252   :  { %2297 = vmatprep.mubr.f32.mxu0 %v1445_v38  ;;  %v4635_v16 = vpop.f32.mrb[162].mxu1  ;;  %3037 = vmatpush1.bf16.msra.mxu0 %v3036_v20  ;;  %v973_v42 = vadd.f32 %v5188_v61, %v4440_v52  ;;  %v1461_v20 = vmax.f32 %v975_v44, 0.0  ;;  %v987_v61 = vadd.f32 %v4256_v55, %v4432_v51  ;;  %v991_v55 = vadd.f32 %v4263_v1, %v4440_v52 }
 0x253   :  { %v4639_v0 = vpop.f32.mrb[163].mxu1  ;;  %v1005_v1 = vadd.f32 %v4289_v25, %v4432_v51  ;;  %v1009_v25 = vadd.f32 %v4296_v54, %v4440_v52  ;;  %v1023_v54 = vadd.f32 %v4322_v56, %v4432_v51  ;;  %v1027_v56 = vadd.f32 %v4329_v21, %v4440_v52 }
 0x254   :  { %v1460_v17 = vmax.f32 %v973_v42, 0.0  ;;  %v1477_v42 = vmax.f32 %v987_v61, 0.0  ;;  %v1484_v61 = vmax.f32 %v991_v55, 0.0  ;;  %v1041_v21 = vadd.f32 %v4353_v36, %v4432_v51 }
 0x255   :  { %2298 = vmatmul.mubr.f32.gmra.mrb[96].mxu0 %v1444_v32  ;;  %v979_v32 = vadd.f32 %v5190_v2, %v4440_v52  ;;  %v1501_v55 = vmax.f32 %v1005_v1, 0.0  ;;  %v1508_v1 = vmax.f32 %v1009_v25, 0.0  ;;  %v1525_v25 = vmax.f32 %v1023_v54, 0.0 }
 0x256   :  { %2302 = vmatprep.mubr.f32.mxu0 %v1453_v27  ;;  %v4643_v4 = vpop.f32.mrb[164].mxu1  ;;  %v1532_v54 = vmax.f32 %v1027_v56, 0.0 }
 0x257   :  { %5187 = vst [vmem:[#allocation28_spill] sm:$0xff] %v4643_v4  ;;  %v4647_v38 = vpop.f32.mrb[165].mxu1  ;;  %v1468_v4 = vmax.f32 %v979_v32, 0.0  ;;  %v1485_v32 = vmax.f32 %v993_v59, 0.0  ;;  %v1492_v59 = vmax.f32 %v997_v5, 0.0  ;;  %v1509_v5 = vmax.f32 %v1011_v12, 0.0 }
 0x258   :  { %v1516_v12 = vmax.f32 %v1015_v53, 0.0  ;;  %v1533_v53 = vmax.f32 %v1029_v63, 0.0 }
 0x259   :  { %2303 = vmatmul.mubr.f32.gmra.mrb[98].mxu0 %v1452_v8  ;;  %v985_v8 = vadd.f32 %v4252_v3, %v4440_v52  ;;  %v999_v3 = vadd.f32 %v4278_v18, %v4432_v51  ;;  %v1003_v18 = vadd.f32 %v4285_v62, %v4440_v52  ;;  %v1017_v62 = vadd.f32 %v4311_v60, %v4432_v51 }
 0x25a   :  { %2307 = vmatprep.mubr.f32.mxu0 %v1461_v20  ;;  %v4651_v10 = vpop.f32.mrb[166].mxu1  ;;  %v1021_v60 = vadd.f32 %v4318_v15, %v4440_v52  ;;  %v1035_v15 = vadd.f32 %v4343_v24, %v4432_v51  ;;  %v1540_v24 = vmax.f32 %v1033_v33, 0.0  ;;  %v1045_v33 = vadd.f32 %v4359_v6, %v4440_v52 }
 0x25b   :  { %v4655_v27 = vpop.f32.mrb[167].mxu1  ;;  %v1476_v2 = vmax.f32 %v985_v8, 0.0  ;;  %v1493_v8 = vmax.f32 %v999_v3, 0.0  ;;  %v1500_v3 = vmax.f32 %v1003_v18, 0.0  ;;  %v1517_v18 = vmax.f32 %v1017_v62, 0.0 }
 0x25c   :  { %v1524_v62 = vmax.f32 %v1021_v60, 0.0  ;;  %v1541_v60 = vmax.f32 %v1035_v15, 0.0  ;;  %v1051_v6 = vadd.f32 %v4371_v19, %v4440_v52 }
 0x25d   :  { %2308 = vmatmul.mubr.f32.gmra.mrb[100].mxu0 %v1460_v17 }
 0x25e   :  { %2312 = vmatprep.mubr.f32.mxu0 %v1469_v28  ;;  %v4659_v44 = vpop.f32.mrb[168].mxu1 }
 0x25f   :  { %v4663_v20 = vpop.f32.mrb[169].mxu1 }
 0x261   :  { %2313 = vmatmul.mubr.f32.gmra.mrb[102].mxu0 %v1468_v4 }
 0x262   :  { %2317 = vmatprep.mubr.f32.mxu0 %v1477_v42  ;;  %v4667_v58 = vpop.f32.mrb[170].mxu1 }
 0x263   :  { %v4671_v17 = vpop.f32.mrb[171].mxu1 }
 0x265   :  { %2318 = vmatmul.mubr.f32.gmra.mrb[104].mxu0 %v1476_v2 }
 0x266   :  { %2322 = vmatprep.mubr.f32.mxu0 %v1485_v32  ;;  %v4675_v28 = vpop.f32.mrb[172].mxu1 }
 0x267   :  { %v4679_v4 = vpop.f32.mrb[173].mxu1 }
 0x269   :  { %2323 = vmatmul.mubr.f32.gmra.mrb[106].mxu0 %v1484_v61 }
 0x26a   :  { %2327 = vmatprep.mubr.f32.mxu0 %v1493_v8  ;;  %v4683_v42 = vpop.f32.mrb[174].mxu1 }
 0x26b   :  { %v4687_v2 = vpop.f32.mrb[175].mxu1 }
 0x26d   :  { %2328 = vmatmul.mubr.f32.gmra.mrb[108].mxu0 %v1492_v59 }
 0x26e   :  { %2332 = vmatprep.mubr.f32.mxu0 %v1501_v55  ;;  %v4691_v32 = vpop.f32.mrb[176].mxu1 }
 0x26f   :  { %v4695_v61 = vpop.f32.mrb[177].mxu1 }
 0x271   :  { %2333 = vmatmul.mubr.f32.gmra.mrb[110].mxu0 %v1500_v3 }
 0x272   :  { %2337 = vmatprep.mubr.f32.mxu0 %v1509_v5  ;;  %v4699_v8 = vpop.f32.mrb[178].mxu1 }
 0x273   :  { %v4703_v59 = vpop.f32.mrb[179].mxu1 }
 0x275   :  { %2338 = vmatmul.mubr.f32.gmra.mrb[112].mxu0 %v1508_v1 }
 0x276   :  { %2342 = vmatprep.mubr.f32.mxu0 %v1517_v18  ;;  %v4707_v55 = vpop.f32.mrb[180].mxu1 }
 0x277   :  { %v4711_v3 = vpop.f32.mrb[181].mxu1 }
 0x279   :  { %2343 = vmatmul.mubr.f32.gmra.mrb[114].mxu0 %v1516_v12 }
 0x27a   :  { %2347 = vmatprep.mubr.f32.mxu0 %v1525_v25  ;;  %v4715_v5 = vpop.f32.mrb[182].mxu1  ;;  %v177_v25 = vsub.s32 7, %v4076_v35 }
 0x27b   :  { %v4719_v1 = vpop.f32.mrb[183].mxu1 }
 0x27c   :  { %v4741_v15 = vrot.slane %v4429_v45, %v177_v25 }
 0x27d   :  { %2348 = vmatmul.mubr.f32.gmra.mrb[116].mxu0 %v1524_v62  ;;  %v1039_v62 = vadd.f32 %v4349_v13, %v4440_v52 }
 0x27e   :  { %2352 = vmatprep.mubr.f32.mxu0 %v1533_v53  ;;  %v4723_v18 = vpop.f32.mrb[184].mxu1  ;;  %v1549_v53 = vmax.f32 %v1041_v21, 0.0  ;;  %v1053_v21 = vadd.f32 %v4374_v30, %v4432_v51  ;;  %v1124_v41 = vadd.f32 %v4454_v22, %v4741_v15  ;;  %v1130_v30 = vadd.f32 %v4466_v7, %v4741_v15 }
 0x27f   :  { %v4727_v12 = vpop.f32.mrb[185].mxu1  ;;  %v1136_v19 = vadd.f32 %v4479_v48, %v4741_v15 }
 0x281   :  { %2353 = vmatmul.mubr.f32.gmra.mrb[118].mxu0 %v1532_v54  ;;  %v173_v54 = vsub.s32 6, %v4076_v35  ;;  %v1556_v35 = vmax.f32 %v1045_v33, 0.0 }
 0x282   :  { %2357 = vmatprep.mubr.f32.mxu0 %v1541_v60  ;;  %v4732_v63 = vpop.f32.mrb[186].mxu1  ;;  %v1548_v60 = vmax.f32 %v1039_v62, 0.0 }
 0x283   :  { %5191 = vst [vmem:[#allocation25_spill] sm:$0xff] %v4732_v63  ;;  %v4736_v56 = vpop.f32.mrb[187].mxu1  ;;  %v1557_v63 = vmax.f32 %v1047_v50, 0.0  ;;  %v1319_v50 = vmax.f32 %v1124_v41, 0.0 }
 0x285   :  { %2358 = vmatmul.mubr.f32.gmra.mrb[120].mxu0 %v1540_v24  ;;  %v4757_v24 = vrot.slane %v4429_v45, %v173_v54  ;;  %v1564_v45 = vmax.f32 %v1051_v6, 0.0  ;;  %v1327_v54 = vmax.f32 %v1130_v30, 0.0 }
 0x286   :  { %2362 = vmatprep.mubr.f32.mxu0 %v1549_v53  ;;  %v4743_v36 = vpop.f32.mrb[188].mxu1  ;;  %v1565_v53 = vmax.f32 %v1053_v21, 0.0  ;;  %v1335_v21 = vmax.f32 %v1136_v19, 0.0  ;;  %v5192_v19 = vld [vmem:[#allocation11_spill] sm:$0xff] }
 0x287   :  { %v4748_v13 = vpop.f32.mrb[189].mxu1  ;;  %v1122_v22 = vadd.f32 %v4450_v11, %v4757_v24  ;;  %v1128_v7 = vadd.f32 %v4462_v9, %v4757_v24  ;;  %v1142_v11 = vadd.f32 %v4492_v49, %v4741_v15  ;;  %v1134_v48 = vadd.f32 %v4474_v26, %v4757_v24 }
 0x288   :  { %v1140_v49 = vadd.f32 %v4487_v40, %v4757_v24 }
 0x289   :  { %2363 = vmatmul.mubr.f32.gmra.mrb[122].mxu0 %v1548_v60  ;;  %v1318_v60 = vmax.f32 %v1122_v22, 0.0  ;;  %v1334_v30 = vmax.f32 %v1134_v48, 0.0 }
 0x28a   :  { %2367 = vmatprep.mubr.f32.mxu0 %v1557_v63  ;;  %v4754_v25 = vpop.f32.mrb[190].mxu1 }
 0x28b   :  { %v4761_v62 = vpop.f32.mrb[191].mxu1 }
 0x28d   :  { %2368 = vmatmul.mubr.f32.gmra.mrb[124].mxu0 %v1556_v35  ;;  %v1326_v35 = vmax.f32 %v1128_v7, 0.0 }
 0x28e   :  { %v4765_v51 = vpop.f32.mrb[192].mxu1  ;;  %2372 = vmatprep.mubr.f32.mxu0 %v1565_v53  ;;  %v1343_v53 = vmax.f32 %v1142_v11, 0.0 }
 0x28f   :  { %v1771_v63 = vpop.f32.mrb[193].mxu1 }
 0x290   :  { %v1154_v63 = vadd.f32 %v4518_v31, %v4741_v15 }
 0x291   :  { %2373 = vmatmul.mubr.f32.gmra.mrb[126].mxu0 %v1564_v45 }
 0x292   :  { %v4771_v52 = vpop.f32.mrb[194].mxu1  ;;  %2442 = vmatprep.mubr.f32.mxu0 %v1319_v50  ;;  %v1148_v50 = vadd.f32 %v4505_v47, %v4741_v15  ;;  %v1146_v47 = vadd.f32 %v5192_v19, %v4757_v24  ;;  %v1359_v7 = vmax.f32 %v1154_v63, 0.0  ;;  %v1172_v19 = vadd.f32 %v4557_v14, %v4741_v15 }
 0x293   :  { %v1776_v33 = vpop.f32.mrb[195].mxu1  ;;  %v1170_v14 = vadd.f32 %v4552_v23, %v4757_v24 }
 0x294   :  { %v1351_v45 = vmax.f32 %v1148_v50, 0.0  ;;  %v5193_v33 = vld [vmem:[#allocation15_spill] sm:$0xff]  ;;  %v1350_v11 = vmax.f32 %v1146_v47, 0.0 }
 0x295   :  { %2443 = vmatmul.mubr.f32.vlgmr.msra.gmra.mrb[64].mxu0 %v1318_v60 }
 0x296   :  { %v4777_v41 = vpop.f32.mrb[196].mxu1  ;;  %2447 = vmatprep.mubr.f32.mxu0 %v1327_v54  ;;  %v1342_v54 = vmax.f32 %v1140_v49, 0.0 }
 0x297   :  { %v1781_v6 = vpop.f32.mrb[197].mxu1 }
 0x299   :  { %2448 = vmatmul.mubr.f32.gmra.mrb[66].mxu0 %v1326_v35  ;;  %v5194_v35 = vld [vmem:[#allocation12_spill] sm:$0xff] }
 0x29a   :  { %v4783_v9 = vpop.f32.mrb[198].mxu1  ;;  %2452 = vmatprep.mubr.f32.mxu0 %v1335_v21  ;;  %v1160_v21 = vadd.f32 %v5193_v33, %v4741_v15  ;;  %v1152_v31 = vadd.f32 %v5194_v35, %v4757_v24  ;;  %v5197_v33 = vld [vmem:[#allocation14_spill] sm:$0xff]  ;;  %v1178_v35 = vadd.f32 %v4568_v46, %v4741_v15  ;;  %v1176_v46 = vadd.f32 %v4563_v37, %v4757_v24 }
 0x29b   :  { %v1786_v22 = vpop.f32.mrb[199].mxu1 }
 0x29c   :  { %v1367_v6 = vmax.f32 %v1160_v21, 0.0  ;;  %v1358_v49 = vmax.f32 %v1152_v31, 0.0  ;;  %v5196_v22 = vld [vmem:[#allocation13_spill] sm:$0xff]  ;;  %v1164_v21 = vadd.f32 %v5197_v33, %v4757_v24 }
 0x29d   :  { %2453 = vmatmul.mubr.f32.gmra.mrb[68].mxu0 %v1334_v30  ;;  %v1158_v63 = vadd.f32 %v5196_v22, %v4757_v24  ;;  %v1382_v22 = vmax.f32 %v1170_v14, 0.0 }
 0x29e   :  { %v4789_v26 = vpop.f32.mrb[200].mxu1  ;;  %2457 = vmatprep.mubr.f32.mxu0 %v1343_v53  ;;  %v5195_v53 = vld [vmem:[#allocation18_spill] sm:$0xff] }
 0x29f   :  { %v1791_v60 = vpop.f32.mrb[201].mxu1  ;;  %v1166_v50 = vadd.f32 %v5195_v53, %v4741_v15 }
 0x2a0   :  { %v1366_v60 = vmax.f32 %v1158_v63, 0.0 }
 0x2a1   :  { %2458 = vmatmul.mubr.f32.gmra.mrb[70].mxu0 %v1342_v54 }
 0x2a2   :  { %v4795_v40 = vpop.f32.mrb[202].mxu1  ;;  %2462 = vmatprep.mubr.f32.mxu0 %v1351_v45  ;;  %v1375_v45 = vmax.f32 %v1166_v50, 0.0  ;;  %v1184_v50 = vadd.f32 %v4577_v39, %v4741_v15 }
 0x2a3   :  { %v1796_v48 = vpop.f32.mrb[203].mxu1 }
 0x2a4   :  { %v1374_v48 = vmax.f32 %v1164_v21, 0.0 }
 0x2a5   :  { %2463 = vmatmul.mubr.f32.gmra.mrb[72].mxu0 %v1350_v11 }
 0x2a6   :  { %v4801_v30 = vpop.f32.mrb[204].mxu1  ;;  %2467 = vmatprep.mubr.f32.mxu0 %v1359_v7  ;;  %v1383_v7 = vmax.f32 %v1172_v19, 0.0  ;;  %v1390_v19 = vmax.f32 %v1176_v46, 0.0 }
 0x2a7   :  { %v1801_v54 = vpop.f32.mrb[205].mxu1 }
 0x2a8   :  { %v1399_v54 = vmax.f32 %v1184_v50, 0.0 }
 0x2a9   :  { %2468 = vmatmul.mubr.f32.gmra.mrb[74].mxu0 %v1358_v49 }
 0x2aa   :  { %v4807_v47 = vpop.f32.mrb[206].mxu1  ;;  %2472 = vmatprep.mubr.f32.mxu0 %v1367_v6  ;;  %v1391_v6 = vmax.f32 %v1178_v35, 0.0 }
 0x2ab   :  { %v1806_v11 = vpop.f32.mrb[207].mxu1 }
 0x2ac   :  { %v5199_v11 = vld [vmem:[#allocation22_spill] sm:$0xff] }
 0x2ad   :  { %2473 = vmatmul.mubr.f32.gmra.mrb[76].mxu0 %v1366_v60  ;;  %v5198_v60 = vld [vmem:[#allocation16_spill] sm:$0xff] }
 0x2ae   :  { %v4813_v31 = vpop.f32.mrb[208].mxu1  ;;  %2477 = vmatprep.mubr.f32.mxu0 %v1375_v45  ;;  %v1190_v45 = vadd.f32 %v4585_v43, %v4741_v15  ;;  %v1182_v39 = vadd.f32 %v5198_v60, %v4757_v24  ;;  %v5203_v60 = vld [vmem:[#allocation26_spill] sm:$0xff] }
 0x2af   :  { %v1811_v53 = vpop.f32.mrb[209].mxu1 }
 0x2b0   :  { %v1407_v21 = vmax.f32 %v1190_v45, 0.0  ;;  %v1398_v35 = vmax.f32 %v1182_v39, 0.0  ;;  %v1208_v39 = vadd.f32 %v5203_v60, %v4741_v15 }
 0x2b1   :  { %2478 = vmatmul.mubr.f32.gmra.mrb[78].mxu0 %v1374_v48  ;;  %v5200_v48 = vld [vmem:[#allocation20_spill] sm:$0xff] }
 0x2b2   :  { %v4819_v49 = vpop.f32.mrb[210].mxu1  ;;  %2482 = vmatprep.mubr.f32.mxu0 %v1383_v7  ;;  %v1196_v7 = vadd.f32 %v5199_v11, %v4741_v15  ;;  %v1188_v43 = vadd.f32 %v5200_v48, %v4757_v24 }
 0x2b3   :  { %v1816_v63 = vpop.f32.mrb[211].mxu1 }
 0x2b4   :  { %v1415_v53 = vmax.f32 %v1196_v7, 0.0  ;;  %v1406_v46 = vmax.f32 %v1188_v43, 0.0  ;;  %v5202_v63 = vld [vmem:[#allocation17_spill] sm:$0xff]  ;;  %v5204_v7 = vld [vmem:[#allocation19_spill] sm:$0xff]  ;;  %v1214_v43 = vadd.f32 %v4621_v57, %v4741_v15 }
 0x2b5   :  { %2483 = vmatmul.mubr.f32.gmra.mrb[80].mxu0 %v1382_v22  ;;  %v1194_v45 = vadd.f32 %v5202_v63, %v4757_v24 }
 0x2b6   :  { %v4825_v23 = vpop.f32.mrb[212].mxu1  ;;  %2487 = vmatprep.mubr.f32.mxu0 %v1391_v6  ;;  %v5201_v6 = vld [vmem:[#allocation24_spill] sm:$0xff] }
 0x2b7   :  { %v1821_v33 = vpop.f32.mrb[213].mxu1  ;;  %v1202_v50 = vadd.f32 %v5201_v6, %v4741_v15  ;;  %v1414_v11 = vmax.f32 %v1194_v45, 0.0  ;;  %v1220_v45 = vadd.f32 %v4630_v34, %v4741_v15  ;;  %v1218_v34 = vadd.f32 %v4626_v29, %v4757_v24 }
 0x2b9   :  { %2488 = vmatmul.mubr.f32.gmra.mrb[82].mxu0 %v1390_v19 }
 0x2ba   :  { %v4831_v37 = vpop.f32.mrb[214].mxu1  ;;  %2492 = vmatprep.mubr.f32.mxu0 %v1399_v54  ;;  %v1423_v54 = vmax.f32 %v1202_v50, 0.0  ;;  %v5205_v50 = vld [vmem:[#allocation21_spill] sm:$0xff] }
 0x2bb   :  { %v1826_v14 = vpop.f32.mrb[215].mxu1 }
 0x2bd   :  { %2493 = vmatmul.mubr.f32.gmra.mrb[84].mxu0 %v1398_v35  ;;  %v1200_v35 = vadd.f32 %v5204_v7, %v4757_v24  ;;  %v1226_v7 = vadd.f32 %v4639_v0, %v4741_v15  ;;  %v1224_v0 = vadd.f32 %v4635_v16, %v4757_v24 }
 0x2be   :  { %v4837_v22 = vpop.f32.mrb[216].mxu1  ;;  %2497 = vmatprep.mubr.f32.mxu0 %v1407_v21  ;;  %v1431_v21 = vmax.f32 %v1208_v39, 0.0  ;;  %v5206_v39 = vld [vmem:[#allocation23_spill] sm:$0xff] }
 0x2bf   :  { %v1831_v19 = vpop.f32.mrb[217].mxu1  ;;  %v1422_v6 = vmax.f32 %v1200_v35, 0.0  ;;  %v1212_v57 = vadd.f32 %v5206_v39, %v4757_v24  ;;  %v5207_v39 = vld [vmem:[#allocation28_spill] sm:$0xff] }
 0x2c1   :  { %2498 = vmatmul.mubr.f32.gmra.mrb[86].mxu0 %v1406_v46  ;;  %v1206_v46 = vadd.f32 %v5205_v50, %v4757_v24 }
 0x2c2   :  { %v4843_v33 = vpop.f32.mrb[218].mxu1  ;;  %2502 = vmatprep.mubr.f32.mxu0 %v1415_v53  ;;  %v1439_v53 = vmax.f32 %v1214_v43, 0.0 }
 0x2c3   :  { %v1836_v48 = vpop.f32.mrb[219].mxu1  ;;  %v1430_v60 = vmax.f32 %v1206_v46, 0.0  ;;  %v1446_v46 = vmax.f32 %v1218_v34, 0.0 }
 0x2c4   :  { %v1438_v48 = vmax.f32 %v1212_v57, 0.0 }
 0x2c5   :  { %2503 = vmatmul.mubr.f32.gmra.mrb[88].mxu0 %v1414_v11 }
 0x2c6   :  { %v4849_v14 = vpop.f32.mrb[220].mxu1  ;;  %2507 = vmatprep.mubr.f32.mxu0 %v1423_v54  ;;  %v1447_v54 = vmax.f32 %v1220_v45, 0.0  ;;  %v1238_v45 = vadd.f32 %v4655_v27, %v4741_v15  ;;  %v1236_v27 = vadd.f32 %v4651_v10, %v4757_v24 }
 0x2c7   :  { %v1841_v63 = vpop.f32.mrb[221].mxu1 }
 0x2c9   :  { %2508 = vmatmul.mubr.f32.gmra.mrb[90].mxu0 %v1422_v6  ;;  %v1232_v6 = vadd.f32 %v4647_v38, %v4741_v15  ;;  %v1230_v38 = vadd.f32 %v5207_v39, %v4757_v24  ;;  %v1262_v39 = vadd.f32 %v4687_v2, %v4741_v15  ;;  %v1260_v2 = vadd.f32 %v4683_v42, %v4757_v24 }
 0x2ca   :  { %v4855_v19 = vpop.f32.mrb[222].mxu1  ;;  %2512 = vmatprep.mubr.f32.mxu0 %v1431_v21  ;;  %v1455_v21 = vmax.f32 %v1226_v7, 0.0 }
 0x2cb   :  { %v1846_v11 = vpop.f32.mrb[223].mxu1  ;;  %v1462_v7 = vmax.f32 %v1230_v38, 0.0 }
 0x2cc   :  { %v1471_v11 = vmax.f32 %v1238_v45, 0.0 }
 0x2cd   :  { %2513 = vmatmul.mubr.f32.gmra.mrb[92].mxu0 %v1430_v60  ;;  %v1454_v60 = vmax.f32 %v1224_v0, 0.0 }
 0x2ce   :  { %v4861_v35 = vpop.f32.mrb[224].mxu1  ;;  %2517 = vmatprep.mubr.f32.mxu0 %v1439_v53  ;;  %v1463_v53 = vmax.f32 %v1232_v6, 0.0  ;;  %v1470_v6 = vmax.f32 %v1236_v27, 0.0 }
 0x2cf   :  { %v1851_v43 = vpop.f32.mrb[225].mxu1 }
 0x2d0   :  { %v1250_v43 = vadd.f32 %v4671_v17, %v4741_v15  ;;  %v1248_v17 = vadd.f32 %v4667_v58, %v4757_v24 }
 0x2d1   :  { %2518 = vmatmul.mubr.f32.gmra.mrb[94].mxu0 %v1438_v48 }
 0x2d2   :  { %v4867_v50 = vpop.f32.mrb[226].mxu1  ;;  %2522 = vmatprep.mubr.f32.mxu0 %v1447_v54  ;;  %v1244_v54 = vadd.f32 %v4663_v20, %v4741_v15  ;;  %v1242_v20 = vadd.f32 %v4659_v44, %v4757_v24  ;;  %v1487_v0 = vmax.f32 %v1250_v43, 0.0  ;;  %v1486_v38 = vmax.f32 %v1248_v17, 0.0 }
 0x2d3   :  { %v1856_v63 = vpop.f32.mrb[227].mxu1  ;;  %v1502_v43 = vmax.f32 %v1260_v2, 0.0  ;;  %v1286_v17 = vadd.f32 %v4719_v1, %v4741_v15  ;;  %v1284_v1 = vadd.f32 %v4715_v5, %v4757_v24 }
 0x2d4   :  { %v1479_v34 = vmax.f32 %v1244_v54, 0.0  ;;  %v1256_v63 = vadd.f32 %v4679_v4, %v4741_v15  ;;  %v1254_v4 = vadd.f32 %v4675_v28, %v4757_v24  ;;  %v1268_v54 = vadd.f32 %v4695_v61, %v4741_v15 }
 0x2d5   :  { %2523 = vmatmul.mubr.f32.gmra.mrb[96].mxu0 %v1446_v46  ;;  %v1266_v61 = vadd.f32 %v4691_v32, %v4757_v24 }
 0x2d6   :  { %v4873_v29 = vpop.f32.mrb[228].mxu1  ;;  %2527 = vmatprep.mubr.f32.mxu0 %v1455_v21 }
 0x2d7   :  { %v1861_v57 = vpop.f32.mrb[229].mxu1 }
 0x2d9   :  { %2528 = vmatmul.mubr.f32.gmra.mrb[98].mxu0 %v1454_v60  ;;  %v1495_v60 = vmax.f32 %v1256_v63, 0.0 }
 0x2da   :  { %v4879_v16 = vpop.f32.mrb[230].mxu1  ;;  %2532 = vmatprep.mubr.f32.mxu0 %v1463_v53  ;;  %v1478_v53 = vmax.f32 %v1242_v20, 0.0 }
 0x2db   :  { %v1866_v48 = vpop.f32.mrb[231].mxu1 }
 0x2dc   :  { %v1511_v48 = vmax.f32 %v1268_v54, 0.0  ;;  %v1298_v54 = vadd.f32 %v4736_v56, %v4741_v15 }
 0x2dd   :  { %2533 = vmatmul.mubr.f32.gmra.mrb[100].mxu0 %v1462_v7  ;;  %v1494_v7 = vmax.f32 %v1254_v4, 0.0 }
 0x2de   :  { %v4885_v21 = vpop.f32.mrb[232].mxu1  ;;  %2537 = vmatprep.mubr.f32.mxu0 %v1471_v11  ;;  %v1503_v11 = vmax.f32 %v1262_v39, 0.0  ;;  %v1535_v39 = vmax.f32 %v1286_v17, 0.0  ;;  %v1308_v17 = vadd.f32 %v4754_v25, %v4757_v24 }
 0x2df   :  { %v1871_v46 = vpop.f32.mrb[233].mxu1 }
 0x2e0   :  { %v1280_v46 = vadd.f32 %v4711_v3, %v4741_v15  ;;  %v1278_v3 = vadd.f32 %v4707_v55, %v4757_v24 }
 0x2e1   :  { %2538 = vmatmul.mubr.f32.gmra.mrb[102].mxu0 %v1470_v6 }
 0x2e2   :  { %v4891_v10 = vpop.f32.mrb[234].mxu1  ;;  %2542 = vmatprep.mubr.f32.mxu0 %v1479_v34  ;;  %v1274_v34 = vadd.f32 %v4703_v59, %v4741_v15  ;;  %v1272_v59 = vadd.f32 %v4699_v8, %v4757_v24  ;;  %v1526_v4 = vmax.f32 %v1278_v3, 0.0 }
 0x2e3   :  { %v1876_v45 = vpop.f32.mrb[235].mxu1 }
 0x2e4   :  { %v1519_v20 = vmax.f32 %v1274_v34, 0.0  ;;  %v1518_v45 = vmax.f32 %v1272_v59, 0.0 }
 0x2e5   :  { %2543 = vmatmul.mubr.f32.gmra.mrb[104].mxu0 %v1478_v53  ;;  %v1527_v53 = vmax.f32 %v1280_v46, 0.0 }
 0x2e6   :  { %v4897_v44 = vpop.f32.mrb[236].mxu1  ;;  %2547 = vmatprep.mubr.f32.mxu0 %v1487_v0  ;;  %v1510_v0 = vmax.f32 %v1266_v61, 0.0 }
 0x2e7   :  { %v1881_v57 = vpop.f32.mrb[237].mxu1 }
 0x2e9   :  { %2548 = vmatmul.mubr.f32.gmra.mrb[106].mxu0 %v1486_v38  ;;  %v1292_v38 = vadd.f32 %v4727_v12, %v4741_v15  ;;  %v1290_v12 = vadd.f32 %v4723_v18, %v4757_v24 }
 0x2ea   :  { %v4903_v58 = vpop.f32.mrb[238].mxu1  ;;  %2552 = vmatprep.mubr.f32.mxu0 %v1495_v60 }
 0x2eb   :  { %v1886_v27 = vpop.f32.mrb[239].mxu1  ;;  %v1542_v34 = vmax.f32 %v1290_v12, 0.0 }
 0x2ec   :  { %v1551_v27 = vmax.f32 %v1298_v54, 0.0 }
 0x2ed   :  { %2553 = vmatmul.mubr.f32.gmra.mrb[108].mxu0 %v1494_v7  ;;  %v1534_v7 = vmax.f32 %v1284_v1, 0.0 }
 0x2ee   :  { %v4909_v28 = vpop.f32.mrb[240].mxu1  ;;  %2557 = vmatprep.mubr.f32.mxu0 %v1503_v11  ;;  %v1543_v11 = vmax.f32 %v1292_v38, 0.0 }
 0x2ef   :  { %v1891_v6 = vpop.f32.mrb[241].mxu1 }
 0x2f1   :  { %2558 = vmatmul.mubr.f32.gmra.mrb[110].mxu0 %v1502_v43  ;;  %v5208_v43 = vld [vmem:[#allocation25_spill] sm:$0xff] }
 0x2f2   :  { %v4915_v42 = vpop.f32.mrb[242].mxu1  ;;  %2562 = vmatprep.mubr.f32.mxu0 %v1511_v48  ;;  %v1304_v48 = vadd.f32 %v4748_v13, %v4741_v15  ;;  %v1296_v56 = vadd.f32 %v5208_v43, %v4757_v24  ;;  %v1302_v13 = vadd.f32 %v4743_v36, %v4757_v24 }
 0x2f3   :  { %v1896_v63 = vpop.f32.mrb[243].mxu1 }
 0x2f4   :  { %v1559_v6 = vmax.f32 %v1304_v48, 0.0  ;;  %v1550_v46 = vmax.f32 %v1296_v56, 0.0 }
 0x2f5   :  { %2563 = vmatmul.mubr.f32.gmra.mrb[112].mxu0 %v1510_v0 }
 0x2f6   :  { %v4921_v32 = vpop.f32.mrb[244].mxu1  ;;  %2567 = vmatprep.mubr.f32.mxu0 %v1519_v20  ;;  %v1310_v20 = vadd.f32 %v4761_v62, %v4741_v15  ;;  %v1566_v15 = vmax.f32 %v1308_v17, 0.0  ;;  %v4956_v62 = vld [vmem:[%s5041_s4] ss:$0 sm:$0xff]  ;;  %s3329_s4 = smov [#allocation7]  }
 0x2f7   :  { %v1901_v60 = vpop.f32.mrb[245].mxu1  ;;  %v1770_v36 = vadd.f32 %v4956_v62, %v4765_v51  ;;  %v1775_v38 = vadd.f32 %v4956_v62, %v4771_v52  ;;  %v1780_v1 = vadd.f32 %v4956_v62, %v4777_v41  ;;  %v1785_v51 = vadd.f32 %v4956_v62, %v4783_v9  ;;  %s2640_s30 = sshll.u32 %s3329_s4, 4  ;;  %s2641_s30 = int_to_ptr.vmem [resolvable:$true] %s2640_s30 }
 0x2f8   :  { %v1567_v59 = vmax.f32 %v1310_v20, 0.0  ;;  %v1790_v52 = vadd.f32 %v4956_v62, %v4789_v26  ;;  %v1795_v41 = vadd.f32 %v4956_v62, %v4795_v40  ;;  %v1800_v9 = vadd.f32 %v4956_v62, %v4801_v30  ;;  %s3293_s6 = scalar_lea.vmem %s2641_s30, 4096  ;;  %p3298_p3 = scmp.lt.s32.totalorder %s2641_s30, %s2641_s30 }
 0x2f9   :  { %2568 = vmatmul.mubr.f32.gmra.mrb[114].mxu0 %v1518_v45  ;;  %v1805_v26 = vadd.f32 %v4956_v62, %v4807_v47  ;;  %v1810_v40 = vadd.f32 %v4956_v62, %v4813_v31  ;;  %v1815_v30 = vadd.f32 %v4956_v62, %v4819_v49  ;;  %v1820_v47 = vadd.f32 %v4956_v62, %v4825_v23  ;;  %p3294_p2 = scmp.ne.s32.totalorder %s2641_s30, %s3293_s6  ;;  %p3299_p4 = scmp.lt.s32.totalorder %s3293_s6, %s3293_s6 }
 0x2fa   :  { %v4927_v8 = vpop.f32.mrb[246].mxu1  ;;  %2572 = vmatprep.mubr.f32.mxu0 %v1527_v53  ;;  %v1558_v53 = vmax.f32 %v1302_v13, 0.0  ;;  %v1825_v31 = vadd.f32 %v4956_v62, %v4831_v37  ;;  %v1830_v49 = vadd.f32 %v4956_v62, %v4837_v22  ;;  %v1835_v23 = vadd.f32 %v4956_v62, %v4843_v33 }
 0x2fb   :  { %v1906_v57 = vpop.f32.mrb[247].mxu1  ;;  %v1840_v37 = vadd.f32 %v4956_v62, %v4849_v14  ;;  %v1845_v22 = vadd.f32 %v4956_v62, %v4855_v19  ;;  %v1850_v33 = vadd.f32 %v4956_v62, %v4861_v35  ;;  %v1855_v14 = vadd.f32 %v4956_v62, %v4867_v50  ;;  %p3300_p5 = por %p3299_p4, %p3298_p3 }
 0x2fc   :  { %v1860_v19 = vadd.f32 %v4956_v62, %v4873_v29  ;;  %v1865_v35 = vadd.f32 %v4956_v62, %v4879_v16  ;;  %v1870_v50 = vadd.f32 %v4956_v62, %v4885_v21  ;;  %v1875_v29 = vadd.f32 %v4956_v62, %v4891_v10 }
 0x2fd   :  { %2573 = vmatmul.mubr.f32.gmra.mrb[116].mxu0 %v1526_v4  ;;  %v1880_v16 = vadd.f32 %v4956_v62, %v4897_v44  ;;  %v1885_v21 = vadd.f32 %v4956_v62, %v4903_v58  ;;  %v1890_v10 = vadd.f32 %v4956_v62, %v4909_v28  ;;  %v1895_v44 = vadd.f32 %v4956_v62, %v4915_v42  ;;  %p3301_p6 = pnand %p3300_p5, %p3294_p2 }
 0x2fe   :  { %v4933_v55 = vpop.f32.mrb[248].mxu1  ;;  %2577 = vmatprep.mubr.f32.mxu0 %v1535_v39  ;;  %v1900_v58 = vadd.f32 %v4956_v62, %v4921_v32  ;;  %v1905_v28 = vadd.f32 %v4956_v62, %v4927_v8 }
 0x2ff   :  { %v1911_v2 = vpop.f32.mrb[249].mxu1  ;;  %v1910_v42 = vadd.f32 %v4956_v62, %v4933_v55 }
 0x301   :  { %2578 = vmatmul.mubr.f32.gmra.mrb[118].mxu0 %v1534_v7 }
 0x302   :  { %v4939_v5 = vpop.f32.mrb[250].mxu1  ;;  %2582 = vmatprep.mubr.f32.mxu0 %v1543_v11 }
 0x303   :  { %v1916_v61 = vpop.f32.mrb[251].mxu1  ;;  %v1915_v32 = vadd.f32 %v4956_v62, %v4939_v5 }
 0x305   :  { %2583 = vmatmul.mubr.f32.gmra.mrb[120].mxu0 %v1542_v34 }
 0x306   :  { %v4945_v18 = vpop.f32.mrb[252].mxu1  ;;  %2587 = vmatprep.mubr.f32.mxu0 %v1551_v27 }
 0x307   :  { %v1921_v0 = vpop.f32.mrb[253].mxu1  ;;  %v1920_v8 = vadd.f32 %v4956_v62, %v4945_v18 }
 0x309   :  { %2588 = vmatmul.mubr.f32.gmra.mrb[122].mxu0 %v1550_v46 }
 0x30a   :  { %v4949_v63 = vpop.f32.mrb[254].mxu1  ;;  %2592 = vmatprep.mubr.f32.mxu0 %v1559_v6 }
 0x30b   :  { %v1926_v45 = vpop.f32.mrb[255].mxu1  ;;  %v1925_v55 = vadd.f32 %v4956_v62, %v4949_v63 }
 0x30d   :  { %2593 = vmatmul.mubr.f32.gmra.mrb[124].mxu0 %v1558_v53 }
 0x30e   :  { %2597 = vmatprep.mubr.f32.mxu0 %v1567_v59 }
 0x311   :  { %2598 = vmatmul.mubr.f32.gmra.mrb[126].mxu0 %v1566_v15 }
 0x368   :  { %v2444_v3 = vpop.f32.mrb[64].mxu0 }
 0x369   :  { %v3039_v60 = vadd.f32 %v2444_v3, %v1770_v36  ;;  %v2446_v39 = vpop.f32.mrb[65].mxu0 }
 0x36b   :  { %2603 = vst [vmem:[#allocation7] sm:$0xff] %v3039_v60 }
 0x36c   :  { %v2449_v25 = vpop.f32.mrb[66].mxu0 }
 0x36d   :  { %v3041_v24 = vadd.f32 %v2449_v25, %v1775_v38  ;;  %v2451_v4 = vpop.f32.mrb[67].mxu0 }
 0x36f   :  { %2604 = vst [vmem:[#allocation7 + $0x8] sm:$0xff] %v3041_v24 }
 0x370   :  { %v2454_v57 = vpop.f32.mrb[68].mxu0 }
 0x371   :  { %v3043_v11 = vadd.f32 %v2454_v57, %v1780_v1  ;;  %v2456_v54 = vpop.f32.mrb[69].mxu0 }
 0x373   :  { %2605 = vst [vmem:[#allocation7 + $0x10] sm:$0xff] %v3043_v11 }
 0x374   :  { %v2459_v7 = vpop.f32.mrb[70].mxu0 }
 0x375   :  { %v3045_v12 = vadd.f32 %v2459_v7, %v1785_v51  ;;  %v2461_v2 = vpop.f32.mrb[71].mxu0 }
 0x377   :  { %2606 = vst [vmem:[#allocation7 + $0x18] sm:$0xff] %v3045_v12 }
 0x378   :  { %v2464_v27 = vpop.f32.mrb[72].mxu0 }
 0x379   :  { %v3047_v48 = vadd.f32 %v2464_v27, %v1790_v52  ;;  %v2466_v34 = vpop.f32.mrb[73].mxu0 }
 0x37b   :  { %2607 = vst [vmem:[#allocation7 + $0x20] sm:$0xff] %v3047_v48 }
 0x37c   :  { %v2469_v43 = vpop.f32.mrb[74].mxu0 }
 0x37d   :  { %v3049_v56 = vadd.f32 %v2469_v43, %v1795_v41  ;;  %v2471_v61 = vpop.f32.mrb[75].mxu0 }
 0x37f   :  { %2608 = vst [vmem:[#allocation7 + $0x28] sm:$0xff] %v3049_v56 }
 0x380   :  { %v2474_v6 = vpop.f32.mrb[76].mxu0 }
 0x381   :  { %v3051_v20 = vadd.f32 %v2474_v6, %v1800_v9  ;;  %v2476_v46 = vpop.f32.mrb[77].mxu0 }
 0x383   :  { %2609 = vst [vmem:[#allocation7 + $0x30] sm:$0xff] %v3051_v20 }
 0x384   :  { %v2479_v13 = vpop.f32.mrb[78].mxu0 }
 0x385   :  { %v3053_v0 = vadd.f32 %v2479_v13, %v1805_v26  ;;  %v2481_v59 = vpop.f32.mrb[79].mxu0 }
 0x387   :  { %2610 = vst [vmem:[#allocation7 + $0x38] sm:$0xff] %v3053_v0 }
 0x388   :  { %v2484_v53 = vpop.f32.mrb[80].mxu0 }
 0x389   :  { %v3055_v17 = vadd.f32 %v2484_v53, %v1810_v40  ;;  %v2486_v45 = vpop.f32.mrb[81].mxu0 }
 0x38b   :  { %2611 = vst [vmem:[#allocation7 + $0x40] sm:$0xff] %v3055_v17 }
 0x38c   :  { %v2489_v15 = vpop.f32.mrb[82].mxu0 }
 0x38d   :  { %v3057_v36 = vadd.f32 %v2489_v15, %v1815_v30  ;;  %v2491_v3 = vpop.f32.mrb[83].mxu0 }
 0x38f   :  { %2612 = vst [vmem:[#allocation7 + $0x48] sm:$0xff] %v3057_v36 }
 0x390   :  { %v2494_v60 = vpop.f32.mrb[84].mxu0 }
 0x391   :  { %v3059_v39 = vadd.f32 %v2494_v60, %v1820_v47  ;;  %v2496_v38 = vpop.f32.mrb[85].mxu0 }
 0x393   :  { %2613 = vst [vmem:[#allocation7 + $0x50] sm:$0xff] %v3059_v39 }
 0x394   :  { %v2499_v25 = vpop.f32.mrb[86].mxu0 }
 0x395   :  { %v3061_v24 = vadd.f32 %v2499_v25, %v1825_v31  ;;  %v2501_v4 = vpop.f32.mrb[87].mxu0 }
 0x397   :  { %2614 = vst [vmem:[#allocation7 + $0x58] sm:$0xff] %v3061_v24 }
 0x398   :  { %v2504_v1 = vpop.f32.mrb[88].mxu0 }
 0x399   :  { %v3063_v57 = vadd.f32 %v2504_v1, %v1830_v49  ;;  %v2506_v11 = vpop.f32.mrb[89].mxu0 }
 0x39b   :  { %2615 = vst [vmem:[#allocation7 + $0x60] sm:$0xff] %v3063_v57 }
 0x39c   :  { %v2509_v54 = vpop.f32.mrb[90].mxu0 }
 0x39d   :  { %v3065_v51 = vadd.f32 %v2509_v54, %v1835_v23  ;;  %v2511_v7 = vpop.f32.mrb[91].mxu0 }
 0x39f   :  { %2616 = vst [vmem:[#allocation7 + $0x68] sm:$0xff] %v3065_v51 }
 0x3a0   :  { %v2514_v12 = vpop.f32.mrb[92].mxu0 }
 0x3a1   :  { %v3067_v2 = vadd.f32 %v2514_v12, %v1840_v37  ;;  %v2516_v52 = vpop.f32.mrb[93].mxu0 }
 0x3a3   :  { %2617 = vst [vmem:[#allocation7 + $0x70] sm:$0xff] %v3067_v2 }
 0x3a4   :  { %v2519_v27 = vpop.f32.mrb[94].mxu0 }
 0x3a5   :  { %v3069_v48 = vadd.f32 %v2519_v27, %v1845_v22  ;;  %v2521_v34 = vpop.f32.mrb[95].mxu0 }
 0x3a7   :  { %2618 = vst [vmem:[#allocation7 + $0x78] sm:$0xff] %v3069_v48 }
 0x3a8   :  { %v2524_v41 = vpop.f32.mrb[96].mxu0 }
 0x3a9   :  { %v3071_v43 = vadd.f32 %v2524_v41, %v1850_v33  ;;  %v2526_v56 = vpop.f32.mrb[97].mxu0 }
 0x3ab   :  { %2619 = vst [vmem:[#allocation7 + $0x80] sm:$0xff] %v3071_v43 }
 0x3ac   :  { %v2529_v61 = vpop.f32.mrb[98].mxu0 }
 0x3ad   :  { %v3073_v9 = vadd.f32 %v2529_v61, %v1855_v14  ;;  %v2531_v6 = vpop.f32.mrb[99].mxu0 }
 0x3af   :  { %2620 = vst [vmem:[#allocation7 + $0x88] sm:$0xff] %v3073_v9 }
 0x3b0   :  { %v2534_v20 = vpop.f32.mrb[100].mxu0 }
 0x3b1   :  { %v3075_v46 = vadd.f32 %v2534_v20, %v1860_v19  ;;  %v2536_v26 = vpop.f32.mrb[101].mxu0 }
 0x3b3   :  { %2621 = vst [vmem:[#allocation7 + $0x90] sm:$0xff] %v3075_v46 }
 0x3b4   :  { %v2539_v13 = vpop.f32.mrb[102].mxu0 }
 0x3b5   :  { %v3077_v0 = vadd.f32 %v2539_v13, %v1865_v35  ;;  %v2541_v59 = vpop.f32.mrb[103].mxu0 }
 0x3b7   :  { %2622 = vst [vmem:[#allocation7 + $0x98] sm:$0xff] %v3077_v0 }
 0x3b8   :  { %v2544_v40 = vpop.f32.mrb[104].mxu0 }
 0x3b9   :  { %v3079_v53 = vadd.f32 %v2544_v40, %v1870_v50  ;;  %v2546_v17 = vpop.f32.mrb[105].mxu0 }
 0x3bb   :  { %2623 = vst [vmem:[#allocation7 + $0xa0] sm:$0xff] %v3079_v53 }
 0x3bc   :  { %v2549_v45 = vpop.f32.mrb[106].mxu0 }
 0x3bd   :  { %v3081_v30 = vadd.f32 %v2549_v45, %v1875_v29  ;;  %v2551_v15 = vpop.f32.mrb[107].mxu0 }
 0x3bf   :  { %2624 = vst [vmem:[#allocation7 + $0xa8] sm:$0xff] %v3081_v30 }
 0x3c0   :  { %v2554_v36 = vpop.f32.mrb[108].mxu0 }
 0x3c1   :  { %v3083_v3 = vadd.f32 %v2554_v36, %v1880_v16  ;;  %v2556_v47 = vpop.f32.mrb[109].mxu0 }
 0x3c3   :  { %2625 = vst [vmem:[#allocation7 + $0xb0] sm:$0xff] %v3083_v3 }
 0x3c4   :  { %v2559_v60 = vpop.f32.mrb[110].mxu0 }
 0x3c5   :  { %v3085_v39 = vadd.f32 %v2559_v60, %v1885_v21  ;;  %v2561_v38 = vpop.f32.mrb[111].mxu0 }
 0x3c7   :  { %2626 = vst [vmem:[#allocation7 + $0xb8] sm:$0xff] %v3085_v39 }
 0x3c8   :  { %v2564_v31 = vpop.f32.mrb[112].mxu0 }
 0x3c9   :  { %v3087_v25 = vadd.f32 %v2564_v31, %v1890_v10  ;;  %v2566_v24 = vpop.f32.mrb[113].mxu0 }
 0x3cb   :  { %2627 = vst [vmem:[#allocation7 + $0xc0] sm:$0xff] %v3087_v25 }
 0x3cc   :  { %v2569_v4 = vpop.f32.mrb[114].mxu0 }
 0x3cd   :  { %v3089_v49 = vadd.f32 %v2569_v4, %v1895_v44  ;;  %v2571_v1 = vpop.f32.mrb[115].mxu0 }
 0x3cf   :  { %2628 = vst [vmem:[#allocation7 + $0xc8] sm:$0xff] %v3089_v49 }
 0x3d0   :  { %v2574_v57 = vpop.f32.mrb[116].mxu0 }
 0x3d1   :  { %v3091_v11 = vadd.f32 %v2574_v57, %v1900_v58  ;;  %v2576_v23 = vpop.f32.mrb[117].mxu0 }
 0x3d3   :  { %2629 = vst [vmem:[#allocation7 + $0xd0] sm:$0xff] %v3091_v11 }
 0x3d4   :  { %v2579_v54 = vpop.f32.mrb[118].mxu0 }
 0x3d5   :  { %v3093_v51 = vadd.f32 %v2579_v54, %v1905_v28  ;;  %v2581_v7 = vpop.f32.mrb[119].mxu0 }
 0x3d7   :  { %2630 = vst [vmem:[#allocation7 + $0xd8] sm:$0xff] %v3093_v51 }
 0x3d8   :  { %v2584_v37 = vpop.f32.mrb[120].mxu0 }
 0x3d9   :  { %v3095_v12 = vadd.f32 %v2584_v37, %v1910_v42  ;;  %v2586_v2 = vpop.f32.mrb[121].mxu0 }
 0x3db   :  { %2631 = vst [vmem:[#allocation7 + $0xe0] sm:$0xff] %v3095_v12 }
 0x3dc   :  { %v2589_v52 = vpop.f32.mrb[122].mxu0 }
 0x3dd   :  { %v3097_v22 = vadd.f32 %v2589_v52, %v1915_v32  ;;  %v2591_v27 = vpop.f32.mrb[123].mxu0 }
 0x3df   :  { %2632 = vst [vmem:[#allocation7 + $0xe8] sm:$0xff] %v3097_v22 }
 0x3e0   :  { %v2594_v48 = vpop.f32.mrb[124].mxu0 }
 0x3e1   :  { %v3099_v34 = vadd.f32 %v2594_v48, %v1920_v8  ;;  %v2596_v33 = vpop.f32.mrb[125].mxu0 }
 0x3e3   :  { %2633 = vst [vmem:[#allocation7 + $0xf0] sm:$0xff] %v3099_v34 }
 0x3e4   :  { %v2599_v41 = vpop.f32.mrb[126].mxu0 }
 0x3e5   :  { %v3101_v43 = vadd.f32 %v2599_v41, %v1925_v55  ;;  %v2601_v5 = vpop.f32.mrb[127].mxu0 }
 0x3e7   :  { %2634 = vst [vmem:[#allocation7 + $0xf8] sm:$0xff] %v3101_v43 }
 0x3e8   :  { %3304 = shalt.err (!%p3301_p6)
}
 0x3e9   :  { %s3305_s9 = scalar_lea.hbm %s5042_s5, 4096 }
 0x3ea   :  { %p3306_p7 = scmp.ne.s32.totalorder %s5042_s5, %s3305_s9  ;;  %p3309_p8 = scmp.lt.u32.totalorder %s3305_s9, %s5042_s5 }
 0x3ec   :  { %p3311_p9 = pnand %p3309_p8, %p3306_p7 }
 0x3ee   :  { %3314 = shalt.err (!%p3311_p9)
}
 0x3ef   :  { %2646 = dma.vmem_to_hbm [thread:$0]  %s2641_s30, 4096, %s5042_s5, [#allocation4], %s3325_s1, %s3325_s1, %s3326_s17  }
 0x3f0   :  { %3319 = dma.done.wait [#allocation4], 4096  }
 0x3f1   :  { %3320 = vsyncadd [#allocation4], 4294963200 }
 0x3f2   :  { %2650 = vsyncpa [#allocation3], 1 }
 0x3f3   :  { %2651 = vsyncpa [#allocation6], 1 }
 0x3f4   :  { %2652 = vsyncpa [#allocation4], 1 }

</bundles_post_ra>
